<compile_context>
chip_gen: v7x
topology: tpu7x:2x2x1
jax: 0.10.0
libtpu: 0.0.40
codegen_flags: <defaults>
</compile_context>

<pallas_src>
import jax
import jax.numpy as jnp
from jax import lax
from jax.experimental import pallas as pl
from jax.experimental.pallas import tpu as pltpu


_BN_EPS = 1e-5


def _round_up(x, m):
    return ((x + m - 1) // m) * m


# ----------------------------------------------------------------------------
# Pallas kernels
# ----------------------------------------------------------------------------
def _matmul_bn_relu_kernel(p_ref, w_ref, sb_ref, o_ref):
    """Single-step fused (im2col patches @ weight) * scale + bias, ReLU.

    p_ref : (1, M, K)   bf16  patches of one batch element (full K block)
    w_ref : (K, TN)     bf16  folded conv weight tile
    sb_ref: (2, TN)     f32   row 0 = folded BN scale, row 1 = folded BN bias
    o_ref : (1, M, TN)  bf16  lane-dense output tile
    """
    acc = jnp.dot(p_ref[0], w_ref[...], preferred_element_type=jnp.float32)
    y = acc * sb_ref[0:1, :] + sb_ref[1:2, :]
    o_ref[0] = jnp.maximum(y, 0.0).astype(o_ref.dtype)


def _maxpool_3x3_s2_kernel(xee_ref, xeo_ref, xoe_ref, xoo_ref, o_ref):
    """3x3 / stride-2 max pool for one batch element.

    Inputs are the four stride-2 parity planes of the NHWC activation
    (x[:, di::2, dj::2, :]); every pooling tap is then a *contiguous* static
    slice of one plane, so no strided / masked accesses are needed in-kernel.
    """
    _, Ho, Wo, _ = o_ref.shape
    planes = {(0, 0): xee_ref, (0, 1): xeo_ref, (1, 0): xoe_ref, (1, 1): xoo_ref}
    r = None
    for di in range(3):
        for dj in range(3):
            src = planes[(di % 2, dj % 2)]
            v = src[0, pl.ds(di // 2, Ho), pl.ds(dj // 2, Wo), :]
            r = v if r is None else jnp.maximum(r, v)
    o_ref[0] = r


# ----------------------------------------------------------------------------
# Plain-JAX glue
# ----------------------------------------------------------------------------
def _im2col(x, k, stride):
    """x: (N, H, W, C) -> patches (N, Ho*Wo, k*k*C) (same dtype), plus Ho, Wo."""
    N, H, W, C = x.shape
    Ho = (H - k) // stride + 1
    Wo = (W - k) // stride + 1
    cols = []
    for i in range(k):
        for j in range(k):
            cols.append(x[:, i:i + stride * Ho:stride,
                          j:j + stride * Wo:stride, :])
    p = jnp.stack(cols, axis=3)                        # (N, Ho, Wo, k*k, C)
    return p.reshape(N, Ho * Wo, k * k * C), Ho, Wo


def conv_bn_relu(x, p):
    """x: (N, H, W, Cin_carried) bf16 NHWC; p: pre-folded parameter dict."""
    k, stride, pad = p["k"], p["stride"], p["pad"]
    wmat, sb = p["wmat"], p["sb"]
    K, coutp = wmat.shape

    if pad > 0:
        x = jnp.pad(x, ((0, 0), (pad, pad), (pad, pad), (0, 0)))

    if k == 1 and stride == 1:
        # 1x1 conv: plain matmul over the (already lane-padded) channel dim.
        N, H, W, C = x.shape
        Ho, Wo = H, W
        patches = x.reshape(N, H * W, C)               # contiguous -> free
    else:
        patches, Ho, Wo = _im2col(x, k, stride)
    N, M, Kp = patches.shape
    assert Kp == K, (Kp, K)

    # Lane-dense output tile; keep the full 256-wide tile on the 256-wide MXU gens.
    TN = 256 if coutp % 256 == 0 else coutp
    grid = (N, coutp // TN)

    flops = 2 * N * M * K * coutp
    bytes_accessed = (patches.size + wmat.size) * 2 + sb.size * 4 + N * M * coutp * 2

    out = pl.pallas_call(
        _matmul_bn_relu_kernel,
        out_shape=jax.ShapeDtypeStruct((N, M, coutp), jnp.bfloat16),
        grid=grid,
        in_specs=[
            pl.BlockSpec((1, M, K), lambda n, j: (n, 0, 0)),
            pl.BlockSpec((K, TN), lambda n, j: (0, j)),
            pl.BlockSpec((2, TN), lambda n, j: (0, j)),
        ],
        out_specs=pl.BlockSpec((1, M, TN), lambda n, j: (n, 0, j)),
        compiler_params=pltpu.CompilerParams(
            dimension_semantics=("parallel", "parallel")),
        cost_estimate=pl.CostEstimate(flops=flops, transcendentals=0,
                                      bytes_accessed=bytes_accessed),
    )(patches, wmat, sb)
    return out.reshape(N, Ho, Wo, coutp)


def maxpool_3x3_s2(x):
    """MaxPool2d(kernel=3, stride=2, pad=0) on an NHWC (lane-dense C) input."""
    N, H, W, C = x.shape
    Ho = (H - 3) // 2 + 1
    Wo = (W - 3) // 2 + 1
    # Stride-2 parity planes (space-to-depth): total bytes == input size.
    planes = [x[:, di::2, dj::2, :] for di in (0, 1) for dj in (0, 1)]

    in_specs = [pl.BlockSpec((1,) + pln.shape[1:], lambda n: (n, 0, 0, 0))
                for pln in planes]
    itemsize = x.dtype.itemsize
    bytes_accessed = (sum(pln.size for pln in planes) + N * Ho * Wo * C) * itemsize

    out = pl.pallas_call(
        _maxpool_3x3_s2_kernel,
        out_shape=jax.ShapeDtypeStruct((N, Ho, Wo, C), x.dtype),
        grid=(N,),
        in_specs=in_specs,
        out_specs=pl.BlockSpec((1, Ho, Wo, C), lambda n: (n, 0, 0, 0)),
        compiler_params=pltpu.CompilerParams(dimension_semantics=("parallel",)),
        cost_estimate=pl.CostEstimate(flops=8 * N * Ho * Wo * C, transcendentals=0,
                                      bytes_accessed=bytes_accessed),
    )(*planes)
    return out


# ----------------------------------------------------------------------------
# Parameter construction (deterministic, synthetic), with pre-folding
# ----------------------------------------------------------------------------
# (in_c_real, out_c, ksize, stride, pad); "pool" marks MaxPool2d(3, 2, 0)
def _stem_config(in_c):
    return [
        (in_c, 32, 3, 2, 0),   # CBA(in_c, 32, 3, 2, 'valid')
        (32, 32, 3, 1, 0),     # CBA(32, 32, 3, 1, 'valid')
        (32, 64, 3, 1, 1),     # CBA(32, 64, 3)      'same' -> pad 1
        "pool",                # MaxPool2d(3, 2, 0)
        (64, 80, 1, 1, 0),     # CBA(64, 80, 1)      'same' -> pad 0
        (80, 192, 3, 1, 0),    # CBA(80, 192, 3, 1, 'valid')
        (192, 256, 3, 2, 0),   # CBA(192, 256, 3, 2, 'valid')
    ]


def init_stem_params(key, in_c):
    """Deterministic synthetic Conv/BN parameters, pre-folded for the kernels.

    Weights become (k*k*Cin_carried, Cout_padded) GEMM matrices with zero rows
    for the lane-padding channels carried from the previous layer and zero
    columns for this layer's own output-channel padding; inference-mode BN is
    folded into one (2, Cout_padded) scale/bias array.
    """
    params = []
    cin_carried = in_c     # channels physically present in the incoming NHWC tensor
    for cfg in _stem_config(in_c):
        if cfg == "pool":
            params.append(None)            # pool preserves the (padded) channel count
            continue
        ci, co, k, stride, pad = cfg
        coutp = _round_up(co, 128)

        key, kw_, kg, kb, km, kv = jax.random.split(key, 6)
        w = jax.random.normal(kw_, (co, ci, k, k), jnp.float32) * 0.1
        gamma = jax.random.uniform(kg, (co,), jnp.float32, minval=0.5, maxval=1.5)
        beta = jax.random.normal(kb, (co,), jnp.float32) * 0.1
        mean = jax.random.normal(km, (co,), jnp.float32) * 0.1
        var = jax.random.uniform(kv, (co,), jnp.float32, minval=0.5, maxval=1.5)

        # Inference-mode BN fold: BN(y) = y*scale + bias.
        scale = gamma / jnp.sqrt(var + _BN_EPS)
        bias = beta - mean * scale

        # (Cout, Cin, kh, kw) -> (kh, kw, Cin_carried, Cout_padded) -> 2D GEMM weight.
        wk = jnp.transpose(w, (2, 3, 1, 0))
        wk = jnp.pad(wk, ((0, 0), (0, 0), (0, cin_carried - ci), (0, coutp - co)))
        wmat = wk.reshape(k * k * cin_carried, coutp).astype(jnp.bfloat16)
        sb = jnp.stack([jnp.pad(scale, (0, coutp - co)),
                        jnp.pad(bias, (0, coutp - co))], axis=0)      # (2, coutp) f32

        params.append({
            "wmat": wmat, "sb": sb, "k": k, "stride": stride, "pad": pad,
            "cout": co, "cout_p": coutp,
            # raw copies for the pure-JAX reference check
            "w_raw": w, "scale_raw": scale, "bias_raw": bias,
        })
        cin_carried = coutp
    return params


# ----------------------------------------------------------------------------
# Stem forward (Pallas) and pure-JAX reference
# ----------------------------------------------------------------------------
def stem_forward(x_nchw, params):
    """NCHW float input -> NCHW float32 Stem output, Pallas kernels inside."""
    x = jnp.transpose(x_nchw, (0, 2, 3, 1)).astype(jnp.bfloat16)     # NHWC, bf16
    cout = x.shape[-1]
    for p in params:
        if p is None:
            x = maxpool_3x3_s2(x)
        else:
            x = conv_bn_relu(x, p)
            cout = p["cout"]
    x = x[..., :cout]            # drop channel padding (no-op here: 256 == 256)
    return jnp.transpose(x, (0, 3, 1, 2)).astype(jnp.float32)


def _reference_forward(x_nchw, params):
    """XLA reference with the same bf16-carry / f32-accumulate numerics."""
    x = jnp.transpose(x_nchw, (0, 2, 3, 1)).astype(jnp.bfloat16)
    for p in params:
        if p is None:
            x = lax.reduce_window(x, jnp.array(-jnp.inf, x.dtype), lax.max,
                                  (1, 3, 3, 1), (1, 2, 2, 1), "VALID")
            continue
        s, pad = p["stride"], p["pad"]
        y = lax.conv_general_dilated(
            x, p["w_raw"].astype(jnp.bfloat16),
            window_strides=(s, s), padding=[(pad, pad), (pad, pad)],
            dimension_numbers=("NHWC", "OIHW", "NHWC"),
            preferred_element_type=jnp.float32)
        y = y * p["scale_raw"] + p["bias_raw"]
        x = jnp.maximum(y, 0.0).astype(jnp.bfloat16)
    return jnp.transpose(x, (0, 3, 1, 2)).astype(jnp.float32)


if __name__ == "__main__":
    key = jax.random.PRNGKey(0)
    k_in, k_par = jax.random.split(key)

    # Smallest spatial size for which every 'valid' conv / pool is non-degenerate:
    # 35 -> 17 -> 15 -> 15 -> (pool) 7 -> 7 -> 5 -> 2, channels -> 256.
    batch, in_c, spatial = 2, 3, 35
    x = jax.random.normal(k_in, (batch, in_c, spatial, spatial), jnp.float32)

    params = init_stem_params(k_par, in_c)

    fwd = jax.jit(lambda inp: stem_forward(inp, params))
    out = jax.block_until_ready(fwd(x))
    assert out.shape == (batch, 256, 2, 2), out.shape
    assert bool(jnp.all(jnp.isfinite(out)))

    # Numerical check against a pure-JAX reference with matching bf16 carry.
    ref = jax.block_until_ready(
        jax.jit(lambda inp: _reference_forward(inp, params))(x))
    max_err = float(jnp.max(jnp.abs(out - ref)))
    ref_mag = float(jnp.max(jnp.abs(ref)))
    assert max_err <= 0.05 * ref_mag + 1e-3, (max_err, ref_mag)

    print("KERNEL_OK")
</pallas_src>

<mosaic_0001>
module attributes {stable_mosaic.version = 11 : i64} {
  func.func @_matmul_bn_relu_kernel(%arg0: i32, %arg1: i32, %arg2: memref<1x289x27xbf16, #tpu.memory_space<vmem>>, %arg3: memref<27x128xbf16, #tpu.memory_space<vmem>>, %arg4: memref<2x128xf32, #tpu.memory_space<vmem>>, %arg5: memref<1x289x128xbf16, #tpu.memory_space<vmem>>) attributes {dimension_semantics = [#tpu.dimension_semantics<parallel>, #tpu.dimension_semantics<parallel>], iteration_bounds = array<i64: 2, 1>, scalar_prefetch = 0 : i64, scratch_operands = 0 : i64, tpu.core_type = #tpu.core_type<tc>, window_params = [{transform_indices = @transform_0, window_bounds = array<i64: 1, 289, 27>}, {transform_indices = @transform_1, window_bounds = array<i64: 27, 128>}, {transform_indices = @transform_2, window_bounds = array<i64: 2, 128>}, {transform_indices = @transform_3, window_bounds = array<i64: 1, 289, 128>}]} {
    %c0 = arith.constant 0 : index
    %c0_0 = arith.constant 0 : index
    %c0_1 = arith.constant 0 : index
    %0 = vector.load %arg2[%c0, %c0_0, %c0_1] : memref<1x289x27xbf16, #tpu.memory_space<vmem>>, vector<1x289x27xbf16>
    %1 = vector.shape_cast %0 : vector<1x289x27xbf16> to vector<289x27xbf16>
    %c0_2 = arith.constant 0 : index
    %c0_3 = arith.constant 0 : index
    %2 = vector.load %arg3[%c0_2, %c0_3] : memref<27x128xbf16, #tpu.memory_space<vmem>>, vector<27x128xbf16>
    %cst = arith.constant dense<0.000000e+00> : vector<289x128xf32>
    %3 = tpu.matmul %1, %2, %cst {dimension_numbers = #tpu.dot_dimension_numbers<[1], [0], [0], [1], [0, 0, 1, 1], [], []>} : vector<289x27xbf16>, vector<27x128xbf16>, vector<289x128xf32> -> vector<289x128xf32>
    %c0_4 = arith.constant 0 : index
    %c0_5 = arith.constant 0 : index
    %4 = vector.load %arg4[%c0_4, %c0_5] : memref<2x128xf32, #tpu.memory_space<vmem>>, vector<1x128xf32>
    %5 = vector.broadcast %4 : vector<1x128xf32> to vector<289x128xf32>
    %6 = arith.mulf %3, %5 : vector<289x128xf32>
    %c1 = arith.constant 1 : index
    %c0_6 = arith.constant 0 : index
    %7 = vector.load %arg4[%c1, %c0_6] : memref<2x128xf32, #tpu.memory_space<vmem>>, vector<1x128xf32>
    %8 = vector.broadcast %7 : vector<1x128xf32> to vector<289x128xf32>
    %9 = arith.addf %6, %8 : vector<289x128xf32>
    %cst_7 = arith.constant 0.000000e+00 : f32
    %10 = vector.broadcast %cst_7 : f32 to vector<289x128xf32>
    %11 = arith.maximumf %9, %10 : vector<289x128xf32>
    %12 = arith.truncf %11 : vector<289x128xf32> to vector<289x128xbf16>
    %c0_8 = arith.constant 0 : index
    %c0_9 = arith.constant 0 : index
    %c0_10 = arith.constant 0 : index
    %13 = vector.load %arg5[%c0_8, %c0_9, %c0_10] : memref<1x289x128xbf16, #tpu.memory_space<vmem>>, vector<1x289x128xbf16>
    %14 = vector.shape_cast %13 : vector<1x289x128xbf16> to vector<289x128xbf16>
    %15 = vector.shape_cast %12 : vector<289x128xbf16> to vector<1x289x128xbf16>
    tpu.vector_store %arg5[%c0_8, %c0_9, %c0_10], %15 {strides = array<i32>} : memref<1x289x128xbf16, #tpu.memory_space<vmem>>, vector<1x289x128xbf16>,
    return
  }
  func.func @transform_0(%arg0: i32, %arg1: i32) -> (i32, i32, i32) {
    %c0_i32 = arith.constant 0 : i32
    %c0_i32_0 = arith.constant 0 : i32
    %c0_i32_1 = arith.constant 0 : i32
    return %arg0, %c0_i32, %c0_i32_0 : i32, i32, i32
  }
  func.func @transform_1(%arg0: i32, %arg1: i32) -> (i32, i32) {
    %c0_i32 = arith.constant 0 : i32
    %c0_i32_0 = arith.constant 0 : i32
    return %c0_i32, %arg1 : i32, i32
  }
  func.func @transform_2(%arg0: i32, %arg1: i32) -> (i32, i32) {
    %c0_i32 = arith.constant 0 : i32
    %c0_i32_0 = arith.constant 0 : i32
    return %c0_i32, %arg1 : i32, i32
  }
  func.func @transform_3(%arg0: i32, %arg1: i32) -> (i32, i32, i32) {
    %c0_i32 = arith.constant 0 : i32
    %c0_i32_0 = arith.constant 0 : i32
    return %arg0, %c0_i32, %arg1 : i32, i32, i32
  }
}

module attributes {stable_mosaic.version = 11 : i64} {
  func.func @_matmul_bn_relu_kernel(%arg0: i32, %arg1: i32, %arg2: memref<1x225x1152xbf16, #tpu.memory_space<vmem>>, %arg3: memref<1152x128xbf16, #tpu.memory_space<vmem>>, %arg4: memref<2x128xf32, #tpu.memory_space<vmem>>, %arg5: memref<1x225x128xbf16, #tpu.memory_space<vmem>>) attributes {dimension_semantics = [#tpu.dimension_semantics<parallel>, #tpu.dimension_semantics<parallel>], iteration_bounds = array<i64: 2, 1>, scalar_prefetch = 0 : i64, scratch_operands = 0 : i64, tpu.core_type = #tpu.core_type<tc>, window_params = [{transform_indices = @transform_0, window_bounds = array<i64: 1, 225, 1152>}, {transform_indices = @transform_1, window_bounds = array<i64: 1152, 128>}, {transform_indices = @transform_2, window_bounds = array<i64: 2, 128>}, {transform_indices = @transform_3, window_bounds = array<i64: 1, 225, 128>}]} {
    %c0 = arith.constant 0 : index
    %c0_0 = arith.constant 0 : index
    %c0_1 = arith.constant 0 : index
    %0 = vector.load %arg2[%c0, %c0_0, %c0_1] : memref<1x225x1152xbf16, #tpu.memory_space<vmem>>, vector<1x225x1152xbf16>
    %1 = vector.shape_cast %0 : vector<1x225x1152xbf16> to vector<225x1152xbf16>
    %c0_2 = arith.constant 0 : index
    %c0_3 = arith.constant 0 : index
    %2 = vector.load %arg3[%c0_2, %c0_3] : memref<1152x128xbf16, #tpu.memory_space<vmem>>, vector<1152x128xbf16>
    %cst = arith.constant dense<0.000000e+00> : vector<225x128xf32>
    %3 = tpu.matmul %1, %2, %cst {dimension_numbers = #tpu.dot_dimension_numbers<[1], [0], [0], [1], [0, 0, 1, 1], [], []>} : vector<225x1152xbf16>, vector<1152x128xbf16>, vector<225x128xf32> -> vector<225x128xf32>
    %c0_4 = arith.constant 0 : index
    %c0_5 = arith.constant 0 : index
    %4 = vector.load %arg4[%c0_4, %c0_5] : memref<2x128xf32, #tpu.memory_space<vmem>>, vector<1x128xf32>
    %5 = vector.broadcast %4 : vector<1x128xf32> to vector<225x128xf32>
    %6 = arith.mulf %3, %5 : vector<225x128xf32>
    %c1 = arith.constant 1 : index
    %c0_6 = arith.constant 0 : index
    %7 = vector.load %arg4[%c1, %c0_6] : memref<2x128xf32, #tpu.memory_space<vmem>>, vector<1x128xf32>
    %8 = vector.broadcast %7 : vector<1x128xf32> to vector<225x128xf32>
    %9 = arith.addf %6, %8 : vector<225x128xf32>
    %cst_7 = arith.constant 0.000000e+00 : f32
    %10 = vector.broadcast %cst_7 : f32 to vector<225x128xf32>
    %11 = arith.maximumf %9, %10 : vector<225x128xf32>
    %12 = arith.truncf %11 : vector<225x128xf32> to vector<225x128xbf16>
    %c0_8 = arith.constant 0 : index
    %c0_9 = arith.constant 0 : index
    %c0_10 = arith.constant 0 : index
    %13 = vector.load %arg5[%c0_8, %c0_9, %c0_10] : memref<1x225x128xbf16, #tpu.memory_space<vmem>>, vector<1x225x128xbf16>
    %14 = vector.shape_cast %13 : vector<1x225x128xbf16> to vector<225x128xbf16>
    %15 = vector.shape_cast %12 : vector<225x128xbf16> to vector<1x225x128xbf16>
    tpu.vector_store %arg5[%c0_8, %c0_9, %c0_10], %15 {strides = array<i32>} : memref<1x225x128xbf16, #tpu.memory_space<vmem>>, vector<1x225x128xbf16>,
    return
  }
  func.func @transform_0(%arg0: i32, %arg1: i32) -> (i32, i32, i32) {
    %c0_i32 = arith.constant 0 : i32
    %c0_i32_0 = arith.constant 0 : i32
    %c0_i32_1 = arith.constant 0 : i32
    return %arg0, %c0_i32, %c0_i32_0 : i32, i32, i32
  }
  func.func @transform_1(%arg0: i32, %arg1: i32) -> (i32, i32) {
    %c0_i32 = arith.constant 0 : i32
    %c0_i32_0 = arith.constant 0 : i32
    return %c0_i32, %arg1 : i32, i32
  }
  func.func @transform_2(%arg0: i32, %arg1: i32) -> (i32, i32) {
    %c0_i32 = arith.constant 0 : i32
    %c0_i32_0 = arith.constant 0 : i32
    return %c0_i32, %arg1 : i32, i32
  }
  func.func @transform_3(%arg0: i32, %arg1: i32) -> (i32, i32, i32) {
    %c0_i32 = arith.constant 0 : i32
    %c0_i32_0 = arith.constant 0 : i32
    return %arg0, %c0_i32, %arg1 : i32, i32, i32
  }
}

module attributes {stable_mosaic.version = 11 : i64} {
  func.func @_maxpool_3x3_s2_kernel(%arg0: i32, %arg1: memref<1x8x8x128xbf16, #tpu.memory_space<vmem>>, %arg2: memref<1x8x7x128xbf16, #tpu.memory_space<vmem>>, %arg3: memref<1x7x8x128xbf16, #tpu.memory_space<vmem>>, %arg4: memref<1x7x7x128xbf16, #tpu.memory_space<vmem>>, %arg5: memref<1x7x7x128xbf16, #tpu.memory_space<vmem>>) attributes {dimension_semantics = [#tpu.dimension_semantics<parallel>], iteration_bounds = array<i64: 2>, scalar_prefetch = 0 : i64, scratch_operands = 0 : i64, tpu.core_type = #tpu.core_type<tc>, window_params = [{transform_indices = @transform_0, window_bounds = array<i64: 1, 8, 8, 128>}, {transform_indices = @transform_1, window_bounds = array<i64: 1, 8, 7, 128>}, {transform_indices = @transform_2, window_bounds = array<i64: 1, 7, 8, 128>}, {transform_indices = @transform_3, window_bounds = array<i64: 1, 7, 7, 128>}, {transform_indices = @transform_4, window_bounds = array<i64: 1, 7, 7, 128>}]} {
    %c0 = arith.constant 0 : index
    %c0_0 = arith.constant 0 : index
    %c0_1 = arith.constant 0 : index
    %c0_2 = arith.constant 0 : index
    %0 = vector.load %arg1[%c0, %c0_0, %c0_1, %c0_2] : memref<1x8x8x128xbf16, #tpu.memory_space<vmem>>, vector<1x7x7x128xbf16>
    %1 = vector.shape_cast %0 : vector<1x7x7x128xbf16> to vector<7x7x128xbf16>
    %c0_3 = arith.constant 0 : index
    %c0_4 = arith.constant 0 : index
    %c0_5 = arith.constant 0 : index
    %c0_6 = arith.constant 0 : index
    %2 = vector.load %arg2[%c0_3, %c0_4, %c0_5, %c0_6] : memref<1x8x7x128xbf16, #tpu.memory_space<vmem>>, vector<1x7x7x128xbf16>
    %3 = vector.shape_cast %2 : vector<1x7x7x128xbf16> to vector<7x7x128xbf16>
    %4 = arith.maximumf %1, %3 : vector<7x7x128xbf16>
    %c0_7 = arith.constant 0 : index
    %c0_8 = arith.constant 0 : index
    %c1 = arith.constant 1 : index
    %c0_9 = arith.constant 0 : index
    %5 = vector.load %arg1[%c0_7, %c0_8, %c1, %c0_9] : memref<1x8x8x128xbf16, #tpu.memory_space<vmem>>, vector<1x7x7x128xbf16>
    %6 = vector.shape_cast %5 : vector<1x7x7x128xbf16> to vector<7x7x128xbf16>
    %7 = arith.maximumf %4, %6 : vector<7x7x128xbf16>
    %c0_10 = arith.constant 0 : index
    %c0_11 = arith.constant 0 : index
    %c0_12 = arith.constant 0 : index
    %c0_13 = arith.constant 0 : index
    %8 = vector.load %arg3[%c0_10, %c0_11, %c0_12, %c0_13] : memref<1x7x8x128xbf16, #tpu.memory_space<vmem>>, vector<1x7x7x128xbf16>
    %9 = vector.shape_cast %8 : vector<1x7x7x128xbf16> to vector<7x7x128xbf16>
    %10 = arith.maximumf %7, %9 : vector<7x7x128xbf16>
    %c0_14 = arith.constant 0 : index
    %c0_15 = arith.constant 0 : index
    %c0_16 = arith.constant 0 : index
    %c0_17 = arith.constant 0 : index
    %11 = vector.load %arg4[%c0_14, %c0_15, %c0_16, %c0_17] : memref<1x7x7x128xbf16, #tpu.memory_space<vmem>>, vector<1x7x7x128xbf16>
    %12 = vector.shape_cast %11 : vector<1x7x7x128xbf16> to vector<7x7x128xbf16>
    %13 = arith.maximumf %10, %12 : vector<7x7x128xbf16>
    %c0_18 = arith.constant 0 : index
    %c0_19 = arith.constant 0 : index
    %c1_20 = arith.constant 1 : index
    %c0_21 = arith.constant 0 : index
    %14 = vector.load %arg3[%c0_18, %c0_19, %c1_20, %c0_21] : memref<1x7x8x128xbf16, #tpu.memory_space<vmem>>, vector<1x7x7x128xbf16>
    %15 = vector.shape_cast %14 : vector<1x7x7x128xbf16> to vector<7x7x128xbf16>
    %16 = arith.maximumf %13, %15 : vector<7x7x128xbf16>
    %c0_22 = arith.constant 0 : index
    %c1_23 = arith.constant 1 : index
    %c0_24 = arith.constant 0 : index
    %c0_25 = arith.constant 0 : index
    %17 = vector.load %arg1[%c0_22, %c1_23, %c0_24, %c0_25] : memref<1x8x8x128xbf16, #tpu.memory_space<vmem>>, vector<1x7x7x128xbf16>
    %18 = vector.shape_cast %17 : vector<1x7x7x128xbf16> to vector<7x7x128xbf16>
    %19 = arith.maximumf %16, %18 : vector<7x7x128xbf16>
    %c0_26 = arith.constant 0 : index
    %c1_27 = arith.constant 1 : index
    %c0_28 = arith.constant 0 : index
    %c0_29 = arith.constant 0 : index
    %20 = vector.load %arg2[%c0_26, %c1_27, %c0_28, %c0_29] : memref<1x8x7x128xbf16, #tpu.memory_space<vmem>>, vector<1x7x7x128xbf16>
    %21 = vector.shape_cast %20 : vector<1x7x7x128xbf16> to vector<7x7x128xbf16>
    %22 = arith.maximumf %19, %21 : vector<7x7x128xbf16>
    %c0_30 = arith.constant 0 : index
    %c1_31 = arith.constant 1 : index
    %c1_32 = arith.constant 1 : index
    %c0_33 = arith.constant 0 : index
    %23 = vector.load %arg1[%c0_30, %c1_31, %c1_32, %c0_33] : memref<1x8x8x128xbf16, #tpu.memory_space<vmem>>, vector<1x7x7x128xbf16>
    %24 = vector.shape_cast %23 : vector<1x7x7x128xbf16> to vector<7x7x128xbf16>
    %25 = arith.maximumf %22, %24 : vector<7x7x128xbf16>
    %c0_34 = arith.constant 0 : index
    %c0_35 = arith.constant 0 : index
    %c0_36 = arith.constant 0 : index
    %c0_37 = arith.constant 0 : index
    %26 = vector.load %arg5[%c0_34, %c0_35, %c0_36, %c0_37] : memref<1x7x7x128xbf16, #tpu.memory_space<vmem>>, vector<1x7x7x128xbf16>
    %27 = vector.shape_cast %26 : vector<1x7x7x128xbf16> to vector<7x7x128xbf16>
    %28 = vector.shape_cast %25 : vector<7x7x128xbf16> to vector<1x7x7x128xbf16>
    tpu.vector_store %arg5[%c0_34, %c0_35, %c0_36, %c0_37], %28 {strides = array<i32>} : memref<1x7x7x128xbf16, #tpu.memory_space<vmem>>, vector<1x7x7x128xbf16>,
    return
  }
  func.func @transform_0(%arg0: i32) -> (i32, i32, i32, i32) {
    %c0_i32 = arith.constant 0 : i32
    %c0_i32_0 = arith.constant 0 : i32
    %c0_i32_1 = arith.constant 0 : i32
    %c0_i32_2 = arith.constant 0 : i32
    return %arg0, %c0_i32, %c0_i32_0, %c0_i32_1 : i32, i32, i32, i32
  }
  func.func @transform_1(%arg0: i32) -> (i32, i32, i32, i32) {
    %c0_i32 = arith.constant 0 : i32
    %c0_i32_0 = arith.constant 0 : i32
    %c0_i32_1 = arith.constant 0 : i32
    %c0_i32_2 = arith.constant 0 : i32
    return %arg0, %c0_i32, %c0_i32_0, %c0_i32_1 : i32, i32, i32, i32
  }
  func.func @transform_2(%arg0: i32) -> (i32, i32, i32, i32) {
    %c0_i32 = arith.constant 0 : i32
    %c0_i32_0 = arith.constant 0 : i32
    %c0_i32_1 = arith.constant 0 : i32
    %c0_i32_2 = arith.constant 0 : i32
    return %arg0, %c0_i32, %c0_i32_0, %c0_i32_1 : i32, i32, i32, i32
  }
  func.func @transform_3(%arg0: i32) -> (i32, i32, i32, i32) {
    %c0_i32 = arith.constant 0 : i32
    %c0_i32_0 = arith.constant 0 : i32
    %c0_i32_1 = arith.constant 0 : i32
    %c0_i32_2 = arith.constant 0 : i32
    return %arg0, %c0_i32, %c0_i32_0, %c0_i32_1 : i32, i32, i32, i32
  }
  func.func @transform_4(%arg0: i32) -> (i32, i32, i32, i32) {
    %c0_i32 = arith.constant 0 : i32
    %c0_i32_0 = arith.constant 0 : i32
    %c0_i32_1 = arith.constant 0 : i32
    %c0_i32_2 = arith.constant 0 : i32
    return %arg0, %c0_i32, %c0_i32_0, %c0_i32_1 : i32, i32, i32, i32
  }
}

module attributes {stable_mosaic.version = 11 : i64} {
  func.func @_matmul_bn_relu_kernel(%arg0: i32, %arg1: i32, %arg2: memref<1x49x128xbf16, #tpu.memory_space<vmem>>, %arg3: memref<128x128xbf16, #tpu.memory_space<vmem>>, %arg4: memref<2x128xf32, #tpu.memory_space<vmem>>, %arg5: memref<1x49x128xbf16, #tpu.memory_space<vmem>>) attributes {dimension_semantics = [#tpu.dimension_semantics<parallel>, #tpu.dimension_semantics<parallel>], iteration_bounds = array<i64: 2, 1>, scalar_prefetch = 0 : i64, scratch_operands = 0 : i64, tpu.core_type = #tpu.core_type<tc>, window_params = [{transform_indices = @transform_0, window_bounds = array<i64: 1, 49, 128>}, {transform_indices = @transform_1, window_bounds = array<i64: 128, 128>}, {transform_indices = @transform_2, window_bounds = array<i64: 2, 128>}, {transform_indices = @transform_3, window_bounds = array<i64: 1, 49, 128>}]} {
    %c0 = arith.constant 0 : index
    %c0_0 = arith.constant 0 : index
    %c0_1 = arith.constant 0 : index
    %0 = vector.load %arg2[%c0, %c0_0, %c0_1] : memref<1x49x128xbf16, #tpu.memory_space<vmem>>, vector<1x49x128xbf16>
    %1 = vector.shape_cast %0 : vector<1x49x128xbf16> to vector<49x128xbf16>
    %c0_2 = arith.constant 0 : index
    %c0_3 = arith.constant 0 : index
    %2 = vector.load %arg3[%c0_2, %c0_3] : memref<128x128xbf16, #tpu.memory_space<vmem>>, vector<128x128xbf16>
    %cst = arith.constant dense<0.000000e+00> : vector<49x128xf32>
    %3 = tpu.matmul %1, %2, %cst {dimension_numbers = #tpu.dot_dimension_numbers<[1], [0], [0], [1], [0, 0, 1, 1], [], []>} : vector<49x128xbf16>, vector<128x128xbf16>, vector<49x128xf32> -> vector<49x128xf32>
    %c0_4 = arith.constant 0 : index
    %c0_5 = arith.constant 0 : index
    %4 = vector.load %arg4[%c0_4, %c0_5] : memref<2x128xf32, #tpu.memory_space<vmem>>, vector<1x128xf32>
    %5 = vector.broadcast %4 : vector<1x128xf32> to vector<49x128xf32>
    %6 = arith.mulf %3, %5 : vector<49x128xf32>
    %c1 = arith.constant 1 : index
    %c0_6 = arith.constant 0 : index
    %7 = vector.load %arg4[%c1, %c0_6] : memref<2x128xf32, #tpu.memory_space<vmem>>, vector<1x128xf32>
    %8 = vector.broadcast %7 : vector<1x128xf32> to vector<49x128xf32>
    %9 = arith.addf %6, %8 : vector<49x128xf32>
    %cst_7 = arith.constant 0.000000e+00 : f32
    %10 = vector.broadcast %cst_7 : f32 to vector<49x128xf32>
    %11 = arith.maximumf %9, %10 : vector<49x128xf32>
    %12 = arith.truncf %11 : vector<49x128xf32> to vector<49x128xbf16>
    %c0_8 = arith.constant 0 : index
    %c0_9 = arith.constant 0 : index
    %c0_10 = arith.constant 0 : index
    %13 = vector.load %arg5[%c0_8, %c0_9, %c0_10] : memref<1x49x128xbf16, #tpu.memory_space<vmem>>, vector<1x49x128xbf16>
    %14 = vector.shape_cast %13 : vector<1x49x128xbf16> to vector<49x128xbf16>
    %15 = vector.shape_cast %12 : vector<49x128xbf16> to vector<1x49x128xbf16>
    tpu.vector_store %arg5[%c0_8, %c0_9, %c0_10], %15 {strides = array<i32>} : memref<1x49x128xbf16, #tpu.memory_space<vmem>>, vector<1x49x128xbf16>,
    return
  }
  func.func @transform_0(%arg0: i32, %arg1: i32) -> (i32, i32, i32) {
    %c0_i32 = arith.constant 0 : i32
    %c0_i32_0 = arith.constant 0 : i32
    %c0_i32_1 = arith.constant 0 : i32
    return %arg0, %c0_i32, %c0_i32_0 : i32, i32, i32
  }
  func.func @transform_1(%arg0: i32, %arg1: i32) -> (i32, i32) {
    %c0_i32 = arith.constant 0 : i32
    %c0_i32_0 = arith.constant 0 : i32
    return %c0_i32, %arg1 : i32, i32
  }
  func.func @transform_2(%arg0: i32, %arg1: i32) -> (i32, i32) {
    %c0_i32 = arith.constant 0 : i32
    %c0_i32_0 = arith.constant 0 : i32
    return %c0_i32, %arg1 : i32, i32
  }
  func.func @transform_3(%arg0: i32, %arg1: i32) -> (i32, i32, i32) {
    %c0_i32 = arith.constant 0 : i32
    %c0_i32_0 = arith.constant 0 : i32
    return %arg0, %c0_i32, %arg1 : i32, i32, i32
  }
}

module attributes {stable_mosaic.version = 11 : i64} {
  func.func @_matmul_bn_relu_kernel(%arg0: i32, %arg1: i32, %arg2: memref<1x25x1152xbf16, #tpu.memory_space<vmem>>, %arg3: memref<1152x256xbf16, #tpu.memory_space<vmem>>, %arg4: memref<2x256xf32, #tpu.memory_space<vmem>>, %arg5: memref<1x25x256xbf16, #tpu.memory_space<vmem>>) attributes {dimension_semantics = [#tpu.dimension_semantics<parallel>, #tpu.dimension_semantics<parallel>], iteration_bounds = array<i64: 2, 1>, scalar_prefetch = 0 : i64, scratch_operands = 0 : i64, tpu.core_type = #tpu.core_type<tc>, window_params = [{transform_indices = @transform_0, window_bounds = array<i64: 1, 25, 1152>}, {transform_indices = @transform_1, window_bounds = array<i64: 1152, 256>}, {transform_indices = @transform_2, window_bounds = array<i64: 2, 256>}, {transform_indices = @transform_3, window_bounds = array<i64: 1, 25, 256>}]} {
    %c0 = arith.constant 0 : index
    %c0_0 = arith.constant 0 : index
    %c0_1 = arith.constant 0 : index
    %0 = vector.load %arg2[%c0, %c0_0, %c0_1] : memref<1x25x1152xbf16, #tpu.memory_space<vmem>>, vector<1x25x1152xbf16>
    %1 = vector.shape_cast %0 : vector<1x25x1152xbf16> to vector<25x1152xbf16>
    %c0_2 = arith.constant 0 : index
    %c0_3 = arith.constant 0 : index
    %2 = vector.load %arg3[%c0_2, %c0_3] : memref<1152x256xbf16, #tpu.memory_space<vmem>>, vector<1152x256xbf16>
    %cst = arith.constant dense<0.000000e+00> : vector<25x256xf32>
    %3 = tpu.matmul %1, %2, %cst {dimension_numbers = #tpu.dot_dimension_numbers<[1], [0], [0], [1], [0, 0, 1, 1], [], []>} : vector<25x1152xbf16>, vector<1152x256xbf16>, vector<25x256xf32> -> vector<25x256xf32>
    %c0_4 = arith.constant 0 : index
    %c0_5 = arith.constant 0 : index
    %4 = vector.load %arg4[%c0_4, %c0_5] : memref<2x256xf32, #tpu.memory_space<vmem>>, vector<1x256xf32>
    %5 = vector.broadcast %4 : vector<1x256xf32> to vector<25x256xf32>
    %6 = arith.mulf %3, %5 : vector<25x256xf32>
    %c1 = arith.constant 1 : index
    %c0_6 = arith.constant 0 : index
    %7 = vector.load %arg4[%c1, %c0_6] : memref<2x256xf32, #tpu.memory_space<vmem>>, vector<1x256xf32>
    %8 = vector.broadcast %7 : vector<1x256xf32> to vector<25x256xf32>
    %9 = arith.addf %6, %8 : vector<25x256xf32>
    %cst_7 = arith.constant 0.000000e+00 : f32
    %10 = vector.broadcast %cst_7 : f32 to vector<25x256xf32>
    %11 = arith.maximumf %9, %10 : vector<25x256xf32>
    %12 = arith.truncf %11 : vector<25x256xf32> to vector<25x256xbf16>
    %c0_8 = arith.constant 0 : index
    %c0_9 = arith.constant 0 : index
    %c0_10 = arith.constant 0 : index
    %13 = vector.load %arg5[%c0_8, %c0_9, %c0_10] : memref<1x25x256xbf16, #tpu.memory_space<vmem>>, vector<1x25x256xbf16>
    %14 = vector.shape_cast %13 : vector<1x25x256xbf16> to vector<25x256xbf16>
    %15 = vector.shape_cast %12 : vector<25x256xbf16> to vector<1x25x256xbf16>
    tpu.vector_store %arg5[%c0_8, %c0_9, %c0_10], %15 {strides = array<i32>} : memref<1x25x256xbf16, #tpu.memory_space<vmem>>, vector<1x25x256xbf16>,
    return
  }
  func.func @transform_0(%arg0: i32, %arg1: i32) -> (i32, i32, i32) {
    %c0_i32 = arith.constant 0 : i32
    %c0_i32_0 = arith.constant 0 : i32
    %c0_i32_1 = arith.constant 0 : i32
    return %arg0, %c0_i32, %c0_i32_0 : i32, i32, i32
  }
  func.func @transform_1(%arg0: i32, %arg1: i32) -> (i32, i32) {
    %c0_i32 = arith.constant 0 : i32
    %c0_i32_0 = arith.constant 0 : i32
    return %c0_i32, %arg1 : i32, i32
  }
  func.func @transform_2(%arg0: i32, %arg1: i32) -> (i32, i32) {
    %c0_i32 = arith.constant 0 : i32
    %c0_i32_0 = arith.constant 0 : i32
    return %c0_i32, %arg1 : i32, i32
  }
  func.func @transform_3(%arg0: i32, %arg1: i32) -> (i32, i32, i32) {
    %c0_i32 = arith.constant 0 : i32
    %c0_i32_0 = arith.constant 0 : i32
    return %arg0, %c0_i32, %arg1 : i32, i32, i32
  }
}

module attributes {stable_mosaic.version = 11 : i64} {
  func.func @_matmul_bn_relu_kernel(%arg0: i32, %arg1: i32, %arg2: memref<1x4x2304xbf16, #tpu.memory_space<vmem>>, %arg3: memref<2304x256xbf16, #tpu.memory_space<vmem>>, %arg4: memref<2x256xf32, #tpu.memory_space<vmem>>, %arg5: memref<1x4x256xbf16, #tpu.memory_space<vmem>>) attributes {dimension_semantics = [#tpu.dimension_semantics<parallel>, #tpu.dimension_semantics<parallel>], iteration_bounds = array<i64: 2, 1>, scalar_prefetch = 0 : i64, scratch_operands = 0 : i64, tpu.core_type = #tpu.core_type<tc>, window_params = [{transform_indices = @transform_0, window_bounds = array<i64: 1, 4, 2304>}, {transform_indices = @transform_1, window_bounds = array<i64: 2304, 256>}, {transform_indices = @transform_2, window_bounds = array<i64: 2, 256>}, {transform_indices = @transform_3, window_bounds = array<i64: 1, 4, 256>}]} {
    %c0 = arith.constant 0 : index
    %c0_0 = arith.constant 0 : index
    %c0_1 = arith.constant 0 : index
    %0 = vector.load %arg2[%c0, %c0_0, %c0_1] : memref<1x4x2304xbf16, #tpu.memory_space<vmem>>, vector<1x4x2304xbf16>
    %1 = vector.shape_cast %0 : vector<1x4x2304xbf16> to vector<4x2304xbf16>
    %c0_2 = arith.constant 0 : index
    %c0_3 = arith.constant 0 : index
    %2 = vector.load %arg3[%c0_2, %c0_3] : memref<2304x256xbf16, #tpu.memory_space<vmem>>, vector<2304x256xbf16>
    %cst = arith.constant dense<0.000000e+00> : vector<4x256xf32>
    %3 = tpu.matmul %1, %2, %cst {dimension_numbers = #tpu.dot_dimension_numbers<[1], [0], [0], [1], [0, 0, 1, 1], [], []>} : vector<4x2304xbf16>, vector<2304x256xbf16>, vector<4x256xf32> -> vector<4x256xf32>
    %c0_4 = arith.constant 0 : index
    %c0_5 = arith.constant 0 : index
    %4 = vector.load %arg4[%c0_4, %c0_5] : memref<2x256xf32, #tpu.memory_space<vmem>>, vector<1x256xf32>
    %5 = vector.broadcast %4 : vector<1x256xf32> to vector<4x256xf32>
    %6 = arith.mulf %3, %5 : vector<4x256xf32>
    %c1 = arith.constant 1 : index
    %c0_6 = arith.constant 0 : index
    %7 = vector.load %arg4[%c1, %c0_6] : memref<2x256xf32, #tpu.memory_space<vmem>>, vector<1x256xf32>
    %8 = vector.broadcast %7 : vector<1x256xf32> to vector<4x256xf32>
    %9 = arith.addf %6, %8 : vector<4x256xf32>
    %cst_7 = arith.constant 0.000000e+00 : f32
    %10 = vector.broadcast %cst_7 : f32 to vector<4x256xf32>
    %11 = arith.maximumf %9, %10 : vector<4x256xf32>
    %12 = arith.truncf %11 : vector<4x256xf32> to vector<4x256xbf16>
    %c0_8 = arith.constant 0 : index
    %c0_9 = arith.constant 0 : index
    %c0_10 = arith.constant 0 : index
    %13 = vector.load %arg5[%c0_8, %c0_9, %c0_10] : memref<1x4x256xbf16, #tpu.memory_space<vmem>>, vector<1x4x256xbf16>
    %14 = vector.shape_cast %13 : vector<1x4x256xbf16> to vector<4x256xbf16>
    %15 = vector.shape_cast %12 : vector<4x256xbf16> to vector<1x4x256xbf16>
    tpu.vector_store %arg5[%c0_8, %c0_9, %c0_10], %15 {strides = array<i32>} : memref<1x4x256xbf16, #tpu.memory_space<vmem>>, vector<1x4x256xbf16>,
    return
  }
  func.func @transform_0(%arg0: i32, %arg1: i32) -> (i32, i32, i32) {
    %c0_i32 = arith.constant 0 : i32
    %c0_i32_0 = arith.constant 0 : i32
    %c0_i32_1 = arith.constant 0 : i32
    return %arg0, %c0_i32, %c0_i32_0 : i32, i32, i32
  }
  func.func @transform_1(%arg0: i32, %arg1: i32) -> (i32, i32) {
    %c0_i32 = arith.constant 0 : i32
    %c0_i32_0 = arith.constant 0 : i32
    return %c0_i32, %arg1 : i32, i32
  }
  func.func @transform_2(%arg0: i32, %arg1: i32) -> (i32, i32) {
    %c0_i32 = arith.constant 0 : i32
    %c0_i32_0 = arith.constant 0 : i32
    return %c0_i32, %arg1 : i32, i32
  }
  func.func @transform_3(%arg0: i32, %arg1: i32) -> (i32, i32, i32) {
    %c0_i32 = arith.constant 0 : i32
    %c0_i32_0 = arith.constant 0 : i32
    return %arg0, %c0_i32, %arg1 : i32, i32, i32
  }
}

</mosaic_0001>

<bundles_post_ra>
// kernel: _lambda_.7
= control target key start
LH: loop header
LB: loop body
LE: loop exit
PB: predicated region body
PF: predicated region fallthrough
CT: control target
= control target key end

     0   :  { %s1475_s12 = smov 0   ;;  %s1477_s13 = smov 0   ;;  %s1709_s0 = inlined_call_operand.vmem [shape: bf16[2,289,27], index: 0, kind: input, shape index: {}]   ;;  %s1710_s1 = inlined_call_operand.vmem [shape: bf16[27,128], index: 1, kind: input, shape index: {}]   ;;  %s1711_s2 = inlined_call_operand.vmem [shape: f32[2,128], index: 2, kind: input, shape index: {}]   ;;  %s1712_s3 = inlined_call_operand.vmem [shape: bf16[2,289,128], index: 3, kind: output, shape index: {}]  }
   0x1   :  { %s1479_s14 = smov 0  }
   0x2 LB: > { %s25_s15 = sadd.s32 1, %s1446_s13  ;;  %p1046_p0 = scmp.ge.s32.totalorder %s1450_s14, 1  ;;  %s1450_s14 = sphi %s1479_s14, %s13_s14   ;;  %s1446_s13 = sphi %s1477_s13, %s1714_s13   ;;  %s1442_s12 = sphi %s1475_s12, %s1713_s12  }
   0x3   : > { %p27_p1 = scmp.ge.s32.totalorder %s25_s15, 2  ;;  %p169_p2 = scmp.lt.s32.totalorder %s1450_s14, 3 }
   0x5   : > { %s1716_s15 = smov (%p27_p1, %s25_s15), 0  ;;  %p170_p3 = pnand %p1046_p0, %p169_p2 }
   0x6   : > { %v1407_v0 = vld [vmem:[%s1710_s1] sm:$0xff] (!%p170_p3)   ;;  %v1452_v1 = vmov (!%p170_p3), 0.0   ;;  %v1408_v2 = vld [vmem:[%s1710_s1 + $0x8] sm:$0x3f] (!%p170_p3)   ;;  %vm429_vm0 = vcmask (!%p170_p3), 1044480   ;;  %vm430_vm1 = vcmask (!%p170_p3), 1045504  }
   0x7   : > { %173 = sbr.rel (%p170_p3) target bundleno = 314 (0x13a), region = 32  ;;  %1295 = vmatprep.subr.bf16.mxu0 (!%p170_p3), %v1452_v1  ;;  %1375 = vmatprep.subr.bf16.mxu1 (!%p170_p3), %v1452_v1  ;;  %p204_p4 = scmp.lt.s32.totalorder (!%p170_p3), %s1442_s12, 1  ;;  %v1453_v3 = vmov (!%p170_p3), 65535   ;;  %vm1454_vm2 = vmmov (!%p170_p3), 0   ;;  %vm371_vm3 = vcmask (!%p170_p3), 220160   ;;  %vm926_vm4 = vcmask (!%p170_p3), 1040384  }
   0x8   : > { %1296 = vmatpush3.bf16.msra.mxu0 (!%p170_p3), %v1407_v0  ;;  %1377 = vmatpush3.bf16.msra.mxu1 (!%p170_p3), %v1407_v0  ;;  %v431_v4 = vsel (!%p170_p3), %vm429_vm0, 4294967295, %v1453_v3  ;;  %v1592_v26 = vld [vmem:[%s1711_s2] ss:$0 sm:$0xff] (!%p170_p3)  ;;  %v1597_v28 = vld [vmem:[%s1711_s2 + $0x1] ss:$0 sm:$0xff] (!%p170_p3) }
   0x9   : > { %1297 = vmatprep.subr.bf16.mxu0 (!%p170_p3), %v1452_v1  ;;  %1299 = vmatprep.mubr.msk.bf16.mxu0 (!%p170_p3), %vm1454_vm2, %v1452_v1  ;;  %v432_v5 = vsel (!%p170_p3), %vm430_vm1, %v431_v4, 0  ;;  %vm927_vm5 = vsmask.f32 (!%p170_p3), 256 }
   0xa   : > { %1376 = vmatprep.subr.bf16.mxu1 (!%p170_p3), %v1452_v1  ;;  %1339 = vmatprep.mubr.msk.bf16.mxu1 (!%p170_p3), %vm1454_vm2, %v1452_v1  ;;  %v434_v6 = vand.u32 (!%p170_p3), %v1408_v2, %v432_v5  ;;  %vm928_vm6 = vmand (!%p170_p3), %vm926_vm4, %vm927_vm5 }
   0xc   : > { %1298 = vmatpush3.bf16.msra.mxu0 (!%p170_p3), %v434_v6  ;;  %1378 = vmatpush3.bf16.msra.mxu1 (!%p170_p3), %v434_v6 }
   0xe   : > { %s1718_s12 = smov (!%p204_p4, %s1442_s12), 1 }
   0xf   : > { %s1379_s20 = smul.u32 148, %s1718_s12 }
  0x11   : > { %s1515_s23 = scalar_lea.vmem %s1709_s0, %s1379_s20  ;;  %s1612_s30 = scalar_lea.vmem %s1712_s3, %s1379_s20 }
  0x12   : > { %v1409_v7 = vld [vmem:[%s1515_s23] sm:$0xff]   ;;  %v1410_v8 = vld [vmem:[%s1515_s23 + $0x50] sm:$0xff]   ;;  %v1411_v9 = vld [vmem:[%s1515_s23 + $0x8] sm:$0xff]  }
  0x13   : > { %1300 = vmatmul.mubr.msk.bf16.vlgmr.msra.gmra.mrb[0].mxu0 %vm371_vm3, %v1409_v7  ;;  %1340 = vmatmul.mubr.msk.bf16.vlgmr.msra.gmra.mrb[0].mxu1 %vm371_vm3, %v1410_v8  ;;  %v1412_v10 = vld [vmem:[%s1515_s23 + $0x58] sm:$0xff]   ;;  %v1413_v11 = vld [vmem:[%s1515_s23 + $0x10] sm:$0xff]   ;;  %v1414_v12 = vld [vmem:[%s1515_s23 + $0x60] sm:$0xff]  }
  0x14   : > { %1303 = vmatprep.mubr.msk.bf16.mxu0 %vm1454_vm2, %v1452_v1  ;;  %1343 = vmatprep.mubr.msk.bf16.mxu1 %vm1454_vm2, %v1452_v1  ;;  %v1415_v13 = vld [vmem:[%s1515_s23 + $0x18] sm:$0xff]   ;;  %v1416_v14 = vld [vmem:[%s1515_s23 + $0x68] sm:$0xff]   ;;  %v1417_v15 = vld [vmem:[%s1515_s23 + $0x20] sm:$0xff]  }
  0x15   : > { %v1418_v16 = vld [vmem:[%s1515_s23 + $0x70] sm:$0xff]   ;;  %v1419_v17 = vld [vmem:[%s1515_s23 + $0x28] sm:$0xff]   ;;  %v1420_v18 = vld [vmem:[%s1515_s23 + $0x78] sm:$0xff]  }
  0x16   : > { %v1421_v19 = vld [vmem:[%s1515_s23 + $0x30] sm:$0xff]   ;;  %v1422_v20 = vld [vmem:[%s1515_s23 + $0x80] sm:$0xff]   ;;  %v1423_v21 = vld [vmem:[%s1515_s23 + $0x38] sm:$0xff]  }
  0x17   : > { %v1424_v22 = vld [vmem:[%s1515_s23 + $0x88] sm:$0xff]   ;;  %v1425_v23 = vld [vmem:[%s1515_s23 + $0x40] sm:$0xff]   ;;  %v1426_v24 = vld [vmem:[%s1515_s23 + $0x90] ss:$0 sps:$4 sm:$0x11]  }
  0x18   : > { %v1427_v25 = vld [vmem:[%s1515_s23 + $0x48] sm:$0xff]  }
  0x1b   : > { %1304 = vmatmul.mubr.msk.bf16.gmra.mrb[4].mxu0 %vm371_vm3, %v1411_v9  ;;  %1344 = vmatmul.mubr.msk.bf16.gmra.mrb[4].mxu1 %vm371_vm3, %v1412_v10 }
  0x1c   : > { %1307 = vmatprep.mubr.msk.bf16.mxu0 %vm1454_vm2, %v1452_v1  ;;  %1347 = vmatprep.mubr.msk.bf16.mxu1 %vm1454_vm2, %v1452_v1 }
  0x23   : > { %1308 = vmatmul.mubr.msk.bf16.gmra.mrb[8].mxu0 %vm371_vm3, %v1413_v11  ;;  %1348 = vmatmul.mubr.msk.bf16.gmra.mrb[8].mxu1 %vm371_vm3, %v1414_v12 }
  0x24   : > { %1311 = vmatprep.mubr.msk.bf16.mxu0 %vm1454_vm2, %v1452_v1  ;;  %1351 = vmatprep.mubr.msk.bf16.mxu1 %vm1454_vm2, %v1452_v1 }
  0x2b   : > { %1312 = vmatmul.mubr.msk.bf16.gmra.mrb[12].mxu0 %vm371_vm3, %v1415_v13  ;;  %1352 = vmatmul.mubr.msk.bf16.gmra.mrb[12].mxu1 %vm371_vm3, %v1416_v14 }
  0x2c   : > { %1315 = vmatprep.mubr.msk.bf16.mxu0 %vm1454_vm2, %v1452_v1  ;;  %1355 = vmatprep.mubr.msk.bf16.mxu1 %vm1454_vm2, %v1452_v1 }
  0x33   : > { %1316 = vmatmul.mubr.msk.bf16.gmra.mrb[16].mxu0 %vm371_vm3, %v1417_v15  ;;  %1356 = vmatmul.mubr.msk.bf16.gmra.mrb[16].mxu1 %vm371_vm3, %v1418_v16 }
  0x34   : > { %1319 = vmatprep.mubr.msk.bf16.mxu0 %vm1454_vm2, %v1452_v1  ;;  %1359 = vmatprep.mubr.msk.bf16.mxu1 %vm1454_vm2, %v1452_v1 }
  0x3b   : > { %1320 = vmatmul.mubr.msk.bf16.gmra.mrb[20].mxu0 %vm371_vm3, %v1419_v17  ;;  %1360 = vmatmul.mubr.msk.bf16.gmra.mrb[20].mxu1 %vm371_vm3, %v1420_v18 }
  0x3c   : > { %1323 = vmatprep.mubr.msk.bf16.mxu0 %vm1454_vm2, %v1452_v1  ;;  %1363 = vmatprep.mubr.msk.bf16.mxu1 %vm1454_vm2, %v1452_v1 }
  0x43   : > { %1324 = vmatmul.mubr.msk.bf16.gmra.mrb[24].mxu0 %vm371_vm3, %v1421_v19  ;;  %1364 = vmatmul.mubr.msk.bf16.gmra.mrb[24].mxu1 %vm371_vm3, %v1422_v20 }
  0x44   : > { %1327 = vmatprep.mubr.msk.bf16.mxu0 %vm1454_vm2, %v1452_v1  ;;  %1367 = vmatprep.mubr.msk.bf16.mxu1 %vm1454_vm2, %v1452_v1 }
  0x4b   : > { %1328 = vmatmul.mubr.msk.bf16.gmra.mrb[28].mxu0 %vm371_vm3, %v1423_v21  ;;  %1368 = vmatmul.mubr.msk.bf16.gmra.mrb[28].mxu1 %vm371_vm3, %v1424_v22 }
  0x4c   : > { %1331 = vmatprep.mubr.msk.bf16.mxu0 %vm1454_vm2, %v1452_v1  ;;  %1371 = vmatprep.mubr.msk.bf16.mxu1 %vm1454_vm2, %v1452_v1 }
  0x53   : > { %1332 = vmatmul.mubr.msk.bf16.gmra.mrb[32].mxu0 %vm371_vm3, %v1425_v23  ;;  %1372 = vmatmul.mubr.msk.bf16.gmra.mrb[32].mxu1 %vm371_vm3, %v1426_v24 }
  0x54   : > { %1335 = vmatprep.mubr.msk.bf16.mxu0 %vm1454_vm2, %v1452_v1 }
  0x5b   : > { %1336 = vmatmul.mubr.msk.bf16.gmra.mrb[36].mxu0 %vm371_vm3, %v1427_v25 }
  0xe6   : > { %v470_v27 = vpop.f32.mrb[0].mxu0  ;;  %v550_v31 = vpop.f32.mrb[0].mxu1 }
  0xe7   : > { %v625_v29 = vmul.f32 %v1592_v26, %v470_v27  ;;  %v1301_v30 = vpop.f32.mrb[1].mxu0  ;;  %v645_v33 = vmul.f32 %v1592_v26, %v550_v31  ;;  %v1341_v34 = vpop.f32.mrb[1].mxu1 }
  0xe8   : > { %v473_v32 = vpop.f32.mrb[2].mxu0  ;;  %v553_v38 = vpop.f32.mrb[2].mxu1 }
  0xe9   : > { %v667_v35 = vadd.f32 %v1597_v28, %v625_v29  ;;  %v626_v36 = vmul.f32 %v1592_v26, %v473_v32  ;;  %v1302_v37 = vpop.f32.mrb[3].mxu0  ;;  %v687_v39 = vadd.f32 %v1597_v28, %v645_v33  ;;  %v646_v40 = vmul.f32 %v1592_v26, %v553_v38  ;;  %v1342_v41 = vpop.f32.mrb[3].mxu1 }
  0xeb   : > { %v668_v42 = vadd.f32 %v1597_v28, %v626_v36  ;;  %v724_v43 = vmax.f32 %v687_v39, 0.0  ;;  %v688_v44 = vadd.f32 %v1597_v28, %v646_v40  ;;  %v704_v45 = vmax.f32 %v667_v35, 0.0 }
  0xed   : > { %v705_v46 = vmax.f32 %v668_v42, 0.0  ;;  %v725_v48 = vmax.f32 %v688_v44, 0.0 }
  0xee   : > { %v478_v47 = vpop.f32.mrb[4].mxu0  ;;  %v558_v52 = vpop.f32.mrb[4].mxu1 }
  0xef   : > { %v1170_v49 = vpack.c.bf16 %v705_v46, %v704_v45  ;;  %v627_v50 = vmul.f32 %v1592_v26, %v478_v47  ;;  %v1305_v51 = vpop.f32.mrb[5].mxu0  ;;  %v1220_v53 = vpack.c.bf16 %v725_v48, %v724_v43  ;;  %v647_v55 = vmul.f32 %v1592_v26, %v558_v52  ;;  %v1345_v56 = vpop.f32.mrb[5].mxu1 }
  0xf0   : > { %v481_v54 = vpop.f32.mrb[6].mxu0  ;;  %v561_v60 = vpop.f32.mrb[6].mxu1 }
  0xf1   : > { %1171 = vst [vmem:[%s1612_s30] sm:$0xff] %v1170_v49   ;;  %v669_v57 = vadd.f32 %v1597_v28, %v627_v50  ;;  %v628_v58 = vmul.f32 %v1592_v26, %v481_v54  ;;  %v1306_v59 = vpop.f32.mrb[7].mxu0  ;;  %1266 = vst [vmem:[%s1612_s30 + $0x50] sm:$0xff] %v1220_v53   ;;  %v689_v61 = vadd.f32 %v1597_v28, %v647_v55  ;;  %v1346_v63 = vpop.f32.mrb[7].mxu1 }
  0xf2   : > { %v648_v62 = vmul.f32 %v1592_v26, %v561_v60 }
  0xf3   : > { %v670_v0 = vadd.f32 %v1597_v28, %v628_v58  ;;  %v726_v1 = vmax.f32 %v689_v61, 0.0  ;;  %v706_v3 = vmax.f32 %v669_v57, 0.0 }
  0xf4   : > { %v690_v2 = vadd.f32 %v1597_v28, %v648_v62 }
  0xf5   : > { %v707_v4 = vmax.f32 %v670_v0, 0.0 }
  0xf6   : > { %v486_v5 = vpop.f32.mrb[8].mxu0  ;;  %v727_v6 = vmax.f32 %v690_v2, 0.0  ;;  %v566_v10 = vpop.f32.mrb[8].mxu1 }
  0xf7   : > { %v1175_v7 = vpack.c.bf16 %v707_v4, %v706_v3  ;;  %v629_v8 = vmul.f32 %v1592_v26, %v486_v5  ;;  %v1309_v9 = vpop.f32.mrb[9].mxu0  ;;  %v649_v13 = vmul.f32 %v1592_v26, %v566_v10  ;;  %v1349_v14 = vpop.f32.mrb[9].mxu1 }
  0xf8   : > { %v1225_v11 = vpack.c.bf16 %v727_v6, %v726_v1  ;;  %v489_v12 = vpop.f32.mrb[10].mxu0  ;;  %v569_v18 = vpop.f32.mrb[10].mxu1 }
  0xf9   : > { %1257 = vst [vmem:[%s1612_s30 + $0x8] sm:$0xff] %v1175_v7   ;;  %v671_v15 = vadd.f32 %v1597_v28, %v629_v8  ;;  %v630_v16 = vmul.f32 %v1592_v26, %v489_v12  ;;  %v1310_v17 = vpop.f32.mrb[11].mxu0  ;;  %v691_v19 = vadd.f32 %v1597_v28, %v649_v13  ;;  %v650_v20 = vmul.f32 %v1592_v26, %v569_v18  ;;  %v1350_v21 = vpop.f32.mrb[11].mxu1 }
  0xfa   : > { %1267 = vst [vmem:[%s1612_s30 + $0x58] sm:$0xff] %v1225_v11  }
  0xfb   : > { %v672_v22 = vadd.f32 %v1597_v28, %v630_v16  ;;  %v728_v23 = vmax.f32 %v691_v19, 0.0  ;;  %v692_v24 = vadd.f32 %v1597_v28, %v650_v20  ;;  %v708_v25 = vmax.f32 %v671_v15, 0.0 }
  0xfd   : > { %v709_v27 = vmax.f32 %v672_v22, 0.0  ;;  %v729_v30 = vmax.f32 %v692_v24, 0.0 }
  0xfe   : > { %v494_v29 = vpop.f32.mrb[12].mxu0  ;;  %v574_v34 = vpop.f32.mrb[12].mxu1 }
  0xff   : > { %v1180_v31 = vpack.c.bf16 %v709_v27, %v708_v25  ;;  %v631_v32 = vmul.f32 %v1592_v26, %v494_v29  ;;  %v1313_v33 = vpop.f32.mrb[13].mxu0  ;;  %v1230_v35 = vpack.c.bf16 %v729_v30, %v728_v23  ;;  %v651_v37 = vmul.f32 %v1592_v26, %v574_v34  ;;  %v1353_v38 = vpop.f32.mrb[13].mxu1 }
 0x100   : > { %v497_v36 = vpop.f32.mrb[14].mxu0  ;;  %v577_v42 = vpop.f32.mrb[14].mxu1 }
 0x101   : > { %1258 = vst [vmem:[%s1612_s30 + $0x10] sm:$0xff] %v1180_v31   ;;  %v673_v39 = vadd.f32 %v1597_v28, %v631_v32  ;;  %v632_v40 = vmul.f32 %v1592_v26, %v497_v36  ;;  %v1314_v41 = vpop.f32.mrb[15].mxu0  ;;  %1268 = vst [vmem:[%s1612_s30 + $0x60] sm:$0xff] %v1230_v35   ;;  %v693_v43 = vadd.f32 %v1597_v28, %v651_v37  ;;  %v1354_v45 = vpop.f32.mrb[15].mxu1 }
 0x102   : > { %v652_v44 = vmul.f32 %v1592_v26, %v577_v42 }
 0x103   : > { %v674_v46 = vadd.f32 %v1597_v28, %v632_v40  ;;  %v730_v47 = vmax.f32 %v693_v43, 0.0  ;;  %v710_v49 = vmax.f32 %v673_v39, 0.0 }
 0x104   : > { %v694_v48 = vadd.f32 %v1597_v28, %v652_v44 }
 0x105   : > { %v711_v50 = vmax.f32 %v674_v46, 0.0 }
 0x106   : > { %v502_v51 = vpop.f32.mrb[16].mxu0  ;;  %v731_v52 = vmax.f32 %v694_v48, 0.0  ;;  %v582_v56 = vpop.f32.mrb[16].mxu1 }
 0x107   : > { %v1185_v53 = vpack.c.bf16 %v711_v50, %v710_v49  ;;  %v633_v54 = vmul.f32 %v1592_v26, %v502_v51  ;;  %v1317_v55 = vpop.f32.mrb[17].mxu0  ;;  %v653_v59 = vmul.f32 %v1592_v26, %v582_v56  ;;  %v1357_v60 = vpop.f32.mrb[17].mxu1 }
 0x108   : > { %v1235_v57 = vpack.c.bf16 %v731_v52, %v730_v47  ;;  %v505_v58 = vpop.f32.mrb[18].mxu0  ;;  %v585_v0 = vpop.f32.mrb[18].mxu1 }
 0x109   : > { %1259 = vst [vmem:[%s1612_s30 + $0x18] sm:$0xff] %v1185_v53   ;;  %v675_v61 = vadd.f32 %v1597_v28, %v633_v54  ;;  %v634_v62 = vmul.f32 %v1592_v26, %v505_v58  ;;  %v1318_v63 = vpop.f32.mrb[19].mxu0  ;;  %v695_v1 = vadd.f32 %v1597_v28, %v653_v59  ;;  %v654_v2 = vmul.f32 %v1592_v26, %v585_v0  ;;  %v1358_v3 = vpop.f32.mrb[19].mxu1 }
 0x10a   : > { %1269 = vst [vmem:[%s1612_s30 + $0x68] sm:$0xff] %v1235_v57  }
 0x10b   : > { %v676_v4 = vadd.f32 %v1597_v28, %v634_v62  ;;  %v732_v5 = vmax.f32 %v695_v1, 0.0  ;;  %v696_v6 = vadd.f32 %v1597_v28, %v654_v2  ;;  %v712_v7 = vmax.f32 %v675_v61, 0.0 }
 0x10d   : > { %v713_v8 = vmax.f32 %v676_v4, 0.0  ;;  %v733_v10 = vmax.f32 %v696_v6, 0.0 }
 0x10e   : > { %v510_v9 = vpop.f32.mrb[20].mxu0  ;;  %v590_v14 = vpop.f32.mrb[20].mxu1 }
 0x10f   : > { %v1190_v11 = vpack.c.bf16 %v713_v8, %v712_v7  ;;  %v635_v12 = vmul.f32 %v1592_v26, %v510_v9  ;;  %v1321_v13 = vpop.f32.mrb[21].mxu0  ;;  %v1240_v15 = vpack.c.bf16 %v733_v10, %v732_v5  ;;  %v655_v17 = vmul.f32 %v1592_v26, %v590_v14  ;;  %v1361_v18 = vpop.f32.mrb[21].mxu1 }
 0x110   : > { %v513_v16 = vpop.f32.mrb[22].mxu0  ;;  %v593_v22 = vpop.f32.mrb[22].mxu1 }
 0x111   : > { %1260 = vst [vmem:[%s1612_s30 + $0x20] sm:$0xff] %v1190_v11   ;;  %v677_v19 = vadd.f32 %v1597_v28, %v635_v12  ;;  %v636_v20 = vmul.f32 %v1592_v26, %v513_v16  ;;  %v1322_v21 = vpop.f32.mrb[23].mxu0  ;;  %1270 = vst [vmem:[%s1612_s30 + $0x70] sm:$0xff] %v1240_v15   ;;  %v697_v23 = vadd.f32 %v1597_v28, %v655_v17  ;;  %v1362_v25 = vpop.f32.mrb[23].mxu1 }
 0x112   : > { %v656_v24 = vmul.f32 %v1592_v26, %v593_v22 }
 0x113   : > { %v678_v27 = vadd.f32 %v1597_v28, %v636_v20  ;;  %v734_v29 = vmax.f32 %v697_v23, 0.0  ;;  %v714_v31 = vmax.f32 %v677_v19, 0.0 }
 0x114   : > { %v698_v30 = vadd.f32 %v1597_v28, %v656_v24 }
 0x115   : > { %v715_v32 = vmax.f32 %v678_v27, 0.0 }
 0x116   : > { %v518_v33 = vpop.f32.mrb[24].mxu0  ;;  %v735_v34 = vmax.f32 %v698_v30, 0.0  ;;  %v598_v38 = vpop.f32.mrb[24].mxu1 }
 0x117   : > { %v1195_v35 = vpack.c.bf16 %v715_v32, %v714_v31  ;;  %v637_v36 = vmul.f32 %v1592_v26, %v518_v33  ;;  %v1325_v37 = vpop.f32.mrb[25].mxu0  ;;  %v657_v41 = vmul.f32 %v1592_v26, %v598_v38  ;;  %v1365_v42 = vpop.f32.mrb[25].mxu1 }
 0x118   : > { %v1245_v39 = vpack.c.bf16 %v735_v34, %v734_v29  ;;  %v521_v40 = vpop.f32.mrb[26].mxu0  ;;  %v601_v46 = vpop.f32.mrb[26].mxu1 }
 0x119   : > { %1261 = vst [vmem:[%s1612_s30 + $0x28] sm:$0xff] %v1195_v35   ;;  %v679_v43 = vadd.f32 %v1597_v28, %v637_v36  ;;  %v638_v44 = vmul.f32 %v1592_v26, %v521_v40  ;;  %v1326_v45 = vpop.f32.mrb[27].mxu0  ;;  %v699_v47 = vadd.f32 %v1597_v28, %v657_v41  ;;  %v658_v48 = vmul.f32 %v1592_v26, %v601_v46  ;;  %v1366_v49 = vpop.f32.mrb[27].mxu1  ;;  %v929_v35 = vld [vmem:[%s1612_s30 + $0x90] sm:$0x1] }
 0x11a   : > { %1271 = vst [vmem:[%s1612_s30 + $0x78] sm:$0xff] %v1245_v39  }
 0x11b   : > { %v680_v50 = vadd.f32 %v1597_v28, %v638_v44  ;;  %v736_v51 = vmax.f32 %v699_v47, 0.0  ;;  %v700_v52 = vadd.f32 %v1597_v28, %v658_v48  ;;  %v716_v53 = vmax.f32 %v679_v43, 0.0 }
 0x11d   : > { %v717_v54 = vmax.f32 %v680_v50, 0.0  ;;  %v737_v56 = vmax.f32 %v700_v52, 0.0 }
 0x11e   : > { %v526_v55 = vpop.f32.mrb[28].mxu0  ;;  %v606_v60 = vpop.f32.mrb[28].mxu1 }
 0x11f   : > { %v1200_v57 = vpack.c.bf16 %v717_v54, %v716_v53  ;;  %v639_v58 = vmul.f32 %v1592_v26, %v526_v55  ;;  %v1329_v59 = vpop.f32.mrb[29].mxu0  ;;  %v1250_v61 = vpack.c.bf16 %v737_v56, %v736_v51  ;;  %v659_v63 = vmul.f32 %v1592_v26, %v606_v60  ;;  %v1369_v0 = vpop.f32.mrb[29].mxu1 }
 0x120   : > { %v529_v62 = vpop.f32.mrb[30].mxu0  ;;  %v609_v4 = vpop.f32.mrb[30].mxu1 }
 0x121   : > { %1262 = vst [vmem:[%s1612_s30 + $0x30] sm:$0xff] %v1200_v57   ;;  %v681_v1 = vadd.f32 %v1597_v28, %v639_v58  ;;  %v640_v2 = vmul.f32 %v1592_v26, %v529_v62  ;;  %v1330_v3 = vpop.f32.mrb[31].mxu0  ;;  %1272 = vst [vmem:[%s1612_s30 + $0x80] sm:$0xff] %v1250_v61   ;;  %v701_v5 = vadd.f32 %v1597_v28, %v659_v63  ;;  %v1370_v7 = vpop.f32.mrb[31].mxu1 }
 0x122   : > { %v660_v6 = vmul.f32 %v1592_v26, %v609_v4 }
 0x123   : > { %v682_v8 = vadd.f32 %v1597_v28, %v640_v2  ;;  %v738_v9 = vmax.f32 %v701_v5, 0.0  ;;  %v718_v11 = vmax.f32 %v681_v1, 0.0 }
 0x124   : > { %v702_v10 = vadd.f32 %v1597_v28, %v660_v6 }
 0x125   : > { %v719_v12 = vmax.f32 %v682_v8, 0.0 }
 0x126   : > { %v534_v13 = vpop.f32.mrb[32].mxu0  ;;  %v739_v14 = vmax.f32 %v702_v10, 0.0  ;;  %v614_v18 = vpop.f32.mrb[32].mxu1 }
 0x127   : > { %v1205_v15 = vpack.c.bf16 %v719_v12, %v718_v11  ;;  %v641_v16 = vmul.f32 %v1592_v26, %v534_v13  ;;  %v1333_v17 = vpop.f32.mrb[33].mxu0  ;;  %v661_v21 = vmul.f32 %v1592_v26, %v614_v18  ;;  %v1373_v22 = vpop.f32.mrb[33].mxu1 }
 0x128   : > { %v1255_v19 = vpack.c.bf16 %v739_v14, %v738_v9  ;;  %v537_v20 = vpop.f32.mrb[34].mxu0  ;;  %v617_v27 = vpop.f32.mrb[34].mxu1 }
 0x129   : > { %1263 = vst [vmem:[%s1612_s30 + $0x38] sm:$0xff] %v1205_v15   ;;  %v683_v23 = vadd.f32 %v1597_v28, %v641_v16  ;;  %v642_v24 = vmul.f32 %v1592_v26, %v537_v20  ;;  %v1334_v25 = vpop.f32.mrb[35].mxu0  ;;  %v703_v29 = vadd.f32 %v1597_v28, %v661_v21  ;;  %v1374_v30 = vpop.f32.mrb[35].mxu1 }
 0x12a   : > { %1273 = vst [vmem:[%s1612_s30 + $0x88] sm:$0xff] %v1255_v19  }
 0x12b   : > { %v684_v31 = vadd.f32 %v1597_v28, %v642_v24  ;;  %v740_v32 = vmax.f32 %v703_v29, 0.0  ;;  %v720_v33 = vmax.f32 %v683_v23, 0.0 }
 0x12d   : > { %v721_v34 = vmax.f32 %v684_v31, 0.0  ;;  %v1166_v36 = vpack.c.bf16 %v740_v32, %v740_v32 }
 0x12e   : > { %v542_v37 = vpop.f32.mrb[36].mxu0 }
 0x12f   : > { %v1210_v38 = vpack.c.bf16 %v721_v34, %v720_v33  ;;  %v643_v39 = vmul.f32 %v1592_v26, %v542_v37  ;;  %v1337_v40 = vpop.f32.mrb[37].mxu0  ;;  %v930_v41 = vsel %vm928_vm6, %v1166_v36, %v929_v35 }
 0x130   : > { %v545_v42 = vpop.f32.mrb[38].mxu0  ;;  %931 = vst [vmem:[%s1612_s30 + $0x90] sm:$0x1] %v930_v41 }
 0x131   : > { %1264 = vst [vmem:[%s1612_s30 + $0x40] sm:$0xff] %v1210_v38   ;;  %v685_v43 = vadd.f32 %v1597_v28, %v643_v39  ;;  %v644_v44 = vmul.f32 %v1592_v26, %v545_v42  ;;  %v1338_v45 = vpop.f32.mrb[39].mxu0 }
 0x133   : > { %v686_v46 = vadd.f32 %v1597_v28, %v644_v44  ;;  %v722_v47 = vmax.f32 %v685_v43, 0.0 }
 0x135   : > { %v723_v48 = vmax.f32 %v686_v46, 0.0 }
 0x137   : > { %v1215_v49 = vpack.c.bf16 %v723_v48, %v722_v47 }
 0x139   : > { %1265 = vst [vmem:[%s1612_s30 + $0x48] sm:$0xff] %v1215_v49  }
 0x13a PF: > { %s13_s14 = sadd.s32 1, %s1450_s14   ;;  %s1713_s12 = smov %s1446_s13 }
 0x13b   : > { %p10_p5 = scmp.ge.s32.totalorder %s13_s14, 4   ;;  %s1714_s13 = smov %s1716_s15 }
 0x13d   :  { %12 = sbr.rel (!%p10_p5) target bundleno = 2 (0x2), region = 68 }

// kernel: _lambda_.8
= control target key start
LH: loop header
LB: loop body
LE: loop exit
PB: predicated region body
PF: predicated region fallthrough
CT: control target
= control target key end

     0   :  { %s3976_s12 = smov 0   ;;  %s3978_s13 = smov 0   ;;  %s4660_s0 = inlined_call_operand.vmem [shape: bf16[2,225,1152], index: 0, kind: input, shape index: {}]   ;;  %s4661_s1 = inlined_call_operand.vmem [shape: bf16[1152,128], index: 1, kind: input, shape index: {}]   ;;  %s4662_s2 = inlined_call_operand.vmem [shape: f32[2,128], index: 2, kind: input, shape index: {}]   ;;  %s4663_s3 = inlined_call_operand.vmem [shape: bf16[2,225,128], index: 3, kind: output, shape index: {}]  }
   0x1   :  { %s3980_s14 = smov 0  }
   0x2 LB: > { %s25_s15 = sadd.s32 1, %s3948_s13  ;;  %p2745_p0 = scmp.ge.s32.totalorder %s3952_s14, 1  ;;  %s3952_s14 = sphi %s3980_s14, %s13_s14   ;;  %s3948_s13 = sphi %s3978_s13, %s4665_s13   ;;  %s3944_s12 = sphi %s3976_s12, %s4664_s12  }
   0x3   : > { %p27_p1 = scmp.ge.s32.totalorder %s25_s15, 2  ;;  %p169_p2 = scmp.lt.s32.totalorder %s3952_s14, 3 }
   0x5   : > { %s4667_s15 = smov (%p27_p1, %s25_s15), 0  ;;  %p170_p3 = pnand %p2745_p0, %p169_p2 }
   0x6   : > { %v3667_v0 = vld [vmem:[%s4661_s1 + $0x40] sm:$0xff] (!%p170_p3)   ;;  %v3669_v2 = vld [vmem:[%s4661_s1 + $0x48] sm:$0xff] (!%p170_p3)   ;;  %p204_p4 = scmp.lt.s32.totalorder (!%p170_p3), %s3944_s12, 1  ;;  %v3671_v4 = vld [vmem:[%s4661_s1 + $0x50] sm:$0xff] (!%p170_p3)   ;;  %vm3955_vm0 = vmmov (!%p170_p3), 0   ;;  %vm2625_vm1 = vcmask (!%p170_p3), 1040384  }
   0x7   : > { %173 = sbr.rel (%p170_p3) target bundleno = 559 (0x22f), region = 32  ;;  %v3668_v1 = vld [vmem:[%s4661_s1] sm:$0xff] (!%p170_p3)   ;;  %3100 = vmatprep.subr.bf16.mxu0 (!%p170_p3), %v3667_v0  ;;  %3623 = vmatprep.subr.bf16.mxu1 (!%p170_p3), %v3667_v0  ;;  %v3670_v3 = vld [vmem:[%s4661_s1 + $0x8] sm:$0xff] (!%p170_p3)   ;;  %v3672_v5 = vld [vmem:[%s4661_s1 + $0x10] sm:$0xff] (!%p170_p3)   ;;  %vm2626_vm2 = vsmask.f32 (!%p170_p3), 256 }
   0x8   : > { %3101 = vmatpush3.bf16.msra.mxu0 (!%p170_p3), %v3668_v1  ;;  %3631 = vmatpush3.bf16.msra.mxu1 (!%p170_p3), %v3668_v1  ;;  %v3673_v6 = vld [vmem:[%s4661_s1 + $0x58] sm:$0xff] (!%p170_p3)   ;;  %v3675_v8 = vld [vmem:[%s4661_s1 + $0x60] sm:$0xff] (!%p170_p3)   ;;  %v3677_v10 = vld [vmem:[%s4661_s1 + $0x68] sm:$0xff] (!%p170_p3)  }
   0x9   : > { %3102 = vmatprep.subr.bf16.mxu0 (!%p170_p3), %v3669_v2  ;;  %3624 = vmatprep.subr.bf16.mxu1 (!%p170_p3), %v3669_v2  ;;  %v3674_v7 = vld [vmem:[%s4661_s1 + $0x18] sm:$0xff] (!%p170_p3)   ;;  %v3676_v9 = vld [vmem:[%s4661_s1 + $0x20] sm:$0xff] (!%p170_p3)   ;;  %v3678_v13 = vld [vmem:[%s4661_s1 + $0x28] sm:$0xff] (!%p170_p3)  }
   0xa   : > { %v3679_v14 = vld [vmem:[%s4661_s1 + $0x70] sm:$0xff] (!%p170_p3)   ;;  %v3681_v16 = vld [vmem:[%s4661_s1 + $0x78] sm:$0xff] (!%p170_p3)   ;;  %v3689_v18 = vld [vmem:[%s4661_s1 + $0x140] sm:$0xff] (!%p170_p3)  }
   0xb   : > { %v3680_v15 = vld [vmem:[%s4661_s1 + $0x30] sm:$0xff] (!%p170_p3)   ;;  %v3682_v17 = vld [vmem:[%s4661_s1 + $0x38] sm:$0xff] (!%p170_p3)   ;;  %v3691_v20 = vld [vmem:[%s4661_s1 + $0xc0] sm:$0xff] (!%p170_p3)  }
   0xc   : > { %3103 = vmatpush3.bf16.msra.mxu0 (!%p170_p3), %v3670_v3  ;;  %3632 = vmatpush3.bf16.msra.mxu1 (!%p170_p3), %v3670_v3  ;;  %v3690_v22 = vld [vmem:[%s4661_s1 + $0x100] sm:$0xff] (!%p170_p3)   ;;  %v3699_v26 = vld [vmem:[%s4661_s1 + $0x148] sm:$0xff] (!%p170_p3)   ;;  %v3709_v30 = vld [vmem:[%s4661_s1 + $0x150] sm:$0xff] (!%p170_p3)  }
   0xd   : > { %3104 = vmatprep.subr.bf16.mxu0 (!%p170_p3), %v3671_v4  ;;  %3625 = vmatprep.subr.bf16.mxu1 (!%p170_p3), %v3671_v4  ;;  %v3692_v23 = vld [vmem:[%s4661_s1 + $0x80] sm:$0xff] (!%p170_p3)   ;;  %v3700_v27 = vld [vmem:[%s4661_s1 + $0x108] sm:$0xff] (!%p170_p3)   ;;  %v3710_v33 = vld [vmem:[%s4661_s1 + $0xd0] sm:$0xff] (!%p170_p3)  }
   0xe   : > { %s4669_s12 = smov (!%p204_p4, %s3944_s12), 1  ;;  %v3701_v28 = vld [vmem:[%s4661_s1 + $0xc8] sm:$0xff]   ;;  %v3711_v36 = vld [vmem:[%s4661_s1 + $0x110] sm:$0xff]   ;;  %v3719_v38 = vld [vmem:[%s4661_s1 + $0xd8] sm:$0xff]  }
   0xf   : > { %s3639_s30 = smul.u32 1044, %s4669_s12  ;;  %v3702_v29 = vld [vmem:[%s4661_s1 + $0x88] sm:$0xff]   ;;  %v3712_v37 = vld [vmem:[%s4661_s1 + $0x90] sm:$0xff]   ;;  %v3720_v39 = vld [vmem:[%s4661_s1 + $0x158] sm:$0xff]  }
  0x10   : > { %3105 = vmatpush3.bf16.msra.mxu0 %v3672_v5  ;;  %3633 = vmatpush3.bf16.msra.mxu1 %v3672_v5  ;;  %v3721_v40 = vld [vmem:[%s4661_s1 + $0x98] sm:$0xff]   ;;  %v3727_v45 = vld [vmem:[%s4661_s1 + $0xe0] sm:$0xff]   ;;  %v3733_v50 = vld [vmem:[%s4661_s1 + $0xe8] sm:$0xff]   ;;  %s3640_s7 = smul.u32 116, %s4669_s12 }
  0x11   : > { %3106 = vmatprep.subr.bf16.mxu0 %v3673_v6  ;;  %3626 = vmatprep.subr.bf16.mxu1 %v3673_v6  ;;  %s4027_s10 = scalar_lea.vmem %s4660_s0, %s3639_s30  ;;  %v3722_v43 = vld [vmem:[%s4661_s1 + $0x118] sm:$0xff]   ;;  %v3730_v47 = vld [vmem:[%s4661_s1 + $0xa0] sm:$0xff]   ;;  %v3738_v55 = vld [vmem:[%s4661_s1 + $0xa8] sm:$0xff]  }
  0x12   : > { %v3685_v11 = vld [vmem:[%s4027_s10 + $0x4] ss:$36 sps:$4 sm:$0xff]   ;;  %v3693_v24 = vld [vmem:[%s4027_s10 + $0x4c] ss:$36 sps:$4 sm:$0xff]   ;;  %v3703_v34 = vld [vmem:[%s4027_s10 + $0x94] ss:$36 sps:$4 sm:$0xff]   ;;  %s4554_s11 = scalar_lea.vmem %s4663_s3, %s3640_s7 }
  0x13   : > { %v3688_v12 = vld [vmem:[%s4027_s10 + $0x244] ss:$36 sps:$4 sm:$0xff]   ;;  %1655 = vmatprep.mubr.bf16.mxu0 %v3685_v11  ;;  %v3695_v25 = vld [vmem:[%s4027_s10 + $0x28c] ss:$36 sps:$4 sm:$0xff]   ;;  %v3705_v35 = vld [vmem:[%s4027_s10 + $0x2d4] ss:$36 sps:$4 sm:$0xff]  }
  0x14   : > { %3107 = vmatpush3.bf16.msra.mxu0 %v3674_v7  ;;  %3634 = vmatpush3.bf16.msra.mxu1 %v3674_v7  ;;  %v3683_v19 = vld [vmem:[%s4027_s10] ss:$36 sps:$4 sm:$0xff]   ;;  %v3697_v31 = vld [vmem:[%s4027_s10 + $0x48] ss:$36 sps:$4 sm:$0xff]   ;;  %v3707_v41 = vld [vmem:[%s4027_s10 + $0x90] ss:$36 sps:$4 sm:$0xff]  }
  0x15   : > { %3108 = vmatprep.subr.bf16.mxu0 %v3675_v8  ;;  %3627 = vmatprep.subr.bf16.mxu1 %v3675_v8  ;;  %v3686_v21 = vld [vmem:[%s4027_s10 + $0x240] ss:$36 sps:$4 sm:$0xff]   ;;  %v3698_v32 = vld [vmem:[%s4027_s10 + $0x288] ss:$36 sps:$4 sm:$0xff]   ;;  %v3708_v42 = vld [vmem:[%s4027_s10 + $0x2d0] ss:$36 sps:$4 sm:$0xff]  }
  0x16   : > { %1719 = vmatprep.mubr.bf16.mxu1 %v3688_v12  ;;  %v3713_v44 = vld [vmem:[%s4027_s10 + $0xdc] ss:$36 sps:$4 sm:$0xff]   ;;  %v3723_v53 = vld [vmem:[%s4027_s10 + $0x124] ss:$36 sps:$4 sm:$0xff]   ;;  %v3743_v58 = vld [vmem:[%s4661_s1 + $0xf0] sm:$0xff]   ;;  %v3954_v12 = vmov 0.0  }
  0x17   : > { %v3715_v46 = vld [vmem:[%s4027_s10 + $0x31c] ss:$36 sps:$4 sm:$0xff]   ;;  %v3725_v54 = vld [vmem:[%s4027_s10 + $0x364] ss:$36 sps:$4 sm:$0xff]   ;;  %v3744_v59 = vld [vmem:[%s4661_s1 + $0xb0] sm:$0xff]  }
  0x18   : > { %3109 = vmatpush3.bf16.msra.mxu0 %v3676_v9  ;;  %3635 = vmatpush3.bf16.msra.mxu1 %v3676_v9  ;;  %v3731_v48 = vld [vmem:[%s4661_s1 + $0x160] sm:$0xff]   ;;  %v3717_v51 = vld [vmem:[%s4027_s10 + $0xd8] ss:$36 sps:$4 sm:$0xff]   ;;  %v3741_v56 = vld [vmem:[%s4661_s1 + $0x168] sm:$0xff]  }
  0x19   : > { %3110 = vmatprep.subr.bf16.mxu0 %v3677_v10  ;;  %3628 = vmatprep.subr.bf16.mxu1 %v3677_v10  ;;  %v3732_v49 = vld [vmem:[%s4661_s1 + $0x120] sm:$0xff]   ;;  %v3718_v52 = vld [vmem:[%s4027_s10 + $0x318] ss:$36 sps:$4 sm:$0xff]   ;;  %v3742_v57 = vld [vmem:[%s4661_s1 + $0x128] sm:$0xff]  }
  0x1a   : > { %v3728_v60 = vld [vmem:[%s4027_s10 + $0x120] ss:$36 sps:$4 sm:$0xff]   ;;  %v3750_v62 = vld [vmem:[%s4661_s1 + $0x170] sm:$0xff]   ;;  %v3752_v2 = vld [vmem:[%s4661_s1 + $0xf8] sm:$0xff]  }
  0x1b   : > { %v3729_v61 = vld [vmem:[%s4027_s10 + $0x360] ss:$36 sps:$4 sm:$0xff]   ;;  %v3734_v63 = vld [vmem:[%s4027_s10 + $0x16c] ss:$36 sps:$4 sm:$0xff]   ;;  %v3753_v3 = vld [vmem:[%s4661_s1 + $0xb8] sm:$0xff]  }
  0x1c   : > { %3111 = vmatpush3.bf16.msra.mxu0 %v3678_v13  ;;  %3636 = vmatpush3.bf16.msra.mxu1 %v3678_v13  ;;  %v3736_v0 = vld [vmem:[%s4027_s10 + $0x3ac] ss:$36 sps:$4 sm:$0xff]   ;;  %v3760_v5 = vld [vmem:[%s4661_s1 + $0x178] sm:$0xff]   ;;  %v3762_v8 = vld [vmem:[%s4661_s1 + $0x1c0] sm:$0xff]  }
  0x1d   : > { %3112 = vmatprep.subr.bf16.mxu0 %v3679_v14  ;;  %3629 = vmatprep.subr.bf16.mxu1 %v3679_v14  ;;  %v3751_v1 = vld [vmem:[%s4661_s1 + $0x130] sm:$0xff]   ;;  %v3739_v6 = vld [vmem:[%s4027_s10 + $0x168] ss:$36 sps:$4 sm:$0xff]   ;;  %v3761_v7 = vld [vmem:[%s4661_s1 + $0x138] sm:$0xff]  }
  0x1e   : > { %v366_v4 = vld [vmem:[%s4027_s10 + $0x3f0] sm:$0x11]  ;;  %v3740_v9 = vld [vmem:[%s4027_s10 + $0x3a8] ss:$36 sps:$4 sm:$0xff]   ;;  %vm2627_vm3 = vmand %vm2625_vm1, %vm2626_vm2 }
  0x1f   : > { %v3745_v10 = vld [vmem:[%s4027_s10 + $0x1b4] ss:$36 sps:$4 sm:$0xff]   ;;  %v2875_v11 = vcombine.high %v366_v4, %v366_v4  ;;  %v2874_v14 = vcombine.low %v366_v4, %v366_v4  ;;  %v3814_v4 = vld [vmem:[%s4027_s10 + $0x200] ss:$36 sps:$4 sm:$0xff]  }
  0x20   : > { %3113 = vmatpush3.bf16.msra.mxu0 %v3680_v15  ;;  %3637 = vmatpush3.bf16.msra.mxu1 %v3680_v15  ;;  %v3748_v13 = vld [vmem:[%s4027_s10 + $0x1b0] ss:$36 sps:$4 sm:$0xff]   ;;  %v3754_v15 = vld [vmem:[%s4027_s10 + $0x1fc] ss:$36 sps:$4 sm:$0xff]  }
  0x21   : > { %3114 = vmatprep.subr.bf16.mxu0 %v3681_v16  ;;  %3630 = vmatprep.subr.bf16.mxu1 %v3681_v16  ;;  %v3758_v16 = vld [vmem:[%s4027_s10 + $0xc] ss:$36 sps:$4 sm:$0xff]  }
  0x24   : > { %3115 = vmatpush3.bf16.msra.mxu0 %v3682_v17  ;;  %3638 = vmatpush3.bf16.msra.mxu1 %v3682_v17  ;;  %v3756_v17 = vld [vmem:[%s4027_s10 + $0x8] ss:$36 sps:$4 sm:$0xff]  }
  0x25   : > { %3312 = vmatprep.subr.bf16.mxu0 %v3689_v18  ;;  %3206 = vmatprep.subr.bf16.mxu1 %v3691_v20  ;;  %v3759_v18 = vld [vmem:[%s4027_s10 + $0x1f8] ss:$36 sps:$4 sm:$0xff]  }
  0x26   : > { %v3764_v20 = vld [vmem:[%s4027_s10 + $0x54] ss:$36 sps:$4 sm:$0xff]  }
  0x27   : > { %1656 = vmatmul.mubr.bf16.vlgmr.msra.gmra.mrb[0].mxu0 %v3683_v19  ;;  %1720 = vmatmul.mubr.bf16.vlgmr.msra.gmra.mrb[0].mxu1 %v3686_v21  ;;  %v3763_v19 = vld [vmem:[%s4661_s1 + $0x180] sm:$0xff]   ;;  %v3768_v21 = vld [vmem:[%s4027_s10 + $0x14] ss:$36 sps:$4 sm:$0xff]  }
  0x28   : > { %3313 = vmatpush3.bf16.msra.mxu0 %v3690_v22  ;;  %3207 = vmatpush3.bf16.msra.mxu1 %v3692_v23  ;;  %v3777_v22 = vld [vmem:[%s4661_s1 + $0x1c8] sm:$0xff]  }
  0x29   : > { %1663 = vmatprep.mubr.bf16.mxu0 %v3693_v24  ;;  %1727 = vmatprep.mubr.bf16.mxu1 %v3695_v25  ;;  %v3778_v23 = vld [vmem:[%s4661_s1 + $0x188] sm:$0xff]   ;;  %v3766_v24 = vld [vmem:[%s4027_s10 + $0x10] ss:$36 sps:$4 sm:$0xff]  }
  0x2a   : > { %3314 = vmatprep.subr.bf16.mxu0 %v3699_v26  ;;  %3208 = vmatprep.subr.bf16.mxu1 %v3701_v28  ;;  %v3792_v25 = vld [vmem:[%s4661_s1 + $0x1d0] sm:$0xff]   ;;  %v3771_v28 = vld [vmem:[%s4027_s10 + $0x9c] ss:$36 sps:$4 sm:$0xff]  }
  0x2b   : > { %v3769_v26 = vld [vmem:[%s4027_s10 + $0x50] ss:$36 sps:$4 sm:$0xff]  }
  0x2c   : > { %3315 = vmatpush3.bf16.msra.mxu0 %v3700_v27  ;;  %3209 = vmatpush3.bf16.msra.mxu1 %v3702_v29  ;;  %v3770_v27 = vld [vmem:[%s4661_s1 + $0x200] sm:$0xff]  }
  0x2d   : > { %3316 = vmatprep.subr.bf16.mxu0 %v3709_v30  ;;  %3210 = vmatprep.subr.bf16.mxu1 %v3710_v33  ;;  %v3773_v29 = vld [vmem:[%s4027_s10 + $0x5c] ss:$36 sps:$4 sm:$0xff]   ;;  %v3793_v30 = vld [vmem:[%s4661_s1 + $0x190] sm:$0xff]  }
  0x2e   : > { %v3775_v33 = vld [vmem:[%s4027_s10 + $0x98] ss:$36 sps:$4 sm:$0xff]  }
  0x2f   : > { %1664 = vmatmul.mubr.bf16.gmra.mrb[4].mxu0 %v3697_v31  ;;  %1728 = vmatmul.mubr.bf16.gmra.mrb[4].mxu1 %v3698_v32  ;;  %v3807_v31 = vld [vmem:[%s4661_s1 + $0x1d8] sm:$0xff]   ;;  %v3785_v32 = vld [vmem:[%s4661_s1 + $0x208] sm:$0xff]  }
  0x30   : > { %1671 = vmatprep.mubr.bf16.mxu0 %v3703_v34  ;;  %1735 = vmatprep.mubr.bf16.mxu1 %v3705_v35  ;;  %v3776_v34 = vld [vmem:[%s4027_s10 + $0x58] ss:$36 sps:$4 sm:$0xff]  }
  0x31   : > { %3317 = vmatpush3.bf16.msra.mxu0 %v3711_v36  ;;  %3211 = vmatpush3.bf16.msra.mxu1 %v3712_v37  ;;  %v3808_v35 = vld [vmem:[%s4661_s1 + $0x198] sm:$0xff]   ;;  %v3779_v36 = vld [vmem:[%s4027_s10 + $0xe4] ss:$36 sps:$4 sm:$0xff]  }
  0x32   : > { %3212 = vmatprep.subr.bf16.mxu1 %v3719_v38  ;;  %3318 = vmatprep.subr.bf16.mxu0 %v3720_v39  ;;  %v3781_v37 = vld [vmem:[%s4027_s10 + $0xa4] ss:$36 sps:$4 sm:$0xff]   ;;  %v3798_v38 = vld [vmem:[%s4661_s1 + $0x210] sm:$0xff]  }
  0x33   : > { %v3820_v39 = vld [vmem:[%s4661_s1 + $0x1e0] sm:$0xff]  }
  0x35   : > { %3213 = vmatpush3.bf16.msra.mxu1 %v3721_v40  ;;  %3319 = vmatpush3.bf16.msra.mxu0 %v3722_v43  ;;  %v3823_v40 = vld [vmem:[%s4661_s1 + $0x1a0] sm:$0xff]  }
  0x36   : > { %3214 = vmatprep.subr.bf16.mxu1 %v3727_v45  ;;  %3320 = vmatprep.subr.bf16.mxu0 %v3731_v48  ;;  %v3783_v43 = vld [vmem:[%s4027_s10 + $0xe0] ss:$36 sps:$4 sm:$0xff]   ;;  %v3786_v45 = vld [vmem:[%s4027_s10 + $0x12c] ss:$36 sps:$4 sm:$0xff]  }
  0x37   : > { %1672 = vmatmul.mubr.bf16.gmra.mrb[8].mxu0 %v3707_v41  ;;  %1736 = vmatmul.mubr.bf16.gmra.mrb[8].mxu1 %v3708_v42  ;;  %v3809_v41 = vld [vmem:[%s4661_s1 + $0x218] sm:$0xff]   ;;  %v3831_v42 = vld [vmem:[%s4661_s1 + $0x1e8] sm:$0xff]   ;;  %v3824_v48 = vld [vmem:[%s4661_s1 + $0x220] sm:$0xff]  }
  0x38   : > { %1679 = vmatprep.mubr.bf16.mxu0 %v3713_v44  ;;  %1743 = vmatprep.mubr.bf16.mxu1 %v3715_v46  ;;  %v3784_v44 = vld [vmem:[%s4027_s10 + $0xa0] ss:$36 sps:$4 sm:$0xff]   ;;  %v3788_v46 = vld [vmem:[%s4027_s10 + $0xec] ss:$36 sps:$4 sm:$0xff]  }
  0x39   : > { %3215 = vmatpush3.bf16.msra.mxu1 %v3730_v47  ;;  %3321 = vmatpush3.bf16.msra.mxu0 %v3732_v49  ;;  %v3836_v47 = vld [vmem:[%s4661_s1 + $0x1a8] sm:$0xff]  }
  0x3a   : > { %3216 = vmatprep.subr.bf16.mxu1 %v3733_v50  ;;  %3322 = vmatprep.subr.bf16.mxu0 %v3741_v56  ;;  %v3839_v49 = vld [vmem:[%s4661_s1 + $0x228] sm:$0xff]   ;;  %v3854_v56 = vld [vmem:[%s4661_s1 + $0x230] sm:$0xff]  }
  0x3b   : > { %v3790_v50 = vld [vmem:[%s4027_s10 + $0x128] ss:$36 sps:$4 sm:$0xff]  }
  0x3d   : > { %3217 = vmatpush3.bf16.msra.mxu1 %v3738_v55  ;;  %3323 = vmatpush3.bf16.msra.mxu0 %v3742_v57  ;;  %v3796_v55 = vld [vmem:[%s4027_s10 + $0x134] ss:$36 sps:$4 sm:$0xff]  }
  0x3e   : > { %3218 = vmatprep.subr.bf16.mxu1 %v3743_v58  ;;  %3324 = vmatprep.subr.bf16.mxu0 %v3750_v62  ;;  %v3799_v57 = vld [vmem:[%s4027_s10 + $0x170] ss:$36 sps:$4 sm:$0xff]   ;;  %v3861_v58 = vld [vmem:[%s4661_s1 + $0x1f8] sm:$0xff]  }
  0x3f   : > { %1680 = vmatmul.mubr.bf16.gmra.mrb[12].mxu0 %v3717_v51  ;;  %1744 = vmatmul.mubr.bf16.gmra.mrb[12].mxu1 %v3718_v52  ;;  %v3846_v51 = vld [vmem:[%s4661_s1 + $0x1f0] sm:$0xff]   ;;  %v3803_v62 = vld [vmem:[%s4027_s10 + $0x17c] ss:$36 sps:$4 sm:$0xff]  }
  0x40   : > { %1687 = vmatprep.mubr.bf16.mxu0 %v3723_v53  ;;  %1751 = vmatprep.mubr.bf16.mxu1 %v3725_v54  ;;  %v3847_v52 = vld [vmem:[%s4661_s1 + $0x1b0] sm:$0xff]   ;;  %v3791_v53 = vld [vmem:[%s4027_s10 + $0xe8] ss:$36 sps:$4 sm:$0xff]  }
  0x41   : > { %3219 = vmatpush3.bf16.msra.mxu1 %v3744_v59  ;;  %3325 = vmatpush3.bf16.msra.mxu0 %v3751_v1  ;;  %v3794_v54 = vld [vmem:[%s4027_s10 + $0x174] ss:$36 sps:$4 sm:$0xff]  }
  0x42   : > { %3220 = vmatprep.subr.bf16.mxu1 %v3752_v2  ;;  %3326 = vmatprep.subr.bf16.mxu0 %v3760_v5  ;;  %v3862_v59 = vld [vmem:[%s4661_s1 + $0x1b8] sm:$0xff]   ;;  %v3810_v2 = vld [vmem:[%s4027_s10 + $0x204] ss:$36 sps:$4 sm:$0xff]  }
  0x43   : > { %v3806_v1 = vld [vmem:[%s4027_s10 + $0x178] ss:$36 sps:$4 sm:$0xff]   ;;  %v3815_v5 = vld [vmem:[%s4027_s10 + $0x1c0] ss:$36 sps:$4 sm:$0xff]  }
  0x45   : > { %3221 = vmatpush3.bf16.msra.mxu1 %v3753_v3  ;;  %3327 = vmatpush3.bf16.msra.mxu0 %v3761_v7  ;;  %v3812_v3 = vld [vmem:[%s4027_s10 + $0x1c4] ss:$36 sps:$4 sm:$0xff]   ;;  %v3818_v7 = vld [vmem:[%s4027_s10 + $0x20c] ss:$36 sps:$4 sm:$0xff]  }
  0x46   : > { %3418 = vmatprep.subr.bf16.mxu1 %v3762_v8  ;;  %3547 = vmatprep.subr.bf16.mxu0 %v3954_v12  ;;  %v3821_v8 = vld [vmem:[%s4027_s10 + $0x248] ss:$36 sps:$4 sm:$0xff]  }
  0x47   : > { %1688 = vmatmul.mubr.bf16.gmra.mrb[16].mxu0 %v3728_v60  ;;  %1752 = vmatmul.mubr.bf16.gmra.mrb[16].mxu1 %v3729_v61  ;;  %v3800_v60 = vld [vmem:[%s4027_s10 + $0x130] ss:$36 sps:$4 sm:$0xff]   ;;  %v3801_v61 = vld [vmem:[%s4027_s10 + $0x1bc] ss:$36 sps:$4 sm:$0xff]  }
  0x48   : > { %1695 = vmatprep.mubr.bf16.mxu0 %v3734_v63  ;;  %1759 = vmatprep.mubr.bf16.mxu1 %v3736_v0  ;;  %v3868_v63 = vld [vmem:[%s4661_s1 + $0x238] sm:$0xff]  }
  0x49   : > { %v3805_v0 = vld [vmem:[%s4027_s10 + $0x1b8] ss:$36 sps:$4 sm:$0xff]  }
  0x4f   : > { %1696 = vmatmul.mubr.bf16.gmra.mrb[20].mxu0 %v3739_v6  ;;  %1760 = vmatmul.mubr.bf16.gmra.mrb[20].mxu1 %v3740_v9  ;;  %v3816_v6 = vld [vmem:[%s4027_s10 + $0x24c] ss:$36 sps:$4 sm:$0xff]  }
  0x50   : > { %1703 = vmatprep.mubr.bf16.mxu0 %v3745_v10  ;;  %1767 = vmatprep.mubr.bf16.mxu1 %v2875_v11  ;;  %v3822_v9 = vld [vmem:[%s4027_s10 + $0x208] ss:$36 sps:$4 sm:$0xff]   ;;  %v3825_v10 = vld [vmem:[%s4027_s10 + $0x294] ss:$36 sps:$4 sm:$0xff]  }
  0x51   : > { %v3827_v11 = vld [vmem:[%s4027_s10 + $0x254] ss:$36 sps:$4 sm:$0xff]  }
  0x57   : > { %1704 = vmatmul.mubr.bf16.gmra.mrb[24].mxu0 %v3748_v13  ;;  %1768 = vmatmul.mubr.bf16.gmra.mrb[24].mxu1 %v2874_v14  ;;  %v3829_v13 = vld [vmem:[%s4027_s10 + $0x290] ss:$36 sps:$4 sm:$0xff]  }
  0x58   : > { %1711 = vmatprep.mubr.bf16.mxu0 %v3754_v15  ;;  %1807 = vmatprep.mubr.bf16.mxu1 %v3758_v16  ;;  %v3830_v14 = vld [vmem:[%s4027_s10 + $0x250] ss:$36 sps:$4 sm:$0xff]   ;;  %v3832_v15 = vld [vmem:[%s4027_s10 + $0x2dc] ss:$36 sps:$4 sm:$0xff]  }
  0x59   : > { %v3834_v16 = vld [vmem:[%s4027_s10 + $0x29c] ss:$36 sps:$4 sm:$0xff]  }
  0x5f   : > { %1712 = vmatmul.mubr.bf16.gmra.mrb[28].mxu0 %v3759_v18  ;;  %1808 = vmatmul.mubr.bf16.vlgmr.msra.gmra.mrb[28].mxu1 %v3756_v17  ;;  %v3837_v17 = vld [vmem:[%s4027_s10 + $0x2d8] ss:$36 sps:$4 sm:$0xff]  }
  0x60   : > { %3419 = vmatpush3.bf16.msra.mxu1 %v3763_v19  ;;  %1815 = vmatprep.mubr.bf16.mxu1 %v3764_v20  ;;  %v3838_v18 = vld [vmem:[%s4027_s10 + $0x298] ss:$36 sps:$4 sm:$0xff]   ;;  %v3840_v19 = vld [vmem:[%s4027_s10 + $0x324] ss:$36 sps:$4 sm:$0xff]  }
  0x61   : > { %1959 = vmatprep.mubr.bf16.mxu0 %v3768_v21  ;;  %3420 = vmatprep.subr.bf16.mxu1 %v3777_v22  ;;  %v3842_v20 = vld [vmem:[%s4027_s10 + $0x2e4] ss:$36 sps:$4 sm:$0xff]  }
  0x62   : > { %v3844_v21 = vld [vmem:[%s4027_s10 + $0x320] ss:$36 sps:$4 sm:$0xff]  }
  0x63   : > { %v3845_v22 = vld [vmem:[%s4027_s10 + $0x2e0] ss:$36 sps:$4 sm:$0xff]  }
  0x64   : > { %3421 = vmatpush3.bf16.msra.mxu1 %v3778_v23  ;;  %v3848_v23 = vld [vmem:[%s4027_s10 + $0x36c] ss:$36 sps:$4 sm:$0xff]  }
  0x65   : > { %3422 = vmatprep.subr.bf16.mxu1 %v3792_v25  ;;  %v3852_v25 = vld [vmem:[%s4027_s10 + $0x368] ss:$36 sps:$4 sm:$0xff]  }
  0x67   : > { %1816 = vmatmul.mubr.bf16.gmra.mrb[32].mxu1 %v3769_v26  ;;  %1960 = vmatmul.mubr.bf16.vlgmr.msra.gmra.mrb[32].mxu0 %v3766_v24  ;;  %v3850_v24 = vld [vmem:[%s4027_s10 + $0x32c] ss:$36 sps:$4 sm:$0xff]  }
  0x68   : > { %3548 = vmatpush3.bf16.msra.mxu0 %v3770_v27  ;;  %1823 = vmatprep.mubr.bf16.mxu1 %v3771_v28  ;;  %v3853_v26 = vld [vmem:[%s4027_s10 + $0x328] ss:$36 sps:$4 sm:$0xff]   ;;  %v3855_v27 = vld [vmem:[%s4027_s10 + $0x3b4] ss:$36 sps:$4 sm:$0xff]  }
  0x69   : > { %1967 = vmatprep.mubr.bf16.mxu0 %v3773_v29  ;;  %3549 = vmatprep.subr.bf16.mxu0 %v3954_v12  ;;  %v3857_v28 = vld [vmem:[%s4027_s10 + $0x374] ss:$36 sps:$4 sm:$0xff]  }
  0x6a   : > { %3423 = vmatpush3.bf16.msra.mxu1 %v3793_v30  ;;  %v367_v29 = vld [vmem:[%s4027_s10 + $0x3f8] sm:$0x11]  ;;  %v3859_v30 = vld [vmem:[%s4027_s10 + $0x3b0] ss:$36 sps:$4 sm:$0xff]  }
  0x6b   : > { %3424 = vmatprep.subr.bf16.mxu1 %v3807_v31  ;;  %v3860_v31 = vld [vmem:[%s4027_s10 + $0x370] ss:$36 sps:$4 sm:$0xff]  }
  0x6c   : > { %3550 = vmatpush3.bf16.msra.mxu0 %v3785_v32  ;;  %v2877_v32 = vcombine.high %v367_v29, %v367_v29 }
  0x6d   : > { %3551 = vmatprep.subr.bf16.mxu0 %v3954_v12 }
  0x6e   : > { %3425 = vmatpush3.bf16.msra.mxu1 %v3808_v35  ;;  %v2876_v35 = vcombine.low %v367_v29, %v367_v29 }
  0x6f   : > { %1824 = vmatmul.mubr.bf16.gmra.mrb[36].mxu1 %v3775_v33  ;;  %1968 = vmatmul.mubr.bf16.gmra.mrb[36].mxu0 %v3776_v34  ;;  %v3864_v33 = vld [vmem:[%s4027_s10 + $0x3bc] ss:$36 sps:$4 sm:$0xff]  }
  0x70   : > { %1831 = vmatprep.mubr.bf16.mxu1 %v3779_v36  ;;  %1975 = vmatprep.mubr.bf16.mxu0 %v3781_v37  ;;  %v368_v34 = vld [vmem:[%s4027_s10 + $0x400] sm:$0x11]  ;;  %v3867_v36 = vld [vmem:[%s4027_s10 + $0x3b8] ss:$36 sps:$4 sm:$0xff]  }
  0x71   : > { %3552 = vmatpush3.bf16.msra.mxu0 %v3798_v38  ;;  %3426 = vmatprep.subr.bf16.mxu1 %v3820_v39  ;;  %v2879_v37 = vcombine.high %v368_v34, %v368_v34  ;;  %v3872_v38 = vld [vmem:[%s4027_s10 + $0x1c] ss:$36 sps:$4 sm:$0xff]  }
  0x72   : > { %3553 = vmatprep.subr.bf16.mxu0 %v3954_v12  ;;  %3427 = vmatpush3.bf16.msra.mxu1 %v3823_v40  ;;  %v3870_v39 = vld [vmem:[%s4027_s10 + $0x18] ss:$36 sps:$4 sm:$0xff]   ;;  %v2878_v40 = vcombine.low %v368_v34, %v368_v34 }
  0x73   : > { %3428 = vmatprep.subr.bf16.mxu1 %v3831_v42  ;;  %v3876_v42 = vld [vmem:[%s4027_s10 + $0x60] ss:$36 sps:$4 sm:$0xff]  }
  0x75   : > { %3554 = vmatpush3.bf16.msra.mxu0 %v3809_v41  ;;  %v3874_v41 = vld [vmem:[%s4027_s10 + $0x64] ss:$36 sps:$4 sm:$0xff]  }
  0x76   : > { %3555 = vmatprep.subr.bf16.mxu0 %v3954_v12  ;;  %3429 = vmatpush3.bf16.msra.mxu1 %v3836_v47  ;;  %v3882_v47 = vld [vmem:[%s4027_s10 + $0xf4] ss:$36 sps:$4 sm:$0xff]  }
  0x77   : > { %1832 = vmatmul.mubr.bf16.gmra.mrb[40].mxu1 %v3783_v43  ;;  %1976 = vmatmul.mubr.bf16.gmra.mrb[40].mxu0 %v3784_v44  ;;  %v3877_v43 = vld [vmem:[%s4027_s10 + $0x20] ss:$36 sps:$4 sm:$0xff]   ;;  %v3878_v44 = vld [vmem:[%s4027_s10 + $0xac] ss:$36 sps:$4 sm:$0xff]  }
  0x78   : > { %1839 = vmatprep.mubr.bf16.mxu1 %v3786_v45  ;;  %1983 = vmatprep.mubr.bf16.mxu0 %v3788_v46  ;;  %v3880_v45 = vld [vmem:[%s4027_s10 + $0xa8] ss:$36 sps:$4 sm:$0xff]  }
  0x79   : > { %3556 = vmatpush3.bf16.msra.mxu0 %v3824_v48  ;;  %3430 = vmatprep.subr.bf16.mxu1 %v3846_v51  ;;  %v3881_v46 = vld [vmem:[%s4027_s10 + $0x68] ss:$36 sps:$4 sm:$0xff]   ;;  %v3884_v48 = vld [vmem:[%s4027_s10 + $0xf0] ss:$36 sps:$4 sm:$0xff]   ;;  %v3888_v51 = vld [vmem:[%s4027_s10 + $0x138] ss:$36 sps:$4 sm:$0xff]  }
  0x7a   : > { %3557 = vmatprep.subr.bf16.mxu0 %v3954_v12  ;;  %3431 = vmatpush3.bf16.msra.mxu1 %v3847_v52  ;;  %v3889_v52 = vld [vmem:[%s4027_s10 + $0xf8] ss:$36 sps:$4 sm:$0xff]  }
  0x7b   : > { %3432 = vmatprep.subr.bf16.mxu1 %v3861_v58  ;;  %v3892_v58 = vld [vmem:[%s4027_s10 + $0x180] ss:$36 sps:$4 sm:$0xff]  }
  0x7d   : > { %3558 = vmatpush3.bf16.msra.mxu0 %v3839_v49  ;;  %v3885_v49 = vld [vmem:[%s4027_s10 + $0xb0] ss:$36 sps:$4 sm:$0xff]  }
  0x7e   : > { %3559 = vmatprep.subr.bf16.mxu0 %v3954_v12  ;;  %3433 = vmatpush3.bf16.msra.mxu1 %v3862_v59  ;;  %v3893_v59 = vld [vmem:[%s4027_s10 + $0x140] ss:$36 sps:$4 sm:$0xff]  }
  0x7f   : > { %1840 = vmatmul.mubr.bf16.gmra.mrb[44].mxu1 %v3790_v50  ;;  %1984 = vmatmul.mubr.bf16.gmra.mrb[44].mxu0 %v3791_v53  ;;  %v3886_v50 = vld [vmem:[%s4027_s10 + $0x13c] ss:$36 sps:$4 sm:$0xff]   ;;  %v3890_v53 = vld [vmem:[%s4027_s10 + $0x184] ss:$36 sps:$4 sm:$0xff]  }
  0x80   : > { %1847 = vmatprep.mubr.bf16.mxu1 %v3794_v54  ;;  %1991 = vmatprep.mubr.bf16.mxu0 %v3796_v55 }
  0x81   : > { %3560 = vmatpush3.bf16.msra.mxu0 %v3854_v56 }
  0x82   : > { %3561 = vmatprep.subr.bf16.mxu0 %v3954_v12 }
  0x85   : > { %3562 = vmatpush3.bf16.msra.mxu0 %v3868_v63 }
  0x87   : > { %1848 = vmatmul.mubr.bf16.gmra.mrb[48].mxu1 %v3799_v57  ;;  %1992 = vmatmul.mubr.bf16.gmra.mrb[48].mxu0 %v3800_v60 }
  0x88   : > { %1855 = vmatprep.mubr.bf16.mxu1 %v3801_v61  ;;  %1999 = vmatprep.mubr.bf16.mxu0 %v3803_v62 }
  0x8f   : > { %1856 = vmatmul.mubr.bf16.gmra.mrb[52].mxu1 %v3805_v0  ;;  %2000 = vmatmul.mubr.bf16.gmra.mrb[52].mxu0 %v3806_v1  ;;  %v3894_v0 = vld [vmem:[%s4027_s10 + $0x1cc] ss:$36 sps:$4 sm:$0xff]  }
  0x90   : > { %1863 = vmatprep.mubr.bf16.mxu1 %v3810_v2  ;;  %2007 = vmatprep.mubr.bf16.mxu0 %v3812_v3 }
  0x97   : > { %1864 = vmatmul.mubr.bf16.gmra.mrb[56].mxu1 %v3814_v4  ;;  %2008 = vmatmul.mubr.bf16.gmra.mrb[56].mxu0 %v3815_v5 }
  0x98   : > { %1871 = vmatprep.mubr.bf16.mxu1 %v3816_v6  ;;  %2015 = vmatprep.mubr.bf16.mxu0 %v3818_v7 }
  0x9f   : > { %1872 = vmatmul.mubr.bf16.gmra.mrb[60].mxu1 %v3821_v8  ;;  %2016 = vmatmul.mubr.bf16.gmra.mrb[60].mxu0 %v3822_v9  ;;  %v3896_v9 = vld [vmem:[%s4027_s10 + $0x1c8] ss:$36 sps:$4 sm:$0xff]  }
  0xa0   : > { %1879 = vmatprep.mubr.bf16.mxu1 %v3825_v10  ;;  %2023 = vmatprep.mubr.bf16.mxu0 %v3827_v11  ;;  %v3897_v10 = vld [vmem:[%s4027_s10 + $0x188] ss:$36 sps:$4 sm:$0xff]  }
  0xa7   : > { %1880 = vmatmul.mubr.bf16.gmra.mrb[64].mxu1 %v3829_v13  ;;  %2024 = vmatmul.mubr.bf16.gmra.mrb[64].mxu0 %v3830_v14 }
  0xa8   : > { %1887 = vmatprep.mubr.bf16.mxu1 %v3832_v15  ;;  %2031 = vmatprep.mubr.bf16.mxu0 %v3834_v16  ;;  %v3898_v16 = vld [vmem:[%s4027_s10 + $0x214] ss:$36 sps:$4 sm:$0xff]  }
  0xaf   : > { %1888 = vmatmul.mubr.bf16.gmra.mrb[68].mxu1 %v3837_v17  ;;  %2032 = vmatmul.mubr.bf16.gmra.mrb[68].mxu0 %v3838_v18 }
  0xb0   : > { %1895 = vmatprep.mubr.bf16.mxu1 %v3840_v19  ;;  %2039 = vmatprep.mubr.bf16.mxu0 %v3842_v20 }
  0xb7   : > { %1896 = vmatmul.mubr.bf16.gmra.mrb[72].mxu1 %v3844_v21  ;;  %2040 = vmatmul.mubr.bf16.gmra.mrb[72].mxu0 %v3845_v22 }
  0xb8   : > { %1903 = vmatprep.mubr.bf16.mxu1 %v3848_v23  ;;  %2047 = vmatprep.mubr.bf16.mxu0 %v3850_v24 }
  0xbf   : > { %1904 = vmatmul.mubr.bf16.gmra.mrb[76].mxu1 %v3852_v25  ;;  %2048 = vmatmul.mubr.bf16.gmra.mrb[76].mxu0 %v3853_v26  ;;  %v3900_v25 = vld [vmem:[%s4027_s10 + $0x210] ss:$36 sps:$4 sm:$0xff]  }
  0xc0   : > { %1911 = vmatprep.mubr.bf16.mxu1 %v3855_v27  ;;  %2055 = vmatprep.mubr.bf16.mxu0 %v3857_v28  ;;  %v3901_v26 = vld [vmem:[%s4027_s10 + $0x1d0] ss:$36 sps:$4 sm:$0xff]  }
  0xc7   : > { %1912 = vmatmul.mubr.bf16.gmra.mrb[80].mxu1 %v3859_v30  ;;  %2056 = vmatmul.mubr.bf16.gmra.mrb[80].mxu0 %v3860_v31  ;;  %v3902_v31 = vld [vmem:[%s4027_s10 + $0x25c] ss:$36 sps:$4 sm:$0xff]  }
  0xc8   : > { %1919 = vmatprep.mubr.bf16.mxu1 %v2877_v32  ;;  %2063 = vmatprep.mubr.bf16.mxu0 %v3864_v33 }
  0xcf   : > { %1920 = vmatmul.mubr.bf16.gmra.mrb[84].mxu1 %v2876_v35  ;;  %2064 = vmatmul.mubr.bf16.gmra.mrb[84].mxu0 %v3867_v36 }
  0xd0   : > { %2071 = vmatprep.mubr.bf16.mxu0 %v2879_v37  ;;  %2111 = vmatprep.mubr.bf16.mxu1 %v3872_v38 }
  0xd7   : > { %2072 = vmatmul.mubr.bf16.gmra.mrb[88].mxu0 %v2878_v40  ;;  %2112 = vmatmul.mubr.bf16.vlgmr.msra.gmra.mrb[88].mxu1 %v3870_v39  ;;  %v3904_v40 = vld [vmem:[%s4027_s10 + $0x258] ss:$36 sps:$4 sm:$0xff]  }
  0xd8   : > { %2119 = vmatprep.mubr.bf16.mxu1 %v3874_v41  ;;  %3563 = vmatprep.mubr.msk.bf16.mxu0 %vm3955_vm0, %v3954_v12  ;;  %v3905_v41 = vld [vmem:[%s4027_s10 + $0x218] ss:$36 sps:$4 sm:$0xff]  }
  0xdf   : > { %2120 = vmatmul.mubr.bf16.gmra.mrb[92].mxu1 %v3876_v42  ;;  %3564 = vmatmul.mubr.bf16.vlgmr.msra.gmra.mrb[92].mxu0 %v3877_v43 }
  0xe0   : > { %2127 = vmatprep.mubr.bf16.mxu1 %v3878_v44  ;;  %3567 = vmatprep.mubr.msk.bf16.mxu0 %vm3955_vm0, %v3954_v12 }
  0xe7   : > { %2128 = vmatmul.mubr.bf16.gmra.mrb[96].mxu1 %v3880_v45  ;;  %3568 = vmatmul.mubr.bf16.gmra.mrb[96].mxu0 %v3881_v46  ;;  %v3906_v46 = vld [vmem:[%s4027_s10 + $0x2a4] ss:$36 sps:$4 sm:$0xff]  }
  0xe8   : > { %2135 = vmatprep.mubr.bf16.mxu1 %v3882_v47  ;;  %3571 = vmatprep.mubr.msk.bf16.mxu0 %vm3955_vm0, %v3954_v12 }
  0xef   : > { %2136 = vmatmul.mubr.bf16.gmra.mrb[100].mxu1 %v3884_v48  ;;  %3572 = vmatmul.mubr.bf16.gmra.mrb[100].mxu0 %v3885_v49 }
  0xf0   : > { %2143 = vmatprep.mubr.bf16.mxu1 %v3886_v50  ;;  %3575 = vmatprep.mubr.msk.bf16.mxu0 %vm3955_vm0, %v3954_v12 }
  0xf7   : > { %2144 = vmatmul.mubr.bf16.gmra.mrb[104].mxu1 %v3888_v51  ;;  %3576 = vmatmul.mubr.bf16.gmra.mrb[104].mxu0 %v3889_v52 }
  0xf8   : > { %2151 = vmatprep.mubr.bf16.mxu1 %v3890_v53  ;;  %3579 = vmatprep.mubr.msk.bf16.mxu0 %vm3955_vm0, %v3954_v12 }
  0xfa   : > { %v3116_v54 = vpop.f32.mrb[0].mxu0  ;;  %v3164_v55 = vpop.f32.mrb[0].mxu1 }
  0xfb   : > { %v3117_v56 = vpop.f32.mrb[1].mxu0  ;;  %v3165_v57 = vpop.f32.mrb[1].mxu1 }
  0xfc   : > { %v4340_v60 = vadd.f32 %v3117_v56, %v3116_v54  ;;  %v3119_v61 = vpop.f32.mrb[2].mxu0  ;;  %v4342_v62 = vadd.f32 %v3165_v57, %v3164_v55  ;;  %v3167_v63 = vpop.f32.mrb[2].mxu1  ;;  %v3908_v55 = vld [vmem:[%s4027_s10 + $0x2a0] ss:$36 sps:$4 sm:$0xff]  }
  0xfd   : > { %v3120_v1 = vpop.f32.mrb[3].mxu0  ;;  %v3168_v2 = vpop.f32.mrb[3].mxu1  ;;  %v3909_v56 = vld [vmem:[%s4027_s10 + $0x260] ss:$36 sps:$4 sm:$0xff]  }
  0xfe   : > { %v4345_v3 = vadd.f32 %v3120_v1, %v3119_v61  ;;  %v4347_v4 = vadd.f32 %v3168_v2, %v3167_v63  ;;  %v3910_v63 = vld [vmem:[%s4027_s10 + $0x2ec] ss:$36 sps:$4 sm:$0xff]  }
  0xff   : > { %2152 = vmatmul.mubr.bf16.gmra.mrb[108].mxu1 %v3892_v58  ;;  %3580 = vmatmul.mubr.bf16.gmra.mrb[108].mxu0 %v3893_v59 }
 0x100   : > { %2159 = vmatprep.mubr.bf16.mxu1 %v3894_v0  ;;  %3583 = vmatprep.mubr.msk.bf16.mxu0 %vm3955_vm0, %v3954_v12 }
 0x102   : > { %v3122_v5 = vpop.f32.mrb[4].mxu0  ;;  %v3170_v6 = vpop.f32.mrb[4].mxu1 }
 0x103   : > { %v3123_v7 = vpop.f32.mrb[5].mxu0  ;;  %v3171_v8 = vpop.f32.mrb[5].mxu1 }
 0x104   : > { %v4353_v11 = vadd.f32 %v3123_v7, %v3122_v5  ;;  %v3125_v13 = vpop.f32.mrb[6].mxu0  ;;  %v4355_v14 = vadd.f32 %v3171_v8, %v3170_v6  ;;  %v3173_v15 = vpop.f32.mrb[6].mxu1 }
 0x105   : > { %v3126_v17 = vpop.f32.mrb[7].mxu0  ;;  %v3174_v18 = vpop.f32.mrb[7].mxu1 }
 0x106   : > { %v4358_v19 = vadd.f32 %v3126_v17, %v3125_v13  ;;  %v4360_v20 = vadd.f32 %v3174_v18, %v3173_v15  ;;  %v3913_v13 = vld [vmem:[%s4027_s10 + $0x2a8] ss:$36 sps:$4 sm:$0xff]  }
 0x107   : > { %2160 = vmatmul.mubr.bf16.gmra.mrb[112].mxu1 %v3896_v9  ;;  %3584 = vmatmul.mubr.bf16.gmra.mrb[112].mxu0 %v3897_v10  ;;  %v3912_v10 = vld [vmem:[%s4027_s10 + $0x2e8] ss:$36 sps:$4 sm:$0xff]  }
 0x108   : > { %2167 = vmatprep.mubr.bf16.mxu1 %v3898_v16  ;;  %3587 = vmatprep.mubr.msk.bf16.mxu0 %vm3955_vm0, %v3954_v12 }
 0x10a   : > { %v3128_v21 = vpop.f32.mrb[8].mxu0  ;;  %v3176_v22 = vpop.f32.mrb[8].mxu1 }
 0x10b   : > { %v3129_v23 = vpop.f32.mrb[9].mxu0  ;;  %v3177_v24 = vpop.f32.mrb[9].mxu1 }
 0x10c   : > { %v4366_v27 = vadd.f32 %v3129_v23, %v3128_v21  ;;  %v3131_v28 = vpop.f32.mrb[10].mxu0  ;;  %v4368_v29 = vadd.f32 %v3177_v24, %v3176_v22  ;;  %v3179_v30 = vpop.f32.mrb[10].mxu1  ;;  %v3914_v21 = vld [vmem:[%s4027_s10 + $0x334] ss:$36 sps:$4 sm:$0xff]  }
 0x10d   : > { %v3132_v32 = vpop.f32.mrb[11].mxu0  ;;  %v3180_v33 = vpop.f32.mrb[11].mxu1 }
 0x10e   : > { %v4371_v34 = vadd.f32 %v3132_v32, %v3131_v28  ;;  %v4373_v35 = vadd.f32 %v3180_v33, %v3179_v30  ;;  %v3916_v32 = vld [vmem:[%s4027_s10 + $0x330] ss:$36 sps:$4 sm:$0xff]  }
 0x10f   : > { %2168 = vmatmul.mubr.bf16.gmra.mrb[116].mxu1 %v3900_v25  ;;  %3588 = vmatmul.mubr.bf16.gmra.mrb[116].mxu0 %v3901_v26  ;;  %v3917_v33 = vld [vmem:[%s4027_s10 + $0x2f0] ss:$36 sps:$4 sm:$0xff]  }
 0x110   : > { %2175 = vmatprep.mubr.bf16.mxu1 %v3902_v31  ;;  %3591 = vmatprep.mubr.msk.bf16.mxu0 %vm3955_vm0, %v3954_v12 }
 0x112   : > { %v3134_v36 = vpop.f32.mrb[12].mxu0  ;;  %v3182_v37 = vpop.f32.mrb[12].mxu1 }
 0x113   : > { %v3135_v38 = vpop.f32.mrb[13].mxu0  ;;  %v3183_v39 = vpop.f32.mrb[13].mxu1 }
 0x114   : > { %v4379_v42 = vadd.f32 %v3135_v38, %v3134_v36  ;;  %v3137_v43 = vpop.f32.mrb[14].mxu0  ;;  %v4381_v44 = vadd.f32 %v3183_v39, %v3182_v37  ;;  %v3185_v45 = vpop.f32.mrb[14].mxu1 }
 0x115   : > { %v3138_v47 = vpop.f32.mrb[15].mxu0  ;;  %v3186_v48 = vpop.f32.mrb[15].mxu1 }
 0x116   : > { %v4384_v49 = vadd.f32 %v3138_v47, %v3137_v43  ;;  %v4386_v50 = vadd.f32 %v3186_v48, %v3185_v45 }
 0x117   : > { %2176 = vmatmul.mubr.bf16.gmra.mrb[120].mxu1 %v3904_v40  ;;  %3592 = vmatmul.mubr.bf16.gmra.mrb[120].mxu0 %v3905_v41  ;;  %v3918_v40 = vld [vmem:[%s4027_s10 + $0x37c] ss:$36 sps:$4 sm:$0xff]  }
 0x118   : > { %2183 = vmatprep.mubr.bf16.mxu1 %v3906_v46  ;;  %3595 = vmatprep.mubr.msk.bf16.mxu0 %vm3955_vm0, %v3954_v12 }
 0x11a   : > { %v3140_v51 = vpop.f32.mrb[16].mxu0  ;;  %v3188_v52 = vpop.f32.mrb[16].mxu1 }
 0x11b   : > { %v3141_v53 = vpop.f32.mrb[17].mxu0  ;;  %v3189_v54 = vpop.f32.mrb[17].mxu1 }
 0x11c   : > { %v4392_v57 = vadd.f32 %v3141_v53, %v3140_v51  ;;  %v3143_v58 = vpop.f32.mrb[18].mxu0  ;;  %v4394_v59 = vadd.f32 %v3189_v54, %v3188_v52  ;;  %v3191_v61 = vpop.f32.mrb[18].mxu1  ;;  %v3920_v52 = vld [vmem:[%s4027_s10 + $0x378] ss:$36 sps:$4 sm:$0xff]  }
 0x11d   : > { %v3144_v0 = vpop.f32.mrb[19].mxu0  ;;  %v3192_v1 = vpop.f32.mrb[19].mxu1  ;;  %v3921_v53 = vld [vmem:[%s4027_s10 + $0x338] ss:$36 sps:$4 sm:$0xff]  }
 0x11e   : > { %v4397_v2 = vadd.f32 %v3144_v0, %v3143_v58  ;;  %v4399_v5 = vadd.f32 %v3192_v1, %v3191_v61  ;;  %v3922_v61 = vld [vmem:[%s4027_s10 + $0x3c4] ss:$36 sps:$4 sm:$0xff]  }
 0x11f   : > { %2184 = vmatmul.mubr.bf16.gmra.mrb[124].mxu1 %v3908_v55  ;;  %3596 = vmatmul.mubr.bf16.gmra.mrb[124].mxu0 %v3909_v56 }
 0x120   : > { %2191 = vmatprep.mubr.bf16.mxu1 %v3910_v63  ;;  %3599 = vmatprep.mubr.msk.bf16.mxu0 %vm3955_vm0, %v3954_v12 }
 0x122   : > { %v3146_v6 = vpop.f32.mrb[20].mxu0  ;;  %v3194_v7 = vpop.f32.mrb[20].mxu1 }
 0x123   : > { %v3147_v8 = vpop.f32.mrb[21].mxu0  ;;  %v3195_v9 = vpop.f32.mrb[21].mxu1 }
 0x124   : > { %v4405_v15 = vadd.f32 %v3147_v8, %v3146_v6  ;;  %v3149_v16 = vpop.f32.mrb[22].mxu0  ;;  %v4407_v17 = vadd.f32 %v3195_v9, %v3194_v7  ;;  %v3197_v18 = vpop.f32.mrb[22].mxu1  ;;  %v369_v9 = vld [vmem:[%s4027_s10 + $0x408] sm:$0x11] }
 0x125   : > { %v3150_v22 = vpop.f32.mrb[23].mxu0  ;;  %v3198_v23 = vpop.f32.mrb[23].mxu1 }
 0x126   : > { %v4410_v24 = vadd.f32 %v3150_v22, %v3149_v16  ;;  %v4412_v25 = vadd.f32 %v3198_v23, %v3197_v18  ;;  %v3925_v22 = vld [vmem:[%s4027_s10 + $0x380] ss:$36 sps:$4 sm:$0xff]  }
 0x127   : > { %2192 = vmatmul.mubr.bf16.gmra.mrb[128].mxu1 %v3912_v10  ;;  %3600 = vmatmul.mubr.bf16.gmra.mrb[128].mxu0 %v3913_v13 }
 0x128   : > { %2199 = vmatprep.mubr.bf16.mxu1 %v3914_v21  ;;  %3603 = vmatprep.mubr.msk.bf16.mxu0 %vm3955_vm0, %v3954_v12  ;;  %v3924_v21 = vld [vmem:[%s4027_s10 + $0x3c0] ss:$36 sps:$4 sm:$0xff]  }
 0x12a   : > { %v3152_v26 = vpop.f32.mrb[24].mxu0  ;;  %v3200_v28 = vpop.f32.mrb[24].mxu1 }
 0x12b   : > { %v3153_v30 = vpop.f32.mrb[25].mxu0  ;;  %v3201_v31 = vpop.f32.mrb[25].mxu1 }
 0x12c   : > { %v4418_v36 = vadd.f32 %v3153_v30, %v3152_v26  ;;  %v3155_v37 = vpop.f32.mrb[26].mxu0  ;;  %v4420_v38 = vadd.f32 %v3201_v31, %v3200_v28  ;;  %v3203_v39 = vpop.f32.mrb[26].mxu1  ;;  %v2881_v30 = vcombine.high %v369_v9, %v369_v9 }
 0x12d   : > { %v3156_v41 = vpop.f32.mrb[27].mxu0  ;;  %v3204_v43 = vpop.f32.mrb[27].mxu1 }
 0x12e   : > { %v4423_v45 = vadd.f32 %v3156_v41, %v3155_v37 }
 0x12f   : > { %2200 = vmatmul.mubr.bf16.gmra.mrb[132].mxu1 %v3916_v32  ;;  %3604 = vmatmul.mubr.bf16.gmra.mrb[132].mxu0 %v3917_v33 }
 0x130   : > { %2207 = vmatprep.mubr.bf16.mxu1 %v3918_v40  ;;  %3607 = vmatprep.mubr.msk.bf16.mxu0 %vm3955_vm0, %v3954_v12 }
 0x132   : > { %v3158_v46 = vpop.f32.mrb[28].mxu0  ;;  %v3222_v47 = vpop.f32.mrb[28].mxu1 }
 0x133   : > { %v3159_v48 = vpop.f32.mrb[29].mxu0  ;;  %v3223_v51 = vpop.f32.mrb[29].mxu1 }
 0x134   : > { %v4429_v54 = vadd.f32 %v3159_v48, %v3158_v46  ;;  %v3224_v55 = vadd.f32 %v3223_v51, %v3222_v47  ;;  %v3161_v56 = vpop.f32.mrb[30].mxu0  ;;  %v3225_v58 = vpop.f32.mrb[30].mxu1  ;;  %v2880_v51 = vcombine.low %v369_v9, %v369_v9 }
 0x135   : > { %v3162_v63 = vpop.f32.mrb[31].mxu0  ;;  %v3226_v0 = vpop.f32.mrb[31].mxu1 }
 0x136   : > { %v1810_v1 = vadd.f32 %v3224_v55, %v4340_v60  ;;  %v4433_v6 = vadd.f32 %v3162_v63, %v3161_v56  ;;  %v3227_v7 = vadd.f32 %v3226_v0, %v3225_v58 }
 0x137   : > { %2208 = vmatmul.mubr.bf16.gmra.mrb[136].mxu1 %v3920_v52  ;;  %3608 = vmatmul.mubr.bf16.gmra.mrb[136].mxu0 %v3921_v53 }
 0x138   : > { %v1813_v8 = vadd.f32 %v3227_v7, %v4345_v3  ;;  %2215 = vmatprep.mubr.bf16.mxu1 %v3922_v61  ;;  %3611 = vmatprep.mubr.msk.bf16.mxu0 %vm3955_vm0, %v3954_v12 }
 0x13a   : > { %v3228_v10 = vpop.f32.mrb[32].mxu1  ;;  %v3328_v13 = vpop.f32.mrb[32].mxu0 }
 0x13b   : > { %v3229_v16 = vpop.f32.mrb[33].mxu1  ;;  %v3329_v18 = vpop.f32.mrb[33].mxu0 }
 0x13c   : > { %v3230_v23 = vadd.f32 %v3229_v16, %v3228_v10  ;;  %v3330_v60 = vadd.f32 %v3329_v18, %v3328_v13  ;;  %v3231_v26 = vpop.f32.mrb[34].mxu1  ;;  %v3331_v28 = vpop.f32.mrb[34].mxu0  ;;  %v3929_v18 = vld [vmem:[%s4027_s10 + $0x410] ss:$0 sps:$4 sm:$0x11]  }
 0x13d   : > { %v3232_v31 = vpop.f32.mrb[35].mxu1  ;;  %v3332_v32 = vpop.f32.mrb[35].mxu0 }
 0x13e   : > { %v1818_v3 = vadd.f32 %v3230_v23, %v4353_v11  ;;  %v4442_v33 = vadd.f32 %v3330_v60, %v1810_v1  ;;  %v3233_v37 = vadd.f32 %v3232_v31, %v3231_v26  ;;  %v3333_v39 = vadd.f32 %v3332_v32, %v3331_v28  ;;  %v3928_v11 = vld [vmem:[%s4027_s10 + $0x3c8] ss:$36 sps:$4 sm:$0xff]  }
 0x13f   : > { %2216 = vmatmul.mubr.bf16.gmra.mrb[140].mxu1 %v3924_v21  ;;  %3612 = vmatmul.mubr.bf16.gmra.mrb[140].mxu0 %v3925_v22 }
 0x140   : > { %v1821_v40 = vadd.f32 %v3233_v37, %v4358_v19  ;;  %v4445_v41 = vadd.f32 %v3333_v39, %v1813_v8  ;;  %2223 = vmatprep.mubr.bf16.mxu1 %v2881_v30  ;;  %3615 = vmatprep.mubr.msk.bf16.mxu0 %vm3955_vm0, %v3954_v12 }
 0x142   : > { %v3234_v43 = vpop.f32.mrb[36].mxu1  ;;  %v3334_v46 = vpop.f32.mrb[36].mxu0 }
 0x143   : > { %v3235_v47 = vpop.f32.mrb[37].mxu1  ;;  %v3335_v48 = vpop.f32.mrb[37].mxu0 }
 0x144   : > { %v3236_v52 = vadd.f32 %v3235_v47, %v3234_v43  ;;  %v3336_v53 = vadd.f32 %v3335_v48, %v3334_v46  ;;  %v3237_v55 = vpop.f32.mrb[38].mxu1  ;;  %v3337_v56 = vpop.f32.mrb[38].mxu0 }
 0x145   : > { %v3238_v58 = vpop.f32.mrb[39].mxu1  ;;  %v3338_v61 = vpop.f32.mrb[39].mxu0 }
 0x146   : > { %v1826_v19 = vadd.f32 %v3236_v52, %v4366_v27  ;;  %v4451_v63 = vadd.f32 %v3336_v53, %v1818_v3  ;;  %v3239_v0 = vadd.f32 %v3238_v58, %v3237_v55  ;;  %v3339_v1 = vadd.f32 %v3338_v61, %v3337_v56 }
 0x147   : > { %2224 = vmatmul.mubr.bf16.gmra.mrb[144].mxu1 %v2880_v51  ;;  %3616 = vmatmul.mubr.bf16.gmra.mrb[144].mxu0 %v3928_v11 }
 0x148   : > { %v1829_v7 = vadd.f32 %v3239_v0, %v4371_v34  ;;  %v4454_v8 = vadd.f32 %v3339_v1, %v1821_v40  ;;  %3619 = vmatprep.mubr.msk.bf16.mxu0 %vm3955_vm0, %v3954_v12 }
 0x14a   : > { %v3240_v9 = vpop.f32.mrb[40].mxu1  ;;  %v3340_v10 = vpop.f32.mrb[40].mxu0 }
 0x14b   : > { %v3241_v13 = vpop.f32.mrb[41].mxu1  ;;  %v3341_v16 = vpop.f32.mrb[41].mxu0 }
 0x14c   : > { %v3242_v21 = vadd.f32 %v3241_v13, %v3240_v9  ;;  %v3342_v27 = vadd.f32 %v3341_v16, %v3340_v10  ;;  %v3243_v22 = vpop.f32.mrb[42].mxu1  ;;  %v3343_v23 = vpop.f32.mrb[42].mxu0 }
 0x14d   : > { %v3244_v60 = vpop.f32.mrb[43].mxu1  ;;  %v3344_v26 = vpop.f32.mrb[43].mxu0 }
 0x14e   : > { %v1834_v28 = vadd.f32 %v3242_v21, %v4379_v42  ;;  %v4460_v30 = vadd.f32 %v3342_v27, %v1826_v19  ;;  %v3245_v34 = vadd.f32 %v3244_v60, %v3243_v22  ;;  %v3345_v31 = vadd.f32 %v3344_v26, %v3343_v23 }
 0x14f   : > { %3620 = vmatmul.mubr.bf16.gmra.mrb[148].mxu0 %v3929_v18 }
 0x150   : > { %v1837_v12 = vadd.f32 %v3245_v34, %v4384_v49  ;;  %v4463_v32 = vadd.f32 %v3345_v31, %v1829_v7 }
 0x152   : > { %v3246_v3 = vpop.f32.mrb[44].mxu1  ;;  %v3346_v37 = vpop.f32.mrb[44].mxu0 }
 0x153   : > { %v3247_v39 = vpop.f32.mrb[45].mxu1  ;;  %v3347_v40 = vpop.f32.mrb[45].mxu0 }
 0x154   : > { %v3248_v43 = vadd.f32 %v3247_v39, %v3246_v3  ;;  %v3348_v46 = vadd.f32 %v3347_v40, %v3346_v37  ;;  %v3249_v47 = vpop.f32.mrb[46].mxu1  ;;  %v3349_v48 = vpop.f32.mrb[46].mxu0 }
 0x155   : > { %v3250_v51 = vpop.f32.mrb[47].mxu1  ;;  %v3350_v11 = vpop.f32.mrb[47].mxu0 }
 0x156   : > { %v1842_v42 = vadd.f32 %v3248_v43, %v4392_v57  ;;  %v4466_v52 = vadd.f32 %v3348_v46, %v1834_v28  ;;  %v3251_v53 = vadd.f32 %v3250_v51, %v3249_v47  ;;  %v3351_v55 = vadd.f32 %v3350_v11, %v3349_v48 }
 0x158   : > { %v1845_v49 = vadd.f32 %v3251_v53, %v4397_v2  ;;  %v4469_v56 = vadd.f32 %v3351_v55, %v1837_v12 }
 0x15a   : > { %v3252_v58 = vpop.f32.mrb[48].mxu1  ;;  %v3352_v61 = vpop.f32.mrb[48].mxu0 }
 0x15b   : > { %v3253_v19 = vpop.f32.mrb[49].mxu1  ;;  %v3353_v0 = vpop.f32.mrb[49].mxu0 }
 0x15c   : > { %v3254_v1 = vadd.f32 %v3253_v19, %v3252_v58  ;;  %v3354_v7 = vadd.f32 %v3353_v0, %v3352_v61  ;;  %v3255_v9 = vpop.f32.mrb[50].mxu1  ;;  %v3355_v10 = vpop.f32.mrb[50].mxu0 }
 0x15d   : > { %v3256_v13 = vpop.f32.mrb[51].mxu1  ;;  %v3356_v16 = vpop.f32.mrb[51].mxu0 }
 0x15e   : > { %v1850_v57 = vadd.f32 %v3254_v1, %v4405_v15  ;;  %v4472_v18 = vadd.f32 %v3354_v7, %v1842_v42  ;;  %v3257_v21 = vadd.f32 %v3256_v13, %v3255_v9  ;;  %v3357_v27 = vadd.f32 %v3356_v16, %v3355_v10 }
 0x160   : > { %v1853_v2 = vadd.f32 %v3257_v21, %v4410_v24  ;;  %v4475_v22 = vadd.f32 %v3357_v27, %v1845_v49 }
 0x162   : > { %v3258_v23 = vpop.f32.mrb[52].mxu1  ;;  %v3358_v60 = vpop.f32.mrb[52].mxu0 }
 0x163   : > { %v3259_v26 = vpop.f32.mrb[53].mxu1  ;;  %v3359_v28 = vpop.f32.mrb[53].mxu0 }
 0x164   : > { %v3260_v34 = vadd.f32 %v3259_v26, %v3258_v23  ;;  %v3360_v31 = vadd.f32 %v3359_v28, %v3358_v60  ;;  %v3261_v12 = vpop.f32.mrb[54].mxu1  ;;  %v3361_v3 = vpop.f32.mrb[54].mxu0 }
 0x165   : > { %v3262_v37 = vpop.f32.mrb[55].mxu1  ;;  %v3362_v39 = vpop.f32.mrb[55].mxu0 }
 0x166   : > { %v1858_v15 = vadd.f32 %v3260_v34, %v4418_v36  ;;  %v4478_v40 = vadd.f32 %v3360_v31, %v1850_v57  ;;  %v3263_v43 = vadd.f32 %v3262_v37, %v3261_v12  ;;  %v3363_v46 = vadd.f32 %v3362_v39, %v3361_v3 }
 0x168   : > { %v1861_v24 = vadd.f32 %v3263_v43, %v4423_v45  ;;  %v4481_v47 = vadd.f32 %v3363_v46, %v1853_v2 }
 0x16a   : > { %v3264_v48 = vpop.f32.mrb[56].mxu1  ;;  %v3364_v51 = vpop.f32.mrb[56].mxu0 }
 0x16b   : > { %v3265_v11 = vpop.f32.mrb[57].mxu1  ;;  %v3365_v42 = vpop.f32.mrb[57].mxu0 }
 0x16c   : > { %v3266_v53 = vadd.f32 %v3265_v11, %v3264_v48  ;;  %v3366_v55 = vadd.f32 %v3365_v42, %v3364_v51  ;;  %v3267_v49 = vpop.f32.mrb[58].mxu1  ;;  %v3367_v58 = vpop.f32.mrb[58].mxu0 }
 0x16d   : > { %v3268_v61 = vpop.f32.mrb[59].mxu1  ;;  %v3368_v19 = vpop.f32.mrb[59].mxu0 }
 0x16e   : > { %v1866_v36 = vadd.f32 %v3266_v53, %v4429_v54  ;;  %v4484_v0 = vadd.f32 %v3366_v55, %v1858_v15  ;;  %v3269_v1 = vadd.f32 %v3268_v61, %v3267_v49  ;;  %v3369_v7 = vadd.f32 %v3368_v19, %v3367_v58 }
 0x170   : > { %v1869_v45 = vadd.f32 %v3269_v1, %v4433_v6  ;;  %v4487_v9 = vadd.f32 %v3369_v7, %v1861_v24 }
 0x172   : > { %v3270_v10 = vpop.f32.mrb[60].mxu1  ;;  %v3370_v13 = vpop.f32.mrb[60].mxu0 }
 0x173   : > { %v3271_v16 = vpop.f32.mrb[61].mxu1  ;;  %v3371_v57 = vpop.f32.mrb[61].mxu0 }
 0x174   : > { %v3272_v21 = vadd.f32 %v3271_v16, %v3270_v10  ;;  %v3372_v27 = vadd.f32 %v3371_v57, %v3370_v13  ;;  %v3273_v2 = vpop.f32.mrb[62].mxu1  ;;  %v3373_v23 = vpop.f32.mrb[62].mxu0 }
 0x175   : > { %v3274_v60 = vpop.f32.mrb[63].mxu1  ;;  %v3374_v26 = vpop.f32.mrb[63].mxu0 }
 0x176   : > { %v1874_v54 = vadd.f32 %v3272_v21, %v4342_v62  ;;  %v4490_v28 = vadd.f32 %v3372_v27, %v1866_v36  ;;  %v3275_v34 = vadd.f32 %v3274_v60, %v3273_v2  ;;  %v3375_v31 = vadd.f32 %v3374_v26, %v3373_v23 }
 0x178   : > { %v1877_v6 = vadd.f32 %v3275_v34, %v4347_v4  ;;  %v4493_v12 = vadd.f32 %v3375_v31, %v1869_v45 }
 0x17a   : > { %v3276_v3 = vpop.f32.mrb[64].mxu1  ;;  %v3376_v37 = vpop.f32.mrb[64].mxu0 }
 0x17b   : > { %v3277_v39 = vpop.f32.mrb[65].mxu1  ;;  %v3377_v15 = vpop.f32.mrb[65].mxu0 }
 0x17c   : > { %v3278_v43 = vadd.f32 %v3277_v39, %v3276_v3  ;;  %v3378_v46 = vadd.f32 %v3377_v15, %v3376_v37  ;;  %v3279_v24 = vpop.f32.mrb[66].mxu1  ;;  %v3379_v48 = vpop.f32.mrb[66].mxu0 }
 0x17d   : > { %v3280_v51 = vpop.f32.mrb[67].mxu1  ;;  %v3380_v11 = vpop.f32.mrb[67].mxu0 }
 0x17e   : > { %v1882_v62 = vadd.f32 %v3278_v43, %v4355_v14  ;;  %v4496_v42 = vadd.f32 %v3378_v46, %v1874_v54  ;;  %v3281_v53 = vadd.f32 %v3280_v51, %v3279_v24  ;;  %v3381_v55 = vadd.f32 %v3380_v11, %v3379_v48 }
 0x180   : > { %v1885_v4 = vadd.f32 %v3281_v53, %v4360_v20  ;;  %v4499_v49 = vadd.f32 %v3381_v55, %v1877_v6 }
 0x182   : > { %v3282_v58 = vpop.f32.mrb[68].mxu1  ;;  %v3382_v61 = vpop.f32.mrb[68].mxu0 }
 0x183   : > { %v3283_v19 = vpop.f32.mrb[69].mxu1  ;;  %v3383_v36 = vpop.f32.mrb[69].mxu0 }
 0x184   : > { %v3284_v1 = vadd.f32 %v3283_v19, %v3282_v58  ;;  %v3384_v7 = vadd.f32 %v3383_v36, %v3382_v61  ;;  %v3285_v45 = vpop.f32.mrb[70].mxu1  ;;  %v3385_v10 = vpop.f32.mrb[70].mxu0 }
 0x185   : > { %v3286_v13 = vpop.f32.mrb[71].mxu1  ;;  %v3386_v16 = vpop.f32.mrb[71].mxu0 }
 0x186   : > { %v1890_v14 = vadd.f32 %v3284_v1, %v4368_v29  ;;  %v4502_v57 = vadd.f32 %v3384_v7, %v1882_v62  ;;  %v3287_v21 = vadd.f32 %v3286_v13, %v3285_v45  ;;  %v3387_v27 = vadd.f32 %v3386_v16, %v3385_v10 }
 0x188   : > { %v1893_v20 = vadd.f32 %v3287_v21, %v4373_v35  ;;  %v4505_v2 = vadd.f32 %v3387_v27, %v1885_v4 }
 0x18a   : > { %v3288_v23 = vpop.f32.mrb[72].mxu1  ;;  %v3388_v60 = vpop.f32.mrb[72].mxu0 }
 0x18b   : > { %v3289_v26 = vpop.f32.mrb[73].mxu1  ;;  %v3389_v54 = vpop.f32.mrb[73].mxu0 }
 0x18c   : > { %v3290_v34 = vadd.f32 %v3289_v26, %v3288_v23  ;;  %v3390_v31 = vadd.f32 %v3389_v54, %v3388_v60  ;;  %v3291_v6 = vpop.f32.mrb[74].mxu1  ;;  %v3391_v3 = vpop.f32.mrb[74].mxu0 }
 0x18d   : > { %v3292_v37 = vpop.f32.mrb[75].mxu1  ;;  %v3392_v39 = vpop.f32.mrb[75].mxu0 }
 0x18e   : > { %v1898_v29 = vadd.f32 %v3290_v34, %v4381_v44  ;;  %v4508_v15 = vadd.f32 %v3390_v31, %v1890_v14  ;;  %v3293_v43 = vadd.f32 %v3292_v37, %v3291_v6  ;;  %v3393_v46 = vadd.f32 %v3392_v39, %v3391_v3 }
 0x190   : > { %v1901_v35 = vadd.f32 %v3293_v43, %v4386_v50  ;;  %v4511_v24 = vadd.f32 %v3393_v46, %v1893_v20 }
 0x192   : > { %v3294_v48 = vpop.f32.mrb[76].mxu1  ;;  %v3394_v51 = vpop.f32.mrb[76].mxu0 }
 0x193   : > { %v3295_v11 = vpop.f32.mrb[77].mxu1  ;;  %v3395_v62 = vpop.f32.mrb[77].mxu0 }
 0x194   : > { %v3296_v53 = vadd.f32 %v3295_v11, %v3294_v48  ;;  %v3396_v55 = vadd.f32 %v3395_v62, %v3394_v51  ;;  %v3297_v4 = vpop.f32.mrb[78].mxu1  ;;  %v3397_v58 = vpop.f32.mrb[78].mxu0 }
 0x195   : > { %v3298_v61 = vpop.f32.mrb[79].mxu1  ;;  %v3398_v19 = vpop.f32.mrb[79].mxu0 }
 0x196   : > { %v1906_v44 = vadd.f32 %v3296_v53, %v4394_v59  ;;  %v4514_v36 = vadd.f32 %v3396_v55, %v1898_v29  ;;  %v3299_v1 = vadd.f32 %v3298_v61, %v3297_v4  ;;  %v3399_v7 = vadd.f32 %v3398_v19, %v3397_v58 }
 0x198   : > { %v1909_v50 = vadd.f32 %v3299_v1, %v4399_v5  ;;  %v4517_v45 = vadd.f32 %v3399_v7, %v1901_v35 }
 0x19a   : > { %v3300_v10 = vpop.f32.mrb[80].mxu1  ;;  %v3400_v13 = vpop.f32.mrb[80].mxu0 }
 0x19b   : > { %v3301_v16 = vpop.f32.mrb[81].mxu1  ;;  %v3401_v14 = vpop.f32.mrb[81].mxu0 }
 0x19c   : > { %v3302_v21 = vadd.f32 %v3301_v16, %v3300_v10  ;;  %v3402_v27 = vadd.f32 %v3401_v14, %v3400_v13  ;;  %v3303_v20 = vpop.f32.mrb[82].mxu1  ;;  %v3403_v23 = vpop.f32.mrb[82].mxu0 }
 0x19d   : > { %v3304_v60 = vpop.f32.mrb[83].mxu1  ;;  %v3404_v26 = vpop.f32.mrb[83].mxu0 }
 0x19e   : > { %v1914_v59 = vadd.f32 %v3302_v21, %v4407_v17  ;;  %v4520_v54 = vadd.f32 %v3402_v27, %v1906_v44  ;;  %v3305_v34 = vadd.f32 %v3304_v60, %v3303_v20  ;;  %v3405_v31 = vadd.f32 %v3404_v26, %v3403_v23  ;;  %v4537_v20 = vld [vmem:[%s4662_s2] ss:$0 sm:$0xff] }
 0x1a0   : > { %v1917_v5 = vadd.f32 %v3305_v34, %v4412_v25  ;;  %v4523_v6 = vadd.f32 %v3405_v31, %v1909_v50 }
 0x1a2   : > { %v3306_v3 = vpop.f32.mrb[84].mxu1  ;;  %v3406_v37 = vpop.f32.mrb[84].mxu0 }
 0x1a3   : > { %v3307_v39 = vpop.f32.mrb[85].mxu1  ;;  %v3407_v29 = vpop.f32.mrb[85].mxu0 }
 0x1a4   : > { %v3308_v43 = vadd.f32 %v3307_v39, %v3306_v3  ;;  %v3408_v46 = vadd.f32 %v3407_v29, %v3406_v37  ;;  %v3409_v35 = vpop.f32.mrb[86].mxu0  ;;  %v3309_v48 = vpop.f32.mrb[86].mxu1 }
 0x1a5   : > { %v3410_v51 = vpop.f32.mrb[87].mxu0  ;;  %v3310_v11 = vpop.f32.mrb[87].mxu1 }
 0x1a6   : > { %v1922_v17 = vadd.f32 %v3308_v43, %v4420_v38  ;;  %v4526_v62 = vadd.f32 %v3408_v46, %v1914_v59  ;;  %v3411_v53 = vadd.f32 %v3410_v51, %v3409_v35  ;;  %v4542_v59 = vld [vmem:[%s4662_s2 + $0x1] ss:$0 sm:$0xff] }
 0x1a8   : > { %v4528_v55 = vadd.f32 %v3411_v53, %v1917_v5 }
 0x1aa   : > { %v3412_v25 = vpop.f32.mrb[88].mxu0  ;;  %v3434_v4 = vpop.f32.mrb[88].mxu1 }
 0x1ab   : > { %v3413_v58 = vpop.f32.mrb[89].mxu0  ;;  %v3435_v61 = vpop.f32.mrb[89].mxu1 }
 0x1ac   : > { %v3414_v19 = vadd.f32 %v3413_v58, %v3412_v25  ;;  %v3436_v44 = vadd.f32 %v3435_v61, %v3434_v4  ;;  %v3415_v1 = vpop.f32.mrb[90].mxu0  ;;  %v3437_v7 = vpop.f32.mrb[90].mxu1 }
 0x1ad   : > { %v3416_v50 = vpop.f32.mrb[91].mxu0  ;;  %v3438_v10 = vpop.f32.mrb[91].mxu1 }
 0x1ae   : > { %v4530_v13 = vadd.f32 %v3414_v19, %v1922_v17  ;;  %v3439_v16 = vadd.f32 %v3438_v10, %v3437_v7  ;;  %v2114_v38 = vadd.f32 %v3436_v44, %v4442_v33 }
 0x1b0   : > { %v2117_v14 = vadd.f32 %v3439_v16, %v4445_v41 }
 0x1b2   : > { %v3440_v21 = vpop.f32.mrb[92].mxu1  ;;  %v2265_v27 = vpop.f32.mrb[92].mxu0 }
 0x1b3   : > { %v2266_v23 = vadd.f32 %v2265_v27, %v2114_v38  ;;  %v3441_v60 = vpop.f32.mrb[93].mxu1  ;;  %v3565_v26 = vpop.f32.mrb[93].mxu0 }
 0x1b4   : > { %v3442_v34 = vadd.f32 %v3441_v60, %v3440_v21  ;;  %v3443_v33 = vpop.f32.mrb[94].mxu1  ;;  %v2268_v31 = vpop.f32.mrb[94].mxu0 }
 0x1b5   : > { %v2388_v41 = vmul.f32 %v4537_v20, %v2266_v23  ;;  %v2269_v5 = vadd.f32 %v2268_v31, %v2117_v14  ;;  %v3444_v3 = vpop.f32.mrb[95].mxu1  ;;  %v3566_v37 = vpop.f32.mrb[95].mxu0 }
 0x1b6   : > { %v3445_v39 = vadd.f32 %v3444_v3, %v3443_v33  ;;  %v2122_v29 = vadd.f32 %v3442_v34, %v4451_v63 }
 0x1b7   : > { %v2422_v43 = vadd.f32 %v4542_v59, %v2388_v41  ;;  %v2389_v46 = vmul.f32 %v4537_v20, %v2269_v5 }
 0x1b8   : > { %v2125_v35 = vadd.f32 %v3445_v39, %v4454_v8 }
 0x1b9   : > { %v2423_v48 = vadd.f32 %v4542_v59, %v2389_v46  ;;  %v2451_v17 = vmax.f32 %v2422_v43, 0.0 }
 0x1ba   : > { %v3446_v51 = vpop.f32.mrb[96].mxu1  ;;  %v2273_v11 = vpop.f32.mrb[96].mxu0 }
 0x1bb   : > { %v2452_v53 = vmax.f32 %v2423_v48, 0.0  ;;  %v2274_v25 = vadd.f32 %v2273_v11, %v2122_v29  ;;  %v3447_v4 = vpop.f32.mrb[97].mxu1  ;;  %v3569_v58 = vpop.f32.mrb[97].mxu0 }
 0x1bc   : > { %v3448_v63 = vadd.f32 %v3447_v4, %v3446_v51  ;;  %v3449_v61 = vpop.f32.mrb[98].mxu1  ;;  %v2276_v19 = vpop.f32.mrb[98].mxu0 }
 0x1bd   : > { %v3020_v44 = vpack.c.bf16 %v2452_v53, %v2451_v17  ;;  %v2390_v8 = vmul.f32 %v4537_v20, %v2274_v25  ;;  %v2277_v1 = vadd.f32 %v2276_v19, %v2125_v35  ;;  %v3450_v7 = vpop.f32.mrb[99].mxu1  ;;  %v3570_v50 = vpop.f32.mrb[99].mxu0 }
 0x1be   : > { %v3451_v10 = vadd.f32 %v3450_v7, %v3449_v61  ;;  %v2130_v16 = vadd.f32 %v3448_v63, %v4460_v30 }
 0x1bf   : > { %3021 = vst [vmem:[%s4554_s11] sm:$0xff] %v3020_v44   ;;  %v2424_v38 = vadd.f32 %v4542_v59, %v2390_v8  ;;  %v2391_v14 = vmul.f32 %v4537_v20, %v2277_v1 }
 0x1c0   : > { %v2133_v21 = vadd.f32 %v3451_v10, %v4463_v32 }
 0x1c1   : > { %v2425_v27 = vadd.f32 %v4542_v59, %v2391_v14  ;;  %v2453_v26 = vmax.f32 %v2424_v38, 0.0 }
 0x1c2   : > { %v3452_v23 = vpop.f32.mrb[100].mxu1  ;;  %v2281_v60 = vpop.f32.mrb[100].mxu0 }
 0x1c3   : > { %v2454_v34 = vmax.f32 %v2425_v27, 0.0  ;;  %v2282_v33 = vadd.f32 %v2281_v60, %v2130_v16  ;;  %v3453_v31 = vpop.f32.mrb[101].mxu1  ;;  %v3573_v41 = vpop.f32.mrb[101].mxu0 }
 0x1c4   : > { %v3454_v5 = vadd.f32 %v3453_v31, %v3452_v23  ;;  %v3455_v3 = vpop.f32.mrb[102].mxu1  ;;  %v2284_v30 = vpop.f32.mrb[102].mxu0 }
 0x1c5   : > { %v3025_v37 = vpack.c.bf16 %v2454_v34, %v2453_v26  ;;  %v2392_v39 = vmul.f32 %v4537_v20, %v2282_v33  ;;  %v2285_v29 = vadd.f32 %v2284_v30, %v2133_v21  ;;  %v3456_v43 = vpop.f32.mrb[103].mxu1  ;;  %v3574_v46 = vpop.f32.mrb[103].mxu0 }
 0x1c6   : > { %v3457_v32 = vadd.f32 %v3456_v43, %v3455_v3  ;;  %v2138_v35 = vadd.f32 %v3454_v5, %v4466_v52 }
 0x1c7   : > { %3087 = vst [vmem:[%s4554_s11 + $0x8] sm:$0xff] %v3025_v37   ;;  %v2426_v48 = vadd.f32 %v4542_v59, %v2392_v39  ;;  %v2393_v51 = vmul.f32 %v4537_v20, %v2285_v29 }
 0x1c8   : > { %v2141_v11 = vadd.f32 %v3457_v32, %v4469_v56 }
 0x1c9   : > { %v2427_v17 = vadd.f32 %v4542_v59, %v2393_v51  ;;  %v2455_v4 = vmax.f32 %v2426_v48, 0.0 }
 0x1ca   : > { %v3458_v53 = vpop.f32.mrb[104].mxu1  ;;  %v2289_v25 = vpop.f32.mrb[104].mxu0 }
 0x1cb   : > { %v2456_v58 = vmax.f32 %v2427_v17, 0.0  ;;  %v2290_v63 = vadd.f32 %v2289_v25, %v2138_v35  ;;  %v3459_v61 = vpop.f32.mrb[105].mxu1  ;;  %v3577_v19 = vpop.f32.mrb[105].mxu0 }
 0x1cc   : > { %v3460_v44 = vadd.f32 %v3459_v61, %v3458_v53  ;;  %v3461_v8 = vpop.f32.mrb[106].mxu1  ;;  %v2292_v52 = vpop.f32.mrb[106].mxu0 }
 0x1cd   : > { %v3030_v1 = vpack.c.bf16 %v2456_v58, %v2455_v4  ;;  %v2394_v7 = vmul.f32 %v4537_v20, %v2290_v63  ;;  %v2293_v50 = vadd.f32 %v2292_v52, %v2141_v11  ;;  %v3462_v10 = vpop.f32.mrb[107].mxu1  ;;  %v3578_v16 = vpop.f32.mrb[107].mxu0 }
 0x1ce   : > { %v3463_v56 = vadd.f32 %v3462_v10, %v3461_v8  ;;  %v2146_v38 = vadd.f32 %v3460_v44, %v4472_v18 }
 0x1cf   : > { %3088 = vst [vmem:[%s4554_s11 + $0x10] sm:$0xff] %v3030_v1   ;;  %v2428_v14 = vadd.f32 %v4542_v59, %v2394_v7  ;;  %v2395_v21 = vmul.f32 %v4537_v20, %v2293_v50 }
 0x1d0   : > { %v2149_v27 = vadd.f32 %v3463_v56, %v4475_v22 }
 0x1d1   : > { %v2429_v23 = vadd.f32 %v4542_v59, %v2395_v21  ;;  %v2457_v34 = vmax.f32 %v2428_v14, 0.0 }
 0x1d2   : > { %v3464_v60 = vpop.f32.mrb[108].mxu1  ;;  %v2297_v26 = vpop.f32.mrb[108].mxu0 }
 0x1d3   : > { %v2458_v33 = vmax.f32 %v2429_v23, 0.0  ;;  %v2298_v31 = vadd.f32 %v2297_v26, %v2146_v38  ;;  %v3465_v41 = vpop.f32.mrb[109].mxu1  ;;  %v3581_v5 = vpop.f32.mrb[109].mxu0 }
 0x1d4   : > { %v3466_v3 = vadd.f32 %v3465_v41, %v3464_v60  ;;  %v3467_v30 = vpop.f32.mrb[110].mxu1  ;;  %v2300_v18 = vpop.f32.mrb[110].mxu0 }
 0x1d5   : > { %v3035_v37 = vpack.c.bf16 %v2458_v33, %v2457_v34  ;;  %v2396_v39 = vmul.f32 %v4537_v20, %v2298_v31  ;;  %v2301_v29 = vadd.f32 %v2300_v18, %v2149_v27  ;;  %v3468_v43 = vpop.f32.mrb[111].mxu1  ;;  %v3582_v46 = vpop.f32.mrb[111].mxu0 }
 0x1d6   : > { %v3469_v22 = vadd.f32 %v3468_v43, %v3467_v30  ;;  %v2154_v32 = vadd.f32 %v3466_v3, %v4478_v40 }
 0x1d7   : > { %3089 = vst [vmem:[%s4554_s11 + $0x18] sm:$0xff] %v3035_v37   ;;  %v2430_v35 = vadd.f32 %v4542_v59, %v2396_v39  ;;  %v2397_v48 = vmul.f32 %v4537_v20, %v2301_v29 }
 0x1d8   : > { %v2157_v51 = vadd.f32 %v3469_v22, %v4481_v47 }
 0x1d9   : > { %v2431_v11 = vadd.f32 %v4542_v59, %v2397_v48  ;;  %v2459_v25 = vmax.f32 %v2430_v35, 0.0 }
 0x1da   : > { %v3470_v17 = vpop.f32.mrb[112].mxu1  ;;  %v2305_v53 = vpop.f32.mrb[112].mxu0 }
 0x1db   : > { %v2460_v4 = vmax.f32 %v2431_v11, 0.0  ;;  %v2306_v58 = vadd.f32 %v2305_v53, %v2154_v32  ;;  %v3471_v63 = vpop.f32.mrb[113].mxu1  ;;  %v3585_v61 = vpop.f32.mrb[113].mxu0 }
 0x1dc   : > { %v3472_v19 = vadd.f32 %v3471_v63, %v3470_v17  ;;  %v3473_v44 = vpop.f32.mrb[114].mxu1  ;;  %v2308_v40 = vpop.f32.mrb[114].mxu0 }
 0x1dd   : > { %v3040_v8 = vpack.c.bf16 %v2460_v4, %v2459_v25  ;;  %v2398_v52 = vmul.f32 %v4537_v20, %v2306_v58  ;;  %v2309_v1 = vadd.f32 %v2308_v40, %v2157_v51  ;;  %v3474_v7 = vpop.f32.mrb[115].mxu1  ;;  %v3586_v50 = vpop.f32.mrb[115].mxu0 }
 0x1de   : > { %v3475_v47 = vadd.f32 %v3474_v7, %v3473_v44  ;;  %v2162_v10 = vadd.f32 %v3472_v19, %v4484_v0 }
 0x1df   : > { %3090 = vst [vmem:[%s4554_s11 + $0x20] sm:$0xff] %v3040_v8   ;;  %v2432_v16 = vadd.f32 %v4542_v59, %v2398_v52  ;;  %v2399_v56 = vmul.f32 %v4537_v20, %v2309_v1 }
 0x1e0   : > { %v2165_v38 = vadd.f32 %v3475_v47, %v4487_v9 }
 0x1e1   : > { %v2433_v14 = vadd.f32 %v4542_v59, %v2399_v56  ;;  %v2461_v23 = vmax.f32 %v2432_v16, 0.0 }
 0x1e2   : > { %v3476_v21 = vpop.f32.mrb[116].mxu1  ;;  %v2313_v27 = vpop.f32.mrb[116].mxu0 }
 0x1e3   : > { %v2462_v60 = vmax.f32 %v2433_v14, 0.0  ;;  %v2314_v26 = vadd.f32 %v2313_v27, %v2162_v10  ;;  %v3477_v34 = vpop.f32.mrb[117].mxu1  ;;  %v3589_v33 = vpop.f32.mrb[117].mxu0 }
 0x1e4   : > { %v3478_v31 = vadd.f32 %v3477_v34, %v3476_v21  ;;  %v3479_v41 = vpop.f32.mrb[118].mxu1  ;;  %v2316_v0 = vpop.f32.mrb[118].mxu0 }
 0x1e5   : > { %v3045_v5 = vpack.c.bf16 %v2462_v60, %v2461_v23  ;;  %v2400_v3 = vmul.f32 %v4537_v20, %v2314_v26  ;;  %v2317_v30 = vadd.f32 %v2316_v0, %v2165_v38  ;;  %v3480_v18 = vpop.f32.mrb[119].mxu1  ;;  %v3590_v37 = vpop.f32.mrb[119].mxu0 }
 0x1e6   : > { %v3481_v9 = vadd.f32 %v3480_v18, %v3479_v41  ;;  %v2170_v39 = vadd.f32 %v3478_v31, %v4490_v28 }
 0x1e7   : > { %3091 = vst [vmem:[%s4554_s11 + $0x28] sm:$0xff] %v3045_v5   ;;  %v2434_v29 = vadd.f32 %v4542_v59, %v2400_v3  ;;  %v2401_v43 = vmul.f32 %v4537_v20, %v2317_v30 }
 0x1e8   : > { %v2173_v46 = vadd.f32 %v3481_v9, %v4493_v12 }
 0x1e9   : > { %v2435_v22 = vadd.f32 %v4542_v59, %v2401_v43  ;;  %v2463_v48 = vmax.f32 %v2434_v29, 0.0 }
 0x1ea   : > { %v3482_v32 = vpop.f32.mrb[120].mxu1  ;;  %v2321_v35 = vpop.f32.mrb[120].mxu0 }
 0x1eb   : > { %v2464_v51 = vmax.f32 %v2435_v22, 0.0  ;;  %v2322_v11 = vadd.f32 %v2321_v35, %v2170_v39  ;;  %v3483_v17 = vpop.f32.mrb[121].mxu1  ;;  %v3593_v53 = vpop.f32.mrb[121].mxu0 }
 0x1ec   : > { %v3484_v25 = vadd.f32 %v3483_v17, %v3482_v32  ;;  %v3485_v4 = vpop.f32.mrb[122].mxu1  ;;  %v2324_v28 = vpop.f32.mrb[122].mxu0 }
 0x1ed   : > { %v3050_v58 = vpack.c.bf16 %v2464_v51, %v2463_v48  ;;  %v2402_v63 = vmul.f32 %v4537_v20, %v2322_v11  ;;  %v2325_v61 = vadd.f32 %v2324_v28, %v2173_v46  ;;  %v3486_v19 = vpop.f32.mrb[123].mxu1  ;;  %v3594_v44 = vpop.f32.mrb[123].mxu0 }
 0x1ee   : > { %v3487_v12 = vadd.f32 %v3486_v19, %v3485_v4  ;;  %v2178_v40 = vadd.f32 %v3484_v25, %v4496_v42 }
 0x1ef   : > { %3092 = vst [vmem:[%s4554_s11 + $0x30] sm:$0xff] %v3050_v58   ;;  %v2436_v8 = vadd.f32 %v4542_v59, %v2402_v63  ;;  %v2403_v52 = vmul.f32 %v4537_v20, %v2325_v61 }
 0x1f0   : > { %v2181_v1 = vadd.f32 %v3487_v12, %v4499_v49 }
 0x1f1   : > { %v2437_v7 = vadd.f32 %v4542_v59, %v2403_v52  ;;  %v2465_v10 = vmax.f32 %v2436_v8, 0.0 }
 0x1f2   : > { %v3488_v50 = vpop.f32.mrb[124].mxu1  ;;  %v2329_v47 = vpop.f32.mrb[124].mxu0 }
 0x1f3   : > { %v2466_v16 = vmax.f32 %v2437_v7, 0.0  ;;  %v2330_v56 = vadd.f32 %v2329_v47, %v2178_v40  ;;  %v3489_v38 = vpop.f32.mrb[125].mxu1  ;;  %v3597_v14 = vpop.f32.mrb[125].mxu0 }
 0x1f4   : > { %v3490_v21 = vadd.f32 %v3489_v38, %v3488_v50  ;;  %v3491_v27 = vpop.f32.mrb[126].mxu1  ;;  %v2332_v42 = vpop.f32.mrb[126].mxu0 }
 0x1f5   : > { %v3055_v23 = vpack.c.bf16 %v2466_v16, %v2465_v10  ;;  %v2404_v60 = vmul.f32 %v4537_v20, %v2330_v56  ;;  %v2333_v26 = vadd.f32 %v2332_v42, %v2181_v1  ;;  %v3492_v34 = vpop.f32.mrb[127].mxu1  ;;  %v3598_v33 = vpop.f32.mrb[127].mxu0 }
 0x1f6   : > { %v3493_v49 = vadd.f32 %v3492_v34, %v3491_v27  ;;  %v2186_v31 = vadd.f32 %v3490_v21, %v4502_v57 }
 0x1f7   : > { %3093 = vst [vmem:[%s4554_s11 + $0x38] sm:$0xff] %v3055_v23   ;;  %v2438_v41 = vadd.f32 %v4542_v59, %v2404_v60  ;;  %v2405_v0 = vmul.f32 %v4537_v20, %v2333_v26 }
 0x1f8   : > { %v2189_v5 = vadd.f32 %v3493_v49, %v4505_v2 }
 0x1f9   : > { %v2439_v3 = vadd.f32 %v4542_v59, %v2405_v0  ;;  %v2467_v37 = vmax.f32 %v2438_v41, 0.0 }
 0x1fa   : > { %v3494_v30 = vpop.f32.mrb[128].mxu1  ;;  %v2337_v18 = vpop.f32.mrb[128].mxu0 }
 0x1fb   : > { %v2468_v9 = vmax.f32 %v2439_v3, 0.0  ;;  %v2338_v39 = vadd.f32 %v2337_v18, %v2186_v31  ;;  %v3495_v29 = vpop.f32.mrb[129].mxu1  ;;  %v3601_v43 = vpop.f32.mrb[129].mxu0 }
 0x1fc   : > { %v3496_v46 = vadd.f32 %v3495_v29, %v3494_v30  ;;  %v3497_v22 = vpop.f32.mrb[130].mxu1  ;;  %v2340_v57 = vpop.f32.mrb[130].mxu0 }
 0x1fd   : > { %v3060_v32 = vpack.c.bf16 %v2468_v9, %v2467_v37  ;;  %v2406_v35 = vmul.f32 %v4537_v20, %v2338_v39  ;;  %v2341_v48 = vadd.f32 %v2340_v57, %v2189_v5  ;;  %v3498_v51 = vpop.f32.mrb[131].mxu1  ;;  %v3602_v11 = vpop.f32.mrb[131].mxu0 }
 0x1fe   : > { %v3499_v2 = vadd.f32 %v3498_v51, %v3497_v22  ;;  %v2194_v17 = vadd.f32 %v3496_v46, %v4508_v15 }
 0x1ff   : > { %3094 = vst [vmem:[%s4554_s11 + $0x40] sm:$0xff] %v3060_v32   ;;  %v2440_v53 = vadd.f32 %v4542_v59, %v2406_v35  ;;  %v2407_v25 = vmul.f32 %v4537_v20, %v2341_v48 }
 0x200   : > { %v2197_v4 = vadd.f32 %v3499_v2, %v4511_v24 }
 0x201   : > { %v2441_v28 = vadd.f32 %v4542_v59, %v2407_v25  ;;  %v2469_v61 = vmax.f32 %v2440_v53, 0.0 }
 0x202   : > { %v3500_v58 = vpop.f32.mrb[132].mxu1  ;;  %v2345_v63 = vpop.f32.mrb[132].mxu0 }
 0x203   : > { %v2470_v19 = vmax.f32 %v2441_v28, 0.0  ;;  %v2346_v44 = vadd.f32 %v2345_v63, %v2194_v17  ;;  %v3501_v12 = vpop.f32.mrb[133].mxu1  ;;  %v3605_v40 = vpop.f32.mrb[133].mxu0 }
 0x204   : > { %v3502_v8 = vadd.f32 %v3501_v12, %v3500_v58  ;;  %v3503_v52 = vpop.f32.mrb[134].mxu1  ;;  %v2348_v15 = vpop.f32.mrb[134].mxu0 }
 0x205   : > { %v3065_v1 = vpack.c.bf16 %v2470_v19, %v2469_v61  ;;  %v2408_v7 = vmul.f32 %v4537_v20, %v2346_v44  ;;  %v2349_v50 = vadd.f32 %v2348_v15, %v2197_v4  ;;  %v3504_v47 = vpop.f32.mrb[135].mxu1  ;;  %v3606_v10 = vpop.f32.mrb[135].mxu0 }
 0x206   : > { %v3505_v24 = vadd.f32 %v3504_v47, %v3503_v52  ;;  %v2202_v16 = vadd.f32 %v3502_v8, %v4514_v36 }
 0x207   : > { %3095 = vst [vmem:[%s4554_s11 + $0x48] sm:$0xff] %v3065_v1   ;;  %v2442_v56 = vadd.f32 %v4542_v59, %v2408_v7  ;;  %v2409_v38 = vmul.f32 %v4537_v20, %v2349_v50 }
 0x208   : > { %v2205_v14 = vadd.f32 %v3505_v24, %v4517_v45 }
 0x209   : > { %v2443_v21 = vadd.f32 %v4542_v59, %v2409_v38  ;;  %v2471_v23 = vmax.f32 %v2442_v56, 0.0 }
 0x20a   : > { %v3506_v27 = vpop.f32.mrb[136].mxu1  ;;  %v2353_v42 = vpop.f32.mrb[136].mxu0 }
 0x20b   : > { %v2472_v60 = vmax.f32 %v2443_v21, 0.0  ;;  %v2354_v26 = vadd.f32 %v2353_v42, %v2202_v16  ;;  %v3507_v34 = vpop.f32.mrb[137].mxu1  ;;  %v3609_v33 = vpop.f32.mrb[137].mxu0 }
 0x20c   : > { %v3508_v49 = vadd.f32 %v3507_v34, %v3506_v27  ;;  %v3509_v31 = vpop.f32.mrb[138].mxu1  ;;  %v2356_v36 = vpop.f32.mrb[138].mxu0 }
 0x20d   : > { %v3070_v41 = vpack.c.bf16 %v2472_v60, %v2471_v23  ;;  %v2410_v0 = vmul.f32 %v4537_v20, %v2354_v26  ;;  %v2357_v5 = vadd.f32 %v2356_v36, %v2205_v14  ;;  %v3510_v3 = vpop.f32.mrb[139].mxu1  ;;  %v3610_v30 = vpop.f32.mrb[139].mxu0 }
 0x20e   : > { %v3511_v45 = vadd.f32 %v3510_v3, %v3509_v31  ;;  %v2210_v18 = vadd.f32 %v3508_v49, %v4520_v54 }
 0x20f   : > { %3096 = vst [vmem:[%s4554_s11 + $0x50] sm:$0xff] %v3070_v41   ;;  %v2444_v37 = vadd.f32 %v4542_v59, %v2410_v0  ;;  %v2411_v9 = vmul.f32 %v4537_v20, %v2357_v5  ;;  %v2628_v41 = vld [vmem:[%s4554_s11 + $0x70] sm:$0x1] }
 0x210   : > { %v2213_v39 = vadd.f32 %v3511_v45, %v4523_v6 }
 0x211   : > { %v2445_v29 = vadd.f32 %v4542_v59, %v2411_v9  ;;  %v2473_v22 = vmax.f32 %v2444_v37, 0.0 }
 0x212   : > { %v3512_v43 = vpop.f32.mrb[140].mxu1  ;;  %v2361_v46 = vpop.f32.mrb[140].mxu0 }
 0x213   : > { %v2474_v57 = vmax.f32 %v2445_v29, 0.0  ;;  %v2362_v32 = vadd.f32 %v2361_v46, %v2210_v18  ;;  %v3513_v35 = vpop.f32.mrb[141].mxu1  ;;  %v3613_v48 = vpop.f32.mrb[141].mxu0 }
 0x214   : > { %v3514_v51 = vadd.f32 %v3513_v35, %v3512_v43  ;;  %v3515_v11 = vpop.f32.mrb[142].mxu1  ;;  %v2364_v54 = vpop.f32.mrb[142].mxu0 }
 0x215   : > { %v3075_v2 = vpack.c.bf16 %v2474_v57, %v2473_v22  ;;  %v2412_v17 = vmul.f32 %v4537_v20, %v2362_v32  ;;  %v2365_v53 = vadd.f32 %v2364_v54, %v2213_v39  ;;  %v3516_v25 = vpop.f32.mrb[143].mxu1  ;;  %v3614_v4 = vpop.f32.mrb[143].mxu0 }
 0x216   : > { %v3517_v6 = vadd.f32 %v3516_v25, %v3515_v11  ;;  %v2218_v28 = vadd.f32 %v3514_v51, %v4526_v62 }
 0x217   : > { %3097 = vst [vmem:[%s4554_s11 + $0x58] sm:$0xff] %v3075_v2   ;;  %v2446_v58 = vadd.f32 %v4542_v59, %v2412_v17  ;;  %v2413_v63 = vmul.f32 %v4537_v20, %v2365_v53 }
 0x218   : > { %v2221_v61 = vadd.f32 %v3517_v6, %v4528_v55 }
 0x219   : > { %v2447_v19 = vadd.f32 %v4542_v59, %v2413_v63  ;;  %v2475_v40 = vmax.f32 %v2446_v58, 0.0 }
 0x21a   : > { %v3518_v44 = vpop.f32.mrb[144].mxu1  ;;  %v2369_v12 = vpop.f32.mrb[144].mxu0 }
 0x21b   : > { %v2476_v8 = vmax.f32 %v2447_v19, 0.0  ;;  %v2370_v52 = vadd.f32 %v2369_v12, %v2218_v28  ;;  %v3519_v15 = vpop.f32.mrb[145].mxu1  ;;  %v3617_v1 = vpop.f32.mrb[145].mxu0 }
 0x21c   : > { %v3520_v7 = vadd.f32 %v3519_v15, %v3518_v44  ;;  %v2372_v50 = vpop.f32.mrb[146].mxu0  ;;  %v3521_v62 = vpop.f32.mrb[146].mxu1 }
 0x21d   : > { %v3080_v47 = vpack.c.bf16 %v2476_v8, %v2475_v40  ;;  %v2414_v10 = vmul.f32 %v4537_v20, %v2370_v52  ;;  %v2373_v24 = vadd.f32 %v2372_v50, %v2221_v61  ;;  %v3618_v16 = vpop.f32.mrb[147].mxu0  ;;  %v3522_v55 = vpop.f32.mrb[147].mxu1 }
 0x21e   : > { %v2226_v56 = vadd.f32 %v3520_v7, %v4530_v13 }
 0x21f   : > { %3098 = vst [vmem:[%s4554_s11 + $0x60] sm:$0xff] %v3080_v47   ;;  %v2448_v38 = vadd.f32 %v4542_v59, %v2414_v10  ;;  %v2415_v14 = vmul.f32 %v4537_v20, %v2373_v24 }
 0x221   : > { %v2449_v21 = vadd.f32 %v4542_v59, %v2415_v14  ;;  %v2477_v42 = vmax.f32 %v2448_v38, 0.0 }
 0x222   : > { %v2377_v27 = vpop.f32.mrb[148].mxu0 }
 0x223   : > { %v2478_v23 = vmax.f32 %v2449_v21, 0.0  ;;  %v2378_v60 = vadd.f32 %v2377_v27, %v2226_v56  ;;  %v3621_v26 = vpop.f32.mrb[149].mxu0 }
 0x224   : > { %v2380_v34 = vpop.f32.mrb[150].mxu0 }
 0x225   : > { %v3085_v33 = vpack.c.bf16 %v2478_v23, %v2477_v42  ;;  %v2416_v49 = vmul.f32 %v4537_v20, %v2378_v60  ;;  %v3622_v31 = vpop.f32.mrb[151].mxu0 }
 0x227   : > { %3099 = vst [vmem:[%s4554_s11 + $0x68] sm:$0xff] %v3085_v33   ;;  %v2450_v13 = vadd.f32 %v4542_v59, %v2416_v49 }
 0x229   : > { %v2479_v36 = vmax.f32 %v2450_v13, 0.0 }
 0x22b   : > { %v3016_v0 = vpack.c.bf16 %v2479_v36, %v2479_v36 }
 0x22d   : > { %v2629_v5 = vsel %vm2627_vm3, %v3016_v0, %v2628_v41 }
 0x22e   : > { %2630 = vst [vmem:[%s4554_s11 + $0x70] sm:$0x1] %v2629_v5 }
 0x22f PF: > { %s13_s14 = sadd.s32 1, %s3952_s14   ;;  %s4664_s12 = smov %s3948_s13 }
 0x230   : > { %p10_p5 = scmp.ge.s32.totalorder %s13_s14, 4   ;;  %s4665_s13 = smov %s4667_s15 }
 0x232   :  { %12 = sbr.rel (!%p10_p5) target bundleno = 2 (0x2), region = 68 }

// kernel: _lambda_.10
= control target key start
LH: loop header
LB: loop body
LE: loop exit
PB: predicated region body
PF: predicated region fallthrough
CT: control target
= control target key end

     0   :  { %s755_s15 = smov 0   ;;  %s927_s0 = inlined_call_operand.vmem [shape: bf16[2,8,8,128], index: 0, kind: input, shape index: {}]   ;;  %s928_s1 = inlined_call_operand.vmem [shape: bf16[2,8,7,128], index: 1, kind: input, shape index: {}]   ;;  %s929_s2 = inlined_call_operand.vmem [shape: bf16[2,7,8,128], index: 2, kind: input, shape index: {}]   ;;  %s930_s3 = inlined_call_operand.vmem [shape: bf16[2,7,7,128], index: 3, kind: input, shape index: {}]   ;;  %s931_s4 = inlined_call_operand.vmem [shape: bf16[2,7,7,128], index: 4, kind: output, shape index: {}]  }
   0x1 LB: > { %s683_s16 = sadd.s32 4294967295, %s728_s15   ;;  %p687_p0 = scmp.ge.s32.totalorder %s728_s15, 1  ;;  %s728_s15 = sphi %s755_s15, %s14_s15  }
   0x2   : > { %p192_p1 = scmp.lt.s32.totalorder %s728_s15, 3 }
   0x4   : > { %p193_p2 = pnand %p687_p0, %p192_p1 }
   0x5   : > { %p233_p3 = scmp.lt.s32.totalorder (!%p193_p2), %s683_s16, 1  ;;  %vm568_vm0 = vcmask (!%p193_p2), 1043456   ;;  %vm569_vm1 = vsmask.f32 (!%p193_p2), 3328 }
   0x6   : > { %196 = sbr.rel (%p193_p2) target bundleno = 77 (0x4d), region = 36  ;;  %vm838_vm2 = vmand (!%p193_p2), %vm568_vm0, %vm569_vm1 }
   0xd   : > { %s935_s16 = smov (!%p233_p3, %s683_s16), 1 }
   0xe   : > { %s711_s17 = sshll.u32 %s935_s16, 5  ;;  %s763_s18 = smul.u32 28, %s935_s16 }
   0xf   : > { %s768_s21 = scalar_lea.vmem %s927_s0, %s711_s17  ;;  %s773_s24 = scalar_lea.vmem %s928_s1, %s711_s17 }
  0x10   : > { %s779_s27 = scalar_lea.vmem %s929_s2, %s763_s18  ;;  %v258_v0 = vld [vmem:[%s768_s21] sm:$0xf]  ;;  %v783_v1 = vld [vmem:[%s768_s21 + $0x4] sm:$0xf]  ;;  %v793_v26 = vld [vmem:[%s768_s21 + $0x8] sm:$0xf]  ;;  %s799_s30 = scalar_lea.vmem %s930_s3, %s763_s18 }
  0x11   : > { %v280_v2 = vshrl.u32 %v258_v0, 16  ;;  %v283_v3 = vshll.u32 %v258_v0, 16  ;;  %v356_v4 = vld [vmem:[%s779_s27] sm:$0xf]  ;;  %v492_v8 = vshrl.u32 %v783_v1, 16  ;;  %v495_v9 = vshll.u32 %v783_v1, 16  ;;  %s826_s7 = scalar_lea.vmem %s931_s4, %s763_s18 }
  0x12   : > { %v265_v5 = vld [vmem:[%s773_s24] sm:$0xf]  ;;  %v385_v6 = vshrl.u32 %v356_v4, 16  ;;  %v388_v7 = vshll.u32 %v356_v4, 16  ;;  %v259_v12 = vld [vmem:[%s768_s21 + $0x4] sm:$0xf] }
  0x13   : > { %v282_v10 = vrot.slane %v280_v2, 4  ;;  %v285_v11 = vrot.slane %v283_v3, 5  ;;  %v494_v15 = vrot.slane %v492_v8, 4  ;;  %v497_v16 = vrot.slane %v495_v9, 5  ;;  %v266_v19 = vld [vmem:[%s773_s24 + $0x4] sm:$0xf] }
  0x14   : > { %v387_v13 = vrot.slane %v385_v6, 4  ;;  %v390_v14 = vrot.slane %v388_v7, 5  ;;  %v272_v17 = vmax.bf16 %v265_v5, %v258_v0  ;;  %v289_v20 = vshrl.u32 %v259_v12, 16  ;;  %v357_v22 = vld [vmem:[%s779_s27 + $0x4] sm:$0xf] }
  0x15   : > { %v286_v18 = vor.u32 %v285_v11, %v282_v10  ;;  %v292_v21 = vshll.u32 %v259_v12, 16  ;;  %v394_v24 = vshrl.u32 %v357_v22, 16  ;;  %v397_v25 = vshll.u32 %v357_v22, 16  ;;  %v260_v35 = vld [vmem:[%s768_s21 + $0x8] sm:$0xf] }
  0x16   : > { %v391_v23 = vor.u32 %v390_v14, %v387_v13  ;;  %v291_v28 = vrot.slane %v289_v20, 4  ;;  %v501_v30 = vshrl.u32 %v793_v26, 16  ;;  %v498_v31 = vor.u32 %v497_v16, %v494_v15  ;;  %v267_v40 = vld [vmem:[%s773_s24 + $0x8] sm:$0xf]  ;;  %v370_v42 = vld [vmem:[%s799_s30] sm:$0xf] }
  0x17   : > { %v287_v27 = vrot.slane %v286_v18, 4  ;;  %v294_v29 = vrot.slane %v292_v21, 5  ;;  %v273_v32 = vmax.bf16 %v266_v19, %v259_v12  ;;  %v396_v33 = vrot.slane %v394_v24, 4  ;;  %v806_v41 = vld [vmem:[%s779_s27 + $0x8] sm:$0xf] }
  0x18   : > { %v399_v34 = vrot.slane %v397_v25, 5  ;;  %v503_v38 = vrot.slane %v501_v30, 4  ;;  %v504_v39 = vshll.u32 %v793_v26, 16  ;;  %v392_v43 = vrot.slane %v391_v23, 4  ;;  %v811_v51 = vld [vmem:[%s768_s21 + $0xc] sm:$0xf] }
  0x19   : > { %v349_v36 = vmax.bf16 %v287_v27, %v272_v17  ;;  %v295_v37 = vor.u32 %v294_v29, %v291_v28  ;;  %v298_v45 = vshrl.u32 %v260_v35, 16  ;;  %v301_v46 = vshll.u32 %v260_v35, 16  ;;  %v371_v58 = vld [vmem:[%s799_s30 + $0x4] sm:$0xf]  ;;  %v268_v61 = vld [vmem:[%s773_s24 + $0xc] sm:$0xf] }
  0x1a   : > { %v400_v44 = vor.u32 %v399_v34, %v396_v33  ;;  %v506_v49 = vrot.slane %v504_v39, 5  ;;  %v403_v50 = vshrl.u32 %v806_v41, 16  ;;  %v274_v52 = vmax.bf16 %v267_v40, %v260_v35  ;;  %v261_v3 = vld [vmem:[%s768_s21 + $0xc] sm:$0xf]  ;;  %v702_v9 = vld [vmem:[%s773_s24 + $0x4] sm:$0xf] }
  0x1b   : > { %v363_v47 = vmax.bf16 %v356_v4, %v349_v36  ;;  %v296_v48 = vrot.slane %v295_v37, 4  ;;  %v300_v53 = vrot.slane %v298_v45, 4  ;;  %v303_v54 = vrot.slane %v301_v46, 5  ;;  %v820_v8 = vld [vmem:[%s779_s27 + $0xc] sm:$0xf] }
  0x1c   : > { %v406_v55 = vshll.u32 %v806_v41, 16  ;;  %v507_v59 = vor.u32 %v506_v49, %v503_v38  ;;  %v405_v60 = vrot.slane %v403_v50, 4  ;;  %v510_v0 = vshrl.u32 %v811_v51, 16  ;;  %v571_v24 = vld [vmem:[%s826_s7] sm:$0xf] }
  0x1d   : > { %v377_v56 = vmax.bf16 %v370_v42, %v363_v47  ;;  %v350_v57 = vmax.bf16 %v296_v48, %v273_v32  ;;  %v304_v62 = vor.u32 %v303_v54, %v300_v53  ;;  %v513_v2 = vshll.u32 %v811_v51, 16  ;;  %v372_v27 = vld [vmem:[%s799_s30 + $0x8] sm:$0xf]  ;;  %v848_v39 = vld [vmem:[%s768_s21 + $0x10] sm:$0xf] }
  0x1e   : > { %v408_v63 = vrot.slane %v406_v55, 5  ;;  %v499_v5 = vrot.slane %v498_v31, 4  ;;  %v401_v7 = vrot.slane %v400_v44, 4  ;;  %v508_v10 = vrot.slane %v507_v59, 4  ;;  %v703_v30 = vld [vmem:[%s773_s24 + $0x8] sm:$0xf] }
  0x1f   : > { %v454_v4 = vmax.bf16 %v392_v43, %v377_v56  ;;  %v364_v6 = vmax.bf16 %v357_v22, %v350_v57  ;;  %v305_v11 = vrot.slane %v304_v62, 4  ;;  %v275_v13 = vmax.bf16 %v268_v61, %v261_v3  ;;  %v832_v22 = vld [vmem:[%s768_s21 + $0x10] sm:$0xf]  ;;  %v574_v49 = vld [vmem:[%s826_s7 + $0x4] sm:$0xf] }
  0x20   : > { %v409_v12 = vor.u32 %v408_v63, %v405_v60  ;;  %v307_v16 = vshrl.u32 %v261_v3, 16  ;;  %v310_v17 = vshll.u32 %v261_v3, 16  ;;  %v512_v19 = vrot.slane %v510_v0, 4  ;;  %v852_v44 = vld [vmem:[%s779_s27 + $0x10] sm:$0xf] }
  0x21   : > { %v469_v14 = vmax.bf16 %v783_v1, %v454_v4  ;;  %v378_v15 = vmax.bf16 %v371_v58, %v364_v6  ;;  %v351_v18 = vmax.bf16 %v305_v11, %v274_v52  ;;  %v515_v20 = vrot.slane %v513_v2, 5  ;;  %v269_v48 = vld [vmem:[%s773_s24 + $0x10] sm:$0xf]  ;;  %v704_v56 = vld [vmem:[%s773_s24 + $0xc] sm:$0xf] }
  0x22   : > { %v412_v21 = vshrl.u32 %v820_v8, 16  ;;  %v309_v28 = vrot.slane %v307_v16, 4  ;;  %v312_v29 = vrot.slane %v310_v17, 5  ;;  %v410_v32 = vrot.slane %v409_v12, 4  ;;  %v864_v60 = vld [vmem:[%s768_s21 + $0x14] sm:$0xf] }
  0x23   : > { %v484_v23 = vmax.bf16 %v702_v9, %v469_v14  ;;  %v455_v25 = vmax.bf16 %v401_v7, %v378_v15  ;;  %v365_v31 = vmax.bf16 %v806_v41, %v351_v18  ;;  %v415_v34 = vshll.u32 %v820_v8, 16  ;;  %v373_v63 = vld [vmem:[%s799_s30 + $0xc] sm:$0xf]  ;;  %v263_v7 = vld [vmem:[%s768_s21 + $0x14] sm:$0xf] }
  0x24   : > { %v414_v33 = vrot.slane %v412_v21, 4  ;;  %v313_v37 = vor.u32 %v312_v29, %v309_v28  ;;  %v519_v38 = vshrl.u32 %v832_v22, 16  ;;  %v516_v42 = vor.u32 %v515_v20, %v512_v19  ;;  %v577_v12 = vld [vmem:[%s826_s7 + $0x8] sm:$0xf]  ;;  %v270_v20 = vld [vmem:[%s773_s24 + $0x14] sm:$0xf] }
  0x25   : > { %v561_v35 = vmax.bf16 %v499_v5, %v484_v23  ;;  %v470_v36 = vmax.bf16 %v793_v26, %v455_v25  ;;  %v379_v40 = vmax.bf16 %v372_v27, %v365_v31  ;;  %v417_v43 = vrot.slane %v415_v34, 5  ;;  %v883_v28 = vld [vmem:[%s768_s21 + $0x18] sm:$0xf] }
  0x26   : > { %v522_v41 = vshll.u32 %v832_v22, 16  ;;  %v314_v47 = vrot.slane %v313_v37, 4  ;;  %v521_v26 = vrot.slane %v519_v38, 4  ;;  %v316_v54 = vshrl.u32 %v848_v39, 16  ;;  %v374_v37 = vld [vmem:[%s799_s30 + $0x10] sm:$0xf] }
  0x27   : > { %v572_v45 = vsel %vm838_vm2, %v561_v35, %v571_v24  ;;  %v485_v46 = vmax.bf16 %v703_v30, %v470_v36  ;;  %v456_v50 = vmax.bf16 %v410_v32, %v379_v40  ;;  %v418_v52 = vor.u32 %v417_v43, %v414_v33  ;;  %v705_v30 = vld [vmem:[%s773_s24 + $0x10] sm:$0xf] }
  0x28   : > { %573 = vst [vmem:[%s826_s7] sm:$0xf] %v572_v45  ;;  %v524_v53 = vrot.slane %v522_v41, 5  ;;  %v352_v57 = vmax.bf16 %v314_v47, %v275_v13  ;;  %v319_v58 = vshll.u32 %v848_v39, 16  ;;  %v421_v59 = vshrl.u32 %v852_v44, 16  ;;  %v264_v41 = vld [vmem:[%s768_s21 + $0x18] sm:$0xf] }
  0x29   : > { %v562_v55 = vmax.bf16 %v508_v10, %v485_v46  ;;  %v471_v61 = vmax.bf16 %v811_v51, %v456_v50  ;;  %v517_v62 = vrot.slane %v516_v42, 4  ;;  %v276_v0 = vmax.bf16 %v269_v48, %v848_v39  ;;  %v362_v48 = vld [vmem:[%s779_s27 + $0x18] sm:$0xf] }
  0x2a   : > { %v318_v2 = vrot.slane %v316_v54, 4  ;;  %v366_v4 = vmax.bf16 %v820_v8, %v352_v57  ;;  %v419_v5 = vrot.slane %v418_v52, 4  ;;  %v321_v6 = vrot.slane %v319_v58, 5  ;;  %v879_v8 = vld [vmem:[%s779_s27 + $0x14] sm:$0xf] }
  0x2b   : > { %v575_v3 = vsel %vm838_vm2, %v562_v55, %v574_v49  ;;  %v486_v9 = vmax.bf16 %v704_v56, %v471_v61  ;;  %v423_v10 = vrot.slane %v421_v59, 4  ;;  %v424_v51 = vshll.u32 %v852_v44, 16  ;;  %v580_v49 = vld [vmem:[%s826_s7 + $0xc] sm:$0xf]  ;;  %v706_v58 = vld [vmem:[%s773_s24 + $0x14] sm:$0xf] }
  0x2c   : > { %576 = vst [vmem:[%s826_s7 + $0x4] sm:$0xf] %v575_v3  ;;  %v528_v11 = vshrl.u32 %v864_v60, 16  ;;  %v380_v13 = vmax.bf16 %v373_v63, %v366_v4  ;;  %v525_v14 = vor.u32 %v524_v53, %v521_v26  ;;  %v322_v15 = vor.u32 %v321_v6, %v318_v2  ;;  %v271_v3 = vld [vmem:[%s773_s24 + $0x18] sm:$0xf] }
  0x2d   : > { %v531_v16 = vshll.u32 %v864_v60, 16  ;;  %v563_v17 = vmax.bf16 %v517_v62, %v486_v9  ;;  %v426_v18 = vrot.slane %v424_v51, 5  ;;  %v325_v21 = vshrl.u32 %v263_v7, 16 }
  0x2e   : > { %v530_v19 = vrot.slane %v528_v11, 4  ;;  %v457_v23 = vmax.bf16 %v419_v5, %v380_v13  ;;  %v323_v24 = vrot.slane %v322_v15, 4  ;;  %v328_v27 = vshll.u32 %v263_v7, 16  ;;  %v701_v5 = vld [vmem:[%s768_s21 + $0x1c] sm:$0xf] }
  0x2f   : > { %v533_v25 = vrot.slane %v531_v16, 5  ;;  %v578_v29 = vsel %vm838_vm2, %v563_v17, %v577_v12  ;;  %v427_v31 = vor.u32 %v426_v18, %v423_v10  ;;  %v327_v32 = vrot.slane %v325_v21, 4 }
  0x30   : > { %v430_v33 = vshrl.u32 %v879_v8, 16  ;;  %579 = vst [vmem:[%s826_s7 + $0x8] sm:$0xf] %v578_v29  ;;  %v472_v34 = vmax.bf16 %v832_v22, %v457_v23  ;;  %v526_v35 = vrot.slane %v525_v14, 4  ;;  %v353_v36 = vmax.bf16 %v323_v24, %v276_v0  ;;  %v583_v23 = vld [vmem:[%s826_s7 + $0x10] sm:$0xf] }
  0x31   : > { %v330_v38 = vrot.slane %v328_v27, 5  ;;  %v277_v39 = vmax.bf16 %v270_v20, %v263_v7  ;;  %v433_v42 = vshll.u32 %v879_v8, 16  ;;  %v537_v43 = vshrl.u32 %v883_v28, 16  ;;  %v375_v7 = vld [vmem:[%s799_s30 + $0x14] sm:$0xf] }
  0x32   : > { %v432_v40 = vrot.slane %v430_v33, 4  ;;  %v487_v45 = vmax.bf16 %v705_v30, %v472_v34  ;;  %v367_v46 = vmax.bf16 %v852_v44, %v353_v36  ;;  %v428_v47 = vrot.slane %v427_v31, 4 }
  0x33   : > { %v331_v26 = vor.u32 %v330_v38, %v327_v32  ;;  %v534_v22 = vor.u32 %v533_v25, %v530_v19  ;;  %v435_v50 = vrot.slane %v433_v42, 5  ;;  %v539_v52 = vrot.slane %v537_v43, 4 }
  0x34   : > { %v540_v53 = vshll.u32 %v883_v28, 16  ;;  %v564_v54 = vmax.bf16 %v526_v35, %v487_v45  ;;  %v381_v55 = vmax.bf16 %v374_v37, %v367_v46  ;;  %v334_v57 = vshrl.u32 %v264_v41, 16  ;;  %v376_v35 = vld [vmem:[%s799_s30 + $0x18] sm:$0xf]  ;;  %v708_v46 = vld [vmem:[%s773_s24 + $0x1c] sm:$0xf] }
  0x35   : > { %v332_v56 = vrot.slane %v331_v26, 4  ;;  %v436_v59 = vor.u32 %v435_v50, %v432_v40  ;;  %v337_v61 = vshll.u32 %v264_v41, 16  ;;  %v439_v62 = vshrl.u32 %v362_v48, 16 }
  0x36   : > { %v542_v44 = vrot.slane %v540_v53, 5  ;;  %v581_v63 = vsel %vm838_vm2, %v564_v54, %v580_v49  ;;  %v458_v0 = vmax.bf16 %v428_v47, %v381_v55  ;;  %v336_v4 = vrot.slane %v334_v57, 4  ;;  %v589_v49 = vld [vmem:[%s826_s7 + $0x18] sm:$0xf] }
  0x37   : > { %v354_v2 = vmax.bf16 %v332_v56, %v277_v39  ;;  %582 = vst [vmem:[%s826_s7 + $0xc] sm:$0xf] %v581_v63  ;;  %v535_v6 = vrot.slane %v534_v22, 4  ;;  %v437_v9 = vrot.slane %v436_v59, 4  ;;  %v339_v10 = vrot.slane %v337_v61, 5 }
  0x38   : > { %v473_v51 = vmax.bf16 %v864_v60, %v458_v0  ;;  %v441_v12 = vrot.slane %v439_v62, 4  ;;  %v442_v13 = vshll.u32 %v362_v48, 16  ;;  %v278_v14 = vmax.bf16 %v271_v3, %v264_v41  ;;  %v586_v39 = vld [vmem:[%s826_s7 + $0x14] sm:$0xf] }
  0x39   : > { %v368_v11 = vmax.bf16 %v879_v8, %v354_v2  ;;  %v340_v15 = vor.u32 %v339_v10, %v336_v4  ;;  %v546_v16 = vshrl.u32 %v701_v5, 16  ;;  %v549_v17 = vshll.u32 %v701_v5, 16  ;;  %v707_v8 = vld [vmem:[%s773_s24 + $0x18] sm:$0xf] }
  0x3a   : > { %v488_v18 = vmax.bf16 %v706_v58, %v473_v51  ;;  %v543_v20 = vor.u32 %v542_v44, %v539_v52  ;;  %v444_v21 = vrot.slane %v442_v13, 5 }
  0x3b   : > { %v382_v19 = vmax.bf16 %v375_v7, %v368_v11  ;;  %v341_v24 = vrot.slane %v340_v15, 4  ;;  %v548_v30 = vrot.slane %v546_v16, 4  ;;  %v551_v31 = vrot.slane %v549_v17, 5 }
  0x3c   : > { %v565_v25 = vmax.bf16 %v535_v6, %v488_v18  ;;  %v445_v27 = vor.u32 %v444_v21, %v441_v12  ;;  %v544_v34 = vrot.slane %v543_v20, 4 }
  0x3d   : > { %v459_v60 = vmax.bf16 %v437_v9, %v382_v19  ;;  %v355_v29 = vmax.bf16 %v341_v24, %v278_v14  ;;  %v552_v42 = vor.u32 %v551_v31, %v548_v30 }
  0x3e   : > { %v584_v32 = vsel %vm838_vm2, %v565_v25, %v583_v23  ;;  %v446_v37 = vrot.slane %v445_v27, 4 }
  0x3f   : > { %v474_v33 = vmax.bf16 %v883_v28, %v459_v60  ;;  %585 = vst [vmem:[%s826_s7 + $0x10] sm:$0xf] %v584_v32  ;;  %v369_v36 = vmax.bf16 %v362_v48, %v355_v29  ;;  %v553_v28 = vrot.slane %v552_v42, 4 }
  0x41   : > { %v489_v38 = vmax.bf16 %v707_v8, %v474_v33  ;;  %v383_v40 = vmax.bf16 %v376_v35, %v369_v36 }
  0x43   : > { %v566_v43 = vmax.bf16 %v544_v34, %v489_v38  ;;  %v460_v41 = vmax.bf16 %v446_v37, %v383_v40 }
  0x45   : > { %v587_v45 = vsel %vm838_vm2, %v566_v43, %v586_v39  ;;  %v475_v47 = vmax.bf16 %v701_v5, %v460_v41 }
  0x46   : > { %588 = vst [vmem:[%s826_s7 + $0x14] sm:$0xf] %v587_v45 }
  0x47   : > { %v490_v26 = vmax.bf16 %v708_v46, %v475_v47 }
  0x49   : > { %v567_v22 = vmax.bf16 %v553_v28, %v490_v26 }
  0x4b   : > { %v590_v48 = vsel %vm838_vm2, %v567_v22, %v589_v49 }
  0x4c   : > { %591 = vst [vmem:[%s826_s7 + $0x18] sm:$0xf] %v590_v48 }
  0x4d PF: > { %s14_s15 = sadd.s32 1, %s728_s15  }
  0x4e   : > { %p11_p4 = scmp.ge.s32.totalorder %s14_s15, 4  }
  0x50   :  { %13 = sbr.rel (!%p11_p4) target bundleno = 1 (0x1), region = 77 }

// kernel: _lambda_.11
= control target key start
LH: loop header
LB: loop body
LE: loop exit
PB: predicated region body
PF: predicated region fallthrough
CT: control target
= control target key end

     0   :  { %s752_s12 = smov 0   ;;  %s754_s13 = smov 0   ;;  %s829_s0 = inlined_call_operand.vmem [shape: bf16[2,49,128], index: 0, kind: input, shape index: {}]   ;;  %s830_s1 = inlined_call_operand.vmem [shape: bf16[128,128], index: 1, kind: input, shape index: {}]   ;;  %s831_s2 = inlined_call_operand.vmem [shape: f32[2,128], index: 2, kind: input, shape index: {}]   ;;  %s832_s3 = inlined_call_operand.vmem [shape: bf16[2,49,128], index: 3, kind: output, shape index: {}]  }
   0x1   :  { %s756_s14 = smov 0  }
   0x2 LB: > { %s25_s15 = sadd.s32 1, %s726_s13  ;;  %p569_p0 = scmp.ge.s32.totalorder %s730_s14, 1  ;;  %s730_s14 = sphi %s756_s14, %s13_s14   ;;  %s726_s13 = sphi %s754_s13, %s834_s13   ;;  %s722_s12 = sphi %s752_s12, %s833_s12  }
   0x3   : > { %p27_p1 = scmp.ge.s32.totalorder %s25_s15, 2  ;;  %p169_p2 = scmp.lt.s32.totalorder %s730_s14, 3 }
   0x5   : > { %s836_s15 = smov (%p27_p1, %s25_s15), 0  ;;  %p170_p3 = pnand %p569_p0, %p169_p2 }
   0x6   : > { %v696_v0 = vld [vmem:[%s830_s1] sm:$0xff] (!%p170_p3)   ;;  %p204_p4 = scmp.lt.s32.totalorder (!%p170_p3), %s722_s12, 1  ;;  %v697_v1 = vld [vmem:[%s830_s1 + $0x8] sm:$0xff] (!%p170_p3)   ;;  %v698_v2 = vld [vmem:[%s830_s1 + $0x10] sm:$0xff] (!%p170_p3)   ;;  %vm449_vm0 = vcmask (!%p170_p3), 1040384  }
   0x7   : > { %173 = sbr.rel (%p170_p3) target bundleno = 263 (0x107), region = 32  ;;  %631 = vmatprep.subr.bf16.mxu0 (!%p170_p3), %v696_v0  ;;  %655 = vmatprep.subr.bf16.mxu1 (!%p170_p3), %v696_v0  ;;  %v699_v3 = vld [vmem:[%s830_s1 + $0x18] sm:$0xff] (!%p170_p3)   ;;  %v700_v6 = vld [vmem:[%s830_s1 + $0x20] sm:$0xff] (!%p170_p3)   ;;  %v701_v7 = vld [vmem:[%s830_s1 + $0x28] sm:$0xff] (!%p170_p3)   ;;  %vm450_vm1 = vsmask.f32 (!%p170_p3), 256 }
   0x8   : > { %632 = vmatpush3.bf16.msra.mxu0 (!%p170_p3), %v696_v0  ;;  %663 = vmatpush3.bf16.msra.mxu1 (!%p170_p3), %v696_v0  ;;  %v702_v8 = vld [vmem:[%s830_s1 + $0x30] sm:$0xff] (!%p170_p3)   ;;  %v703_v9 = vld [vmem:[%s830_s1 + $0x38] sm:$0xff] (!%p170_p3)   ;;  %v584_v12 = vld [vmem:[%s831_s2] ss:$0 sm:$0xff] (!%p170_p3) }
   0x9   : > { %633 = vmatprep.subr.bf16.mxu0 (!%p170_p3), %v697_v1  ;;  %656 = vmatprep.subr.bf16.mxu1 (!%p170_p3), %v697_v1  ;;  %v585_v14 = vld [vmem:[%s831_s2 + $0x1] ss:$0 sm:$0xff] (!%p170_p3)  ;;  %vm451_vm2 = vmand (!%p170_p3), %vm449_vm0, %vm450_vm1 }
   0xc   : > { %634 = vmatpush3.bf16.msra.mxu0 (!%p170_p3), %v697_v1  ;;  %664 = vmatpush3.bf16.msra.mxu1 (!%p170_p3), %v697_v1 }
   0xd   : > { %635 = vmatprep.subr.bf16.mxu0 (!%p170_p3), %v698_v2  ;;  %657 = vmatprep.subr.bf16.mxu1 (!%p170_p3), %v698_v2 }
   0xe   : > { %s838_s12 = smov (!%p204_p4, %s722_s12), 1 }
   0xf   : > { %s671_s22 = smul.u32 28, %s838_s12 }
  0x10   : > { %636 = vmatpush3.bf16.msra.mxu0 %v698_v2  ;;  %665 = vmatpush3.bf16.msra.mxu1 %v698_v2 }
  0x11   : > { %s787_s25 = scalar_lea.vmem %s829_s0, %s671_s22  ;;  %637 = vmatprep.subr.bf16.mxu0 %v699_v3  ;;  %658 = vmatprep.subr.bf16.mxu1 %v699_v3  ;;  %s224_s19 = scalar_lea.vmem %s832_s3, %s671_s22 }
  0x12   : > { %v704_v4 = vld [vmem:[%s787_s25] sm:$0xff]   ;;  %v705_v5 = vld [vmem:[%s787_s25 + $0x10] sm:$0xff]   ;;  %v706_v10 = vld [vmem:[%s787_s25 + $0x8] sm:$0xff]  }
  0x13   : > { %647 = vmatprep.mubr.bf16.mxu0 %v704_v4  ;;  %651 = vmatprep.mubr.bf16.mxu1 %v705_v5  ;;  %v707_v11 = vld [vmem:[%s787_s25 + $0x18] ss:$0 sps:$4 sm:$0x11]  }
  0x14   : > { %638 = vmatpush3.bf16.msra.mxu0 %v699_v3  ;;  %666 = vmatpush3.bf16.msra.mxu1 %v699_v3  ;;  %v452_v35 = vld [vmem:[%s224_s19 + $0x18] sm:$0x1] }
  0x15   : > { %639 = vmatprep.subr.bf16.mxu0 %v700_v6  ;;  %659 = vmatprep.subr.bf16.mxu1 %v700_v6 }
  0x18   : > { %640 = vmatpush3.bf16.msra.mxu0 %v700_v6  ;;  %667 = vmatpush3.bf16.msra.mxu1 %v700_v6 }
  0x19   : > { %641 = vmatprep.subr.bf16.mxu0 %v701_v7  ;;  %660 = vmatprep.subr.bf16.mxu1 %v701_v7 }
  0x1c   : > { %642 = vmatpush3.bf16.msra.mxu0 %v701_v7  ;;  %668 = vmatpush3.bf16.msra.mxu1 %v701_v7 }
  0x1d   : > { %643 = vmatprep.subr.bf16.mxu0 %v702_v8  ;;  %661 = vmatprep.subr.bf16.mxu1 %v702_v8 }
  0x20   : > { %644 = vmatpush3.bf16.msra.mxu0 %v702_v8  ;;  %669 = vmatpush3.bf16.msra.mxu1 %v702_v8 }
  0x21   : > { %645 = vmatprep.subr.bf16.mxu0 %v703_v9  ;;  %662 = vmatprep.subr.bf16.mxu1 %v703_v9 }
  0x24   : > { %646 = vmatpush3.bf16.msra.mxu0 %v703_v9  ;;  %670 = vmatpush3.bf16.msra.mxu1 %v703_v9 }
  0x27   : > { %648 = vmatmul.mubr.bf16.vlgmr.msra.gmra.mrb[0].mxu0 %v706_v10  ;;  %652 = vmatmul.mubr.bf16.vlgmr.msra.gmra.mrb[0].mxu1 %v707_v11 }
  0xfa   : > { %v649_v13 = vpop.f32.mrb[0].mxu0  ;;  %v653_v15 = vpop.f32.mrb[0].mxu1 }
  0xfb   : > { %v390_v16 = vmul.f32 %v649_v13, %v584_v12  ;;  %v394_v17 = vmul.f32 %v653_v15, %v584_v12  ;;  %v353_v18 = vpop.f32.mrb[1].mxu0  ;;  %v369_v19 = vpop.f32.mrb[1].mxu1 }
  0xfc   : > { %v388_v20 = vmul.f32 %v584_v12, %v353_v18  ;;  %v392_v21 = vmul.f32 %v584_v12, %v369_v19  ;;  %v650_v22 = vpop.f32.mrb[2].mxu0  ;;  %v654_v23 = vpop.f32.mrb[2].mxu1 }
  0xfd   : > { %v402_v24 = vadd.f32 %v585_v14, %v390_v16  ;;  %v406_v25 = vadd.f32 %v585_v14, %v394_v17  ;;  %v391_v26 = vmul.f32 %v650_v22, %v584_v12  ;;  %v356_v27 = vpop.f32.mrb[3].mxu0  ;;  %v372_v28 = vpop.f32.mrb[3].mxu1 }
  0xfe   : > { %v400_v29 = vadd.f32 %v585_v14, %v388_v20  ;;  %v404_v30 = vadd.f32 %v585_v14, %v392_v21  ;;  %v389_v31 = vmul.f32 %v584_v12, %v356_v27  ;;  %v393_v32 = vmul.f32 %v584_v12, %v372_v28 }
  0xff   : > { %v413_v33 = vmax.f32 %v406_v25, 0.0  ;;  %v403_v34 = vadd.f32 %v585_v14, %v391_v26  ;;  %v409_v38 = vmax.f32 %v402_v24, 0.0 }
 0x100   : > { %v401_v36 = vadd.f32 %v585_v14, %v389_v31  ;;  %v405_v37 = vadd.f32 %v585_v14, %v393_v32  ;;  %v407_v41 = vmax.f32 %v400_v29, 0.0  ;;  %v411_v42 = vmax.f32 %v404_v30, 0.0 }
 0x101   : > { %v601_v39 = vpack.c.bf16 %v413_v33, %v413_v33  ;;  %v410_v40 = vmax.f32 %v403_v34, 0.0 }
 0x102   : > { %v408_v43 = vmax.f32 %v401_v36, 0.0  ;;  %v412_v44 = vmax.f32 %v405_v37, 0.0 }
 0x103   : > { %v453_v45 = vsel %vm451_vm2, %v601_v39, %v452_v35  ;;  %v610_v46 = vpack.c.bf16 %v410_v40, %v409_v38 }
 0x104   : > { %454 = vst [vmem:[%s224_s19 + $0x18] sm:$0x1] %v453_v45  ;;  %v605_v47 = vpack.c.bf16 %v408_v43, %v407_v41  ;;  %v615_v48 = vpack.c.bf16 %v412_v44, %v411_v42 }
 0x105   : > { %617 = vst [vmem:[%s224_s19 + $0x8] sm:$0xff] %v610_v46  }
 0x106   : > { %606 = vst [vmem:[%s224_s19] sm:$0xff] %v605_v47   ;;  %618 = vst [vmem:[%s224_s19 + $0x10] sm:$0xff] %v615_v48  }
 0x107 PF: > { %s13_s14 = sadd.s32 1, %s730_s14   ;;  %s833_s12 = smov %s726_s13 }
 0x108   : > { %p10_p5 = scmp.ge.s32.totalorder %s13_s14, 4   ;;  %s834_s13 = smov %s836_s15 }
 0x10a   :  { %12 = sbr.rel (!%p10_p5) target bundleno = 2 (0x2), region = 68 }

// kernel: _lambda_.12
= control target key start
LH: loop header
LB: loop body
LE: loop exit
PB: predicated region body
PF: predicated region fallthrough
CT: control target
= control target key end

     0   :  { %s2222_s12 = smov 0   ;;  %s2224_s13 = smov 0   ;;  %s2731_s0 = inlined_call_operand.vmem [shape: bf16[2,25,1152], index: 0, kind: input, shape index: {}]   ;;  %s2732_s1 = inlined_call_operand.vmem [shape: bf16[1152,256], index: 1, kind: input, shape index: {}]   ;;  %s2733_s2 = inlined_call_operand.vmem [shape: f32[2,256], index: 2, kind: input, shape index: {}]   ;;  %s2734_s3 = inlined_call_operand.vmem [shape: bf16[2,25,256], index: 3, kind: output, shape index: {}]  }
   0x1   :  { %s2226_s14 = smov 0  }
   0x2 LB: > { %s25_s15 = sadd.s32 1, %s2195_s13  ;;  %p1683_p0 = scmp.ge.s32.totalorder %s2199_s14, 1  ;;  %s2199_s14 = sphi %s2226_s14, %s13_s14   ;;  %s2195_s13 = sphi %s2224_s13, %s2738_s13   ;;  %s2191_s12 = sphi %s2222_s12, %s2737_s12  }
   0x3   : > { %p27_p1 = scmp.ge.s32.totalorder %s25_s15, 2  ;;  %p173_p2 = scmp.lt.s32.totalorder %s2199_s14, 3 }
   0x5   : > { %s2740_s15 = smov (%p27_p1, %s25_s15), 0  ;;  %p174_p3 = pnand %p1683_p0, %p173_p2 }
   0x6   : > { %v1935_v0 = vld [vmem:[%s2732_s1 + $0x4] ss:$8 sps:$4 sm:$0xff] (!%p174_p3)   ;;  %v1939_v2 = vld [vmem:[%s2732_s1] ss:$8 sps:$4 sm:$0xff] (!%p174_p3)   ;;  %v1941_v4 = vld [vmem:[%s2732_s1 + $0x14] ss:$8 sps:$4 sm:$0xff] (!%p174_p3)  }
   0x7   : > { %177 = sbr.rel (%p174_p3) target bundleno = 394 (0x18a), region = 32  ;;  %v1937_v1 = vld [vmem:[%s2732_s1 + $0x204] ss:$8 sps:$4 sm:$0xff] (!%p174_p3)   ;;  %1215 = vmatprep.subr.bf16.mxu1 (!%p174_p3), %v1935_v0  ;;  %v1940_v3 = vld [vmem:[%s2732_s1 + $0x200] ss:$8 sps:$4 sm:$0xff] (!%p174_p3)   ;;  %p211_p4 = scmp.lt.s32.totalorder (!%p174_p3), %s2191_s12, 1 }
   0x8   : > { %1321 = vmatprep.subr.bf16.mxu0 (!%p174_p3), %v1937_v1  ;;  %1216 = vmatpush1.bf16.msra.mxu1 (!%p174_p3), %v1939_v2  ;;  %v1943_v5 = vld [vmem:[%s2732_s1 + $0x214] ss:$8 sps:$4 sm:$0xff] (!%p174_p3)   ;;  %v1945_v6 = vld [vmem:[%s2732_s1 + $0x10] ss:$8 sps:$4 sm:$0xff] (!%p174_p3)   ;;  %v1947_v8 = vld [vmem:[%s2732_s1 + $0x24] ss:$8 sps:$4 sm:$0xff] (!%p174_p3)  }
   0x9   : > { %1322 = vmatpush1.bf16.msra.mxu0 (!%p174_p3), %v1940_v3  ;;  %1217 = vmatprep.subr.bf16.mxu1 (!%p174_p3), %v1941_v4  ;;  %v1946_v7 = vld [vmem:[%s2732_s1 + $0x210] ss:$8 sps:$4 sm:$0xff] (!%p174_p3)   ;;  %v1949_v9 = vld [vmem:[%s2732_s1 + $0x224] ss:$8 sps:$4 sm:$0xff] (!%p174_p3)   ;;  %v1951_v10 = vld [vmem:[%s2732_s1 + $0x20] ss:$8 sps:$4 sm:$0xff] (!%p174_p3)  }
   0xa   : > { %1323 = vmatprep.subr.bf16.mxu0 (!%p174_p3), %v1943_v5  ;;  %v1952_v11 = vld [vmem:[%s2732_s1 + $0x220] ss:$8 sps:$4 sm:$0xff] (!%p174_p3)   ;;  %v1953_v12 = vld [vmem:[%s2732_s1 + $0x34] ss:$8 sps:$4 sm:$0xff] (!%p174_p3)   ;;  %v1957_v14 = vld [vmem:[%s2732_s1 + $0x30] ss:$8 sps:$4 sm:$0xff] (!%p174_p3)  }
   0xb   : > { %v1955_v13 = vld [vmem:[%s2732_s1 + $0x234] ss:$8 sps:$4 sm:$0xff] (!%p174_p3)   ;;  %v1958_v15 = vld [vmem:[%s2732_s1 + $0x230] ss:$8 sps:$4 sm:$0xff] (!%p174_p3)   ;;  %v1959_v16 = vld [vmem:[%s2732_s1 + $0x44] ss:$8 sps:$4 sm:$0xff] (!%p174_p3)  }
   0xc   : > { %1218 = vmatpush1.bf16.msra.mxu1 (!%p174_p3), %v1945_v6  ;;  %v1961_v17 = vld [vmem:[%s2732_s1 + $0x244] ss:$8 sps:$4 sm:$0xff] (!%p174_p3)   ;;  %v1963_v18 = vld [vmem:[%s2732_s1 + $0x40] ss:$8 sps:$4 sm:$0xff] (!%p174_p3)   ;;  %v1965_v20 = vld [vmem:[%s2732_s1 + $0x54] ss:$8 sps:$4 sm:$0xff] (!%p174_p3)  }
   0xd   : > { %1324 = vmatpush1.bf16.msra.mxu0 (!%p174_p3), %v1946_v7  ;;  %1219 = vmatprep.subr.bf16.mxu1 (!%p174_p3), %v1947_v8  ;;  %v1964_v19 = vld [vmem:[%s2732_s1 + $0x240] ss:$8 sps:$4 sm:$0xff] (!%p174_p3)   ;;  %v1967_v21 = vld [vmem:[%s2732_s1 + $0x254] ss:$8 sps:$4 sm:$0xff] (!%p174_p3)   ;;  %v1969_v22 = vld [vmem:[%s2732_s1 + $0x50] ss:$8 sps:$4 sm:$0xff] (!%p174_p3)  }
   0xe   : > { %1325 = vmatprep.subr.bf16.mxu0 %v1949_v9  ;;  %v1970_v23 = vld [vmem:[%s2732_s1 + $0x250] ss:$8 sps:$4 sm:$0xff]   ;;  %v1971_v24 = vld [vmem:[%s2732_s1 + $0x64] ss:$8 sps:$4 sm:$0xff]   ;;  %v1975_v26 = vld [vmem:[%s2732_s1 + $0x60] ss:$8 sps:$4 sm:$0xff]  }
   0xf   : > { %v1973_v25 = vld [vmem:[%s2732_s1 + $0x264] ss:$8 sps:$4 sm:$0xff]   ;;  %v1976_v27 = vld [vmem:[%s2732_s1 + $0x260] ss:$8 sps:$4 sm:$0xff]   ;;  %v1977_v28 = vld [vmem:[%s2732_s1 + $0x74] ss:$8 sps:$4 sm:$0xff]  }
  0x10   : > { %1220 = vmatpush1.bf16.msra.mxu1 %v1951_v10  ;;  %v1979_v29 = vld [vmem:[%s2732_s1 + $0x274] ss:$8 sps:$4 sm:$0xff]   ;;  %v1981_v30 = vld [vmem:[%s2732_s1 + $0x70] ss:$8 sps:$4 sm:$0xff]   ;;  %v1983_v32 = vld [vmem:[%s2732_s1 + $0x84] ss:$8 sps:$4 sm:$0xff]  }
  0x11   : > { %1326 = vmatpush1.bf16.msra.mxu0 %v1952_v11  ;;  %1221 = vmatprep.subr.bf16.mxu1 %v1953_v12  ;;  %v1982_v31 = vld [vmem:[%s2732_s1 + $0x270] ss:$8 sps:$4 sm:$0xff]   ;;  %v1985_v33 = vld [vmem:[%s2732_s1 + $0x284] ss:$8 sps:$4 sm:$0xff]   ;;  %v1987_v34 = vld [vmem:[%s2732_s1 + $0x80] ss:$8 sps:$4 sm:$0xff]  }
  0x12   : > { %1327 = vmatprep.subr.bf16.mxu0 %v1955_v13  ;;  %v1988_v35 = vld [vmem:[%s2732_s1 + $0x280] ss:$8 sps:$4 sm:$0xff]   ;;  %v1989_v36 = vld [vmem:[%s2732_s1 + $0x94] ss:$8 sps:$4 sm:$0xff]   ;;  %s2742_s12 = smov (!%p211_p4, %s2191_s12), 1  ;;  %vm1556_vm0 = vcmask 1040384  }
  0x13   : > { %v1991_v37 = vld [vmem:[%s2732_s1 + $0x294] ss:$8 sps:$4 sm:$0xff]   ;;  %v1993_v38 = vld [vmem:[%s2732_s1 + $0x90] ss:$8 sps:$4 sm:$0xff]   ;;  %v1995_v40 = vld [vmem:[%s2732_s1 + $0xa4] ss:$8 sps:$4 sm:$0xff]  }
  0x14   : > { %1222 = vmatpush1.bf16.msra.mxu1 %v1957_v14  ;;  %v1994_v39 = vld [vmem:[%s2732_s1 + $0x290] ss:$8 sps:$4 sm:$0xff]   ;;  %s1909_s29 = smul.u32 144, %s2742_s12  ;;  %v1997_v41 = vld [vmem:[%s2732_s1 + $0x2a4] ss:$8 sps:$4 sm:$0xff]   ;;  %vm1559_vm2 = vcmask 1044484  }
  0x15   : > { %1328 = vmatpush1.bf16.msra.mxu0 %v1958_v15  ;;  %1223 = vmatprep.subr.bf16.mxu1 %v1959_v16  ;;  %v1999_v42 = vld [vmem:[%s2732_s1 + $0xa0] ss:$8 sps:$4 sm:$0xff]   ;;  %v2001_v44 = vld [vmem:[%s2732_s1 + $0xb4] ss:$8 sps:$4 sm:$0xff]   ;;  %v2005_v46 = vld [vmem:[%s2732_s1 + $0xb0] ss:$8 sps:$4 sm:$0xff]  }
  0x16   : > { %1329 = vmatprep.subr.bf16.mxu0 %v1961_v17  ;;  %v2000_v43 = vld [vmem:[%s2732_s1 + $0x2a0] ss:$8 sps:$4 sm:$0xff]   ;;  %s2385_s17 = scalar_lea.vmem %s2731_s0, %s1909_s29  ;;  %v2003_v45 = vld [vmem:[%s2732_s1 + $0x2b4] ss:$8 sps:$4 sm:$0xff]   ;;  %v2006_v47 = vld [vmem:[%s2732_s1 + $0x2b0] ss:$8 sps:$4 sm:$0xff]  }
  0x17   : > { %v2033_v48 = vld [vmem:[%s2385_s17 + $0x4] ss:$36 sps:$4 sm:$0xff]   ;;  %v2039_v51 = vld [vmem:[%s2385_s17 + $0x14] ss:$36 sps:$4 sm:$0xff]   ;;  %vm1557_vm1 = vsmask.f32 256 }
  0x18   : > { %1224 = vmatpush1.bf16.msra.mxu1 %v1963_v18  ;;  %v2007_v49 = vld [vmem:[%s2732_s1 + $0xc4] ss:$8 sps:$4 sm:$0xff]   ;;  %1247 = vmatprep.mubr.bf16.mxu1 %v2033_v48  ;;  %v2011_v52 = vld [vmem:[%s2732_s1 + $0xc0] ss:$8 sps:$4 sm:$0xff]   ;;  %v2013_v54 = vld [vmem:[%s2732_s1 + $0xd4] ss:$8 sps:$4 sm:$0xff]  }
  0x19   : > { %1330 = vmatpush1.bf16.msra.mxu0 %v1964_v19  ;;  %1225 = vmatprep.subr.bf16.mxu1 %v1965_v20  ;;  %v2009_v50 = vld [vmem:[%s2732_s1 + $0x2c4] ss:$8 sps:$4 sm:$0xff]   ;;  %v2012_v53 = vld [vmem:[%s2732_s1 + $0x2c0] ss:$8 sps:$4 sm:$0xff]   ;;  %v2015_v55 = vld [vmem:[%s2732_s1 + $0x2d4] ss:$8 sps:$4 sm:$0xff]  }
  0x1a   : > { %1331 = vmatprep.subr.bf16.mxu0 %v1967_v21  ;;  %1353 = vmatprep.mubr.bf16.mxu0 %v2039_v51  ;;  %v2017_v56 = vld [vmem:[%s2732_s1 + $0xd0] ss:$8 sps:$4 sm:$0xff]   ;;  %v2019_v58 = vld [vmem:[%s2732_s1 + $0xe4] ss:$8 sps:$4 sm:$0xff]   ;;  %v2023_v60 = vld [vmem:[%s2732_s1 + $0xe0] ss:$8 sps:$4 sm:$0xff]  }
  0x1b   : > { %v2018_v57 = vld [vmem:[%s2732_s1 + $0x2d0] ss:$8 sps:$4 sm:$0xff]   ;;  %v2021_v59 = vld [vmem:[%s2732_s1 + $0x2e4] ss:$8 sps:$4 sm:$0xff]   ;;  %v2024_v61 = vld [vmem:[%s2732_s1 + $0x2e0] ss:$8 sps:$4 sm:$0xff]  }
  0x1c   : > { %1226 = vmatpush1.bf16.msra.mxu1 %v1969_v22  ;;  %v2025_v62 = vld [vmem:[%s2732_s1 + $0xf4] ss:$8 sps:$4 sm:$0xff]   ;;  %v2029_v0 = vld [vmem:[%s2732_s1 + $0xf0] ss:$8 sps:$4 sm:$0xff]   ;;  %v2036_v2 = vld [vmem:[%s2732_s1 + $0x104] ss:$8 sps:$4 sm:$0xff]  }
  0x1d   : > { %1332 = vmatpush1.bf16.msra.mxu0 %v1970_v23  ;;  %1227 = vmatprep.subr.bf16.mxu1 %v1971_v24  ;;  %v2027_v63 = vld [vmem:[%s2732_s1 + $0x2f4] ss:$8 sps:$4 sm:$0xff]   ;;  %v2030_v1 = vld [vmem:[%s2732_s1 + $0x2f0] ss:$8 sps:$4 sm:$0xff]   ;;  %v2042_v3 = vld [vmem:[%s2732_s1 + $0x304] ss:$8 sps:$4 sm:$0xff]  }
  0x1e   : > { %1333 = vmatprep.subr.bf16.mxu0 %v1973_v25  ;;  %v2031_v4 = vld [vmem:[%s2385_s17] ss:$36 sps:$4 sm:$0xff]   ;;  %v2037_v6 = vld [vmem:[%s2385_s17 + $0x10] ss:$36 sps:$4 sm:$0xff]   ;;  %vm1560_vm3 = vsmask.f32 4352  ;;  %vm2711_vm4 = vmand %vm1556_vm0, %vm1557_vm1 }
  0x1f   : > { %v2034_v5 = vld [vmem:[%s2732_s1 + $0x100] ss:$8 sps:$4 sm:$0xff]   ;;  %v2045_v8 = vld [vmem:[%s2732_s1 + $0x114] ss:$8 sps:$4 sm:$0xff]   ;;  %v2043_v10 = vld [vmem:[%s2732_s1 + $0x110] ss:$8 sps:$4 sm:$0xff]  }
  0x20   : > { %1228 = vmatpush1.bf16.msra.mxu1 %v1975_v26  ;;  %v2040_v7 = vld [vmem:[%s2732_s1 + $0x300] ss:$8 sps:$4 sm:$0xff]   ;;  %v2048_v9 = vld [vmem:[%s2732_s1 + $0x314] ss:$8 sps:$4 sm:$0xff]   ;;  %v2046_v11 = vld [vmem:[%s2732_s1 + $0x310] ss:$8 sps:$4 sm:$0xff]  }
  0x21   : > { %1334 = vmatpush1.bf16.msra.mxu0 %v1976_v27  ;;  %1229 = vmatprep.subr.bf16.mxu1 %v1977_v28  ;;  %v2051_v12 = vld [vmem:[%s2732_s1 + $0x124] ss:$8 sps:$4 sm:$0xff]   ;;  %v2049_v14 = vld [vmem:[%s2732_s1 + $0x120] ss:$8 sps:$4 sm:$0xff]   ;;  %v2057_v16 = vld [vmem:[%s2732_s1 + $0x134] ss:$8 sps:$4 sm:$0xff]  }
  0x22   : > { %1335 = vmatprep.subr.bf16.mxu0 %v1979_v29  ;;  %v2054_v13 = vld [vmem:[%s2732_s1 + $0x324] ss:$8 sps:$4 sm:$0xff]   ;;  %v2052_v15 = vld [vmem:[%s2732_s1 + $0x320] ss:$8 sps:$4 sm:$0xff]   ;;  %v2060_v17 = vld [vmem:[%s2732_s1 + $0x334] ss:$8 sps:$4 sm:$0xff]  }
  0x23   : > { %v2055_v18 = vld [vmem:[%s2732_s1 + $0x130] ss:$8 sps:$4 sm:$0xff]   ;;  %v2063_v20 = vld [vmem:[%s2732_s1 + $0x144] ss:$8 sps:$4 sm:$0xff]   ;;  %v2061_v22 = vld [vmem:[%s2732_s1 + $0x140] ss:$8 sps:$4 sm:$0xff]  }
  0x24   : > { %1230 = vmatpush1.bf16.msra.mxu1 %v1981_v30  ;;  %v2058_v19 = vld [vmem:[%s2732_s1 + $0x330] ss:$8 sps:$4 sm:$0xff]   ;;  %v2066_v21 = vld [vmem:[%s2732_s1 + $0x344] ss:$8 sps:$4 sm:$0xff]   ;;  %v2064_v23 = vld [vmem:[%s2732_s1 + $0x340] ss:$8 sps:$4 sm:$0xff]  }
  0x25   : > { %1336 = vmatpush1.bf16.msra.mxu0 %v1982_v31  ;;  %1231 = vmatprep.subr.bf16.mxu1 %v1983_v32  ;;  %v2069_v24 = vld [vmem:[%s2732_s1 + $0x154] ss:$8 sps:$4 sm:$0xff]   ;;  %v2067_v26 = vld [vmem:[%s2732_s1 + $0x150] ss:$8 sps:$4 sm:$0xff]   ;;  %v2075_v28 = vld [vmem:[%s2732_s1 + $0x164] ss:$8 sps:$4 sm:$0xff]  }
  0x26   : > { %1337 = vmatprep.subr.bf16.mxu0 %v1985_v33  ;;  %v2072_v25 = vld [vmem:[%s2732_s1 + $0x354] ss:$8 sps:$4 sm:$0xff]   ;;  %v2070_v27 = vld [vmem:[%s2732_s1 + $0x350] ss:$8 sps:$4 sm:$0xff]   ;;  %v2078_v31 = vld [vmem:[%s2732_s1 + $0x364] ss:$8 sps:$4 sm:$0xff]  }
  0x27   : > { %v2121_v29 = vld [vmem:[%s2385_s17 + $0x4c] ss:$36 sps:$4 sm:$0x1f]   ;;  %v2123_v30 = vld [vmem:[%s2385_s17 + $0x5c] ss:$36 sps:$4 sm:$0x1f]   ;;  %vm1561_vm5 = vmand %vm1559_vm2, %vm1560_vm3 }
  0x28   : > { %1232 = vmatpush1.bf16.msra.mxu1 %v1987_v34  ;;  %v2125_v32 = vld [vmem:[%s2385_s17 + $0x48] ss:$36 sps:$4 sm:$0x1f]   ;;  %v2129_v33 = vld [vmem:[%s2385_s17 + $0x58] ss:$36 sps:$4 sm:$0x1f]   ;;  %vm1562_vm6 = vmor %vm1561_vm5, %vm2711_vm4 }
  0x29   : > { %1338 = vmatpush1.bf16.msra.mxu0 %v1988_v35  ;;  %1233 = vmatprep.subr.bf16.mxu1 %v1989_v36  ;;  %v2073_v34 = vld [vmem:[%s2732_s1 + $0x160] ss:$8 sps:$4 sm:$0xff]   ;;  %v2081_v36 = vld [vmem:[%s2732_s1 + $0x174] ss:$8 sps:$4 sm:$0xff]   ;;  %v2091_v48 = vld [vmem:[%s2732_s1 + $0x190] ss:$8 sps:$4 sm:$0xff]  }
  0x2a   : > { %1339 = vmatprep.subr.bf16.mxu0 %v1991_v37  ;;  %v2076_v35 = vld [vmem:[%s2732_s1 + $0x360] ss:$8 sps:$4 sm:$0xff]   ;;  %v2084_v37 = vld [vmem:[%s2732_s1 + $0x374] ss:$8 sps:$4 sm:$0xff]   ;;  %v2102_v51 = vld [vmem:[%s2732_s1 + $0x3a4] ss:$8 sps:$4 sm:$0xff]  }
  0x2b   : > { %s1856_s21 = sshll.u32 %s2742_s12, 5 }
  0x2c   : > { %1234 = vmatpush1.bf16.msra.mxu1 %v1993_v38  ;;  %v2079_v38 = vld [vmem:[%s2732_s1 + $0x170] ss:$8 sps:$4 sm:$0xff]   ;;  %s236_s12 = scalar_lea.vmem %s2734_s3, %s1856_s21 }
  0x2d   : > { %1340 = vmatpush1.bf16.msra.mxu0 %v1994_v39  ;;  %1235 = vmatprep.subr.bf16.mxu1 %v1995_v40  ;;  %v2082_v39 = vld [vmem:[%s2732_s1 + $0x370] ss:$8 sps:$4 sm:$0xff]   ;;  %v2087_v40 = vld [vmem:[%s2732_s1 + $0x184] ss:$8 sps:$4 sm:$0xff]  }
  0x2e   : > { %1341 = vmatprep.subr.bf16.mxu0 %v1997_v41  ;;  %v2141_v41 = vld [vmem:[%s2385_s17 + $0xc] ss:$36 sps:$4 sm:$0xff]  }
  0x30   : > { %1236 = vmatpush1.bf16.msra.mxu1 %v1999_v42  ;;  %v2090_v42 = vld [vmem:[%s2732_s1 + $0x384] ss:$8 sps:$4 sm:$0xff]  }
  0x31   : > { %1342 = vmatpush1.bf16.msra.mxu0 %v2000_v43  ;;  %1237 = vmatprep.subr.bf16.mxu1 %v2001_v44  ;;  %v2144_v43 = vld [vmem:[%s2385_s17 + $0x1c] ss:$36 sps:$4 sm:$0xff]  }
  0x32   : > { %1343 = vmatprep.subr.bf16.mxu0 %v2003_v45  ;;  %v2085_v44 = vld [vmem:[%s2732_s1 + $0x180] ss:$8 sps:$4 sm:$0xff]  }
  0x33   : > { %v2088_v45 = vld [vmem:[%s2732_s1 + $0x380] ss:$8 sps:$4 sm:$0xff]  }
  0x34   : > { %1238 = vmatpush1.bf16.msra.mxu1 %v2005_v46  ;;  %v2093_v46 = vld [vmem:[%s2732_s1 + $0x194] ss:$8 sps:$4 sm:$0xff]  }
  0x35   : > { %1344 = vmatpush1.bf16.msra.mxu0 %v2006_v47  ;;  %1239 = vmatprep.subr.bf16.mxu1 %v2007_v49  ;;  %v2096_v47 = vld [vmem:[%s2732_s1 + $0x394] ss:$8 sps:$4 sm:$0xff]   ;;  %v2094_v49 = vld [vmem:[%s2732_s1 + $0x390] ss:$8 sps:$4 sm:$0xff]  }
  0x36   : > { %1345 = vmatprep.subr.bf16.mxu0 %v2009_v50  ;;  %v2099_v50 = vld [vmem:[%s2732_s1 + $0x1a4] ss:$8 sps:$4 sm:$0xff]  }
  0x38   : > { %1240 = vmatpush1.bf16.msra.mxu1 %v2011_v52  ;;  %v2097_v52 = vld [vmem:[%s2732_s1 + $0x1a0] ss:$8 sps:$4 sm:$0xff]  }
  0x39   : > { %1346 = vmatpush1.bf16.msra.mxu0 %v2012_v53  ;;  %1241 = vmatprep.subr.bf16.mxu1 %v2013_v54  ;;  %v2100_v53 = vld [vmem:[%s2732_s1 + $0x3a0] ss:$8 sps:$4 sm:$0xff]   ;;  %v2105_v54 = vld [vmem:[%s2732_s1 + $0x1b4] ss:$8 sps:$4 sm:$0xff]  }
  0x3a   : > { %1347 = vmatprep.subr.bf16.mxu0 %v2015_v55  ;;  %v2108_v55 = vld [vmem:[%s2732_s1 + $0x3b4] ss:$8 sps:$4 sm:$0xff]  }
  0x3c   : > { %1242 = vmatpush1.bf16.msra.mxu1 %v2017_v56  ;;  %v2103_v56 = vld [vmem:[%s2732_s1 + $0x1b0] ss:$8 sps:$4 sm:$0xff]  }
  0x3d   : > { %1348 = vmatpush1.bf16.msra.mxu0 %v2018_v57  ;;  %1243 = vmatprep.subr.bf16.mxu1 %v2019_v58  ;;  %v2106_v57 = vld [vmem:[%s2732_s1 + $0x3b0] ss:$8 sps:$4 sm:$0xff]   ;;  %v2111_v58 = vld [vmem:[%s2732_s1 + $0x1c4] ss:$8 sps:$4 sm:$0xff]  }
  0x3e   : > { %1349 = vmatprep.subr.bf16.mxu0 %v2021_v59  ;;  %v2114_v59 = vld [vmem:[%s2732_s1 + $0x3c4] ss:$8 sps:$4 sm:$0xff]  }
  0x40   : > { %1244 = vmatpush1.bf16.msra.mxu1 %v2023_v60  ;;  %v2109_v60 = vld [vmem:[%s2732_s1 + $0x1c0] ss:$8 sps:$4 sm:$0xff]  }
  0x41   : > { %1350 = vmatpush1.bf16.msra.mxu0 %v2024_v61  ;;  %1245 = vmatprep.subr.bf16.mxu1 %v2025_v62  ;;  %v2112_v61 = vld [vmem:[%s2732_s1 + $0x3c0] ss:$8 sps:$4 sm:$0xff]   ;;  %v2117_v62 = vld [vmem:[%s2732_s1 + $0x1d4] ss:$8 sps:$4 sm:$0xff]  }
  0x42   : > { %1351 = vmatprep.subr.bf16.mxu0 %v2027_v63  ;;  %v2120_v63 = vld [vmem:[%s2732_s1 + $0x3d4] ss:$8 sps:$4 sm:$0xff]  }
  0x44   : > { %1246 = vmatpush1.bf16.msra.mxu1 %v2029_v0  ;;  %v2115_v0 = vld [vmem:[%s2732_s1 + $0x1d0] ss:$8 sps:$4 sm:$0xff]  }
  0x45   : > { %1352 = vmatpush1.bf16.msra.mxu0 %v2030_v1  ;;  %1268 = vmatprep.subr.bf16.mxu1 %v2036_v2  ;;  %v2118_v1 = vld [vmem:[%s2732_s1 + $0x3d0] ss:$8 sps:$4 sm:$0xff]   ;;  %v2128_v2 = vld [vmem:[%s2732_s1 + $0x1e4] ss:$8 sps:$4 sm:$0xff]  }
  0x46   : > { %1374 = vmatprep.subr.bf16.mxu0 %v2042_v3  ;;  %v2132_v3 = vld [vmem:[%s2732_s1 + $0x3e4] ss:$8 sps:$4 sm:$0xff]  }
  0x47   : > { %1248 = vmatmul.mubr.bf16.vlgmr.msra.gmra.mrb[0].mxu1 %v2031_v4  ;;  %v2126_v4 = vld [vmem:[%s2732_s1 + $0x1e0] ss:$8 sps:$4 sm:$0xff]  }
  0x48   : > { %1354 = vmatmul.mubr.bf16.vlgmr.msra.gmra.mrb[0].mxu0 %v2037_v6  ;;  %1269 = vmatpush1.bf16.msra.mxu1 %v2034_v5  ;;  %v2130_v5 = vld [vmem:[%s2732_s1 + $0x3e0] ss:$8 sps:$4 sm:$0xff]   ;;  %v2135_v6 = vld [vmem:[%s2732_s1 + $0x1f4] ss:$8 sps:$4 sm:$0xff]  }
  0x49   : > { %1375 = vmatpush1.bf16.msra.mxu0 %v2040_v7  ;;  %1270 = vmatprep.subr.bf16.mxu1 %v2045_v8  ;;  %v2138_v7 = vld [vmem:[%s2732_s1 + $0x3f4] ss:$8 sps:$4 sm:$0xff]   ;;  %v2133_v8 = vld [vmem:[%s2732_s1 + $0x1f0] ss:$8 sps:$4 sm:$0xff]  }
  0x4a   : > { %1376 = vmatprep.subr.bf16.mxu0 %v2048_v9  ;;  %1257 = vmatprep.mubr.bf16.mxu1 %v2121_v29  ;;  %v2136_v9 = vld [vmem:[%s2732_s1 + $0x3f0] ss:$8 sps:$4 sm:$0xff]   ;;  %v2171_v29 = vld [vmem:[%s2732_s1 + $0x464] ss:$8 sps:$4 sm:$0xff]  }
  0x4b   : > { %1363 = vmatprep.mubr.bf16.mxu0 %v2123_v30  ;;  %v2169_v30 = vld [vmem:[%s2732_s1 + $0x460] ss:$8 sps:$4 sm:$0xff]  }
  0x4c   : > { %1271 = vmatpush1.bf16.msra.mxu1 %v2043_v10  ;;  %v2147_v10 = vld [vmem:[%s2732_s1 + $0x404] ss:$8 sps:$4 sm:$0xff]  }
  0x4d   : > { %1377 = vmatpush1.bf16.msra.mxu0 %v2046_v11  ;;  %1272 = vmatprep.subr.bf16.mxu1 %v2051_v12  ;;  %v2139_v11 = vld [vmem:[%s2385_s17 + $0x8] ss:$36 sps:$4 sm:$0xff]   ;;  %v2142_v12 = vld [vmem:[%s2385_s17 + $0x18] ss:$36 sps:$4 sm:$0xff]  }
  0x4e   : > { %1378 = vmatprep.subr.bf16.mxu0 %v2054_v13  ;;  %v2145_v13 = vld [vmem:[%s2732_s1 + $0x400] ss:$8 sps:$4 sm:$0xff]  }
  0x4f   : > { %1258 = vmatmul.mubr.bf16.gmra.mrb[4].mxu1 %v2125_v32  ;;  %v2172_v32 = vld [vmem:[%s2732_s1 + $0x470] ss:$8 sps:$4 sm:$0xff]  }
  0x50   : > { %1273 = vmatpush1.bf16.msra.mxu1 %v2049_v14  ;;  %1364 = vmatmul.mubr.bf16.gmra.mrb[4].mxu0 %v2129_v33  ;;  %v2150_v14 = vld [vmem:[%s2732_s1 + $0x414] ss:$8 sps:$4 sm:$0xff]   ;;  %v2175_v33 = vld [vmem:[%s2385_s17 + $0x20] ss:$36 sps:$4 sm:$0xff]  }
  0x51   : > { %1379 = vmatpush1.bf16.msra.mxu0 %v2052_v15  ;;  %1274 = vmatprep.subr.bf16.mxu1 %v2057_v16  ;;  %v2151_v15 = vld [vmem:[%s2385_s17 + $0x54] ss:$36 sps:$4 sm:$0x1f]   ;;  %v2153_v16 = vld [vmem:[%s2385_s17 + $0x64] ss:$36 sps:$4 sm:$0x1f]  }
  0x52   : > { %1380 = vmatprep.subr.bf16.mxu0 %v2060_v17  ;;  %1300 = vmatprep.mubr.bf16.mxu1 %v2141_v41  ;;  %v2148_v17 = vld [vmem:[%s2732_s1 + $0x410] ss:$8 sps:$4 sm:$0xff]  }
  0x53   : > { %1406 = vmatprep.mubr.bf16.mxu0 %v2144_v43 }
  0x54   : > { %1275 = vmatpush1.bf16.msra.mxu1 %v2055_v18  ;;  %v2159_v18 = vld [vmem:[%s2732_s1 + $0x424] ss:$8 sps:$4 sm:$0xff]  }
  0x55   : > { %1381 = vmatpush1.bf16.msra.mxu0 %v2058_v19  ;;  %1276 = vmatprep.subr.bf16.mxu1 %v2063_v20  ;;  %v2155_v19 = vld [vmem:[%s2385_s17 + $0x50] ss:$36 sps:$4 sm:$0x1f]   ;;  %v2156_v20 = vld [vmem:[%s2385_s17 + $0x60] ss:$36 sps:$4 sm:$0x1f]  }
  0x56   : > { %1382 = vmatprep.subr.bf16.mxu0 %v2066_v21  ;;  %v2157_v21 = vld [vmem:[%s2732_s1 + $0x420] ss:$8 sps:$4 sm:$0xff]  }
  0x58   : > { %1277 = vmatpush1.bf16.msra.mxu1 %v2061_v22  ;;  %v2162_v22 = vld [vmem:[%s2732_s1 + $0x434] ss:$8 sps:$4 sm:$0xff]  }
  0x59   : > { %1383 = vmatpush1.bf16.msra.mxu0 %v2064_v23  ;;  %1278 = vmatprep.subr.bf16.mxu1 %v2069_v24  ;;  %v2160_v23 = vld [vmem:[%s2732_s1 + $0x430] ss:$8 sps:$4 sm:$0xff]   ;;  %v2165_v24 = vld [vmem:[%s2732_s1 + $0x444] ss:$8 sps:$4 sm:$0xff]  }
  0x5a   : > { %1384 = vmatprep.subr.bf16.mxu0 %v2072_v25  ;;  %v2201_v25 = vmov 0  }
  0x5c   : > { %1279 = vmatpush1.bf16.msra.mxu1 %v2067_v26  ;;  %v2163_v26 = vld [vmem:[%s2732_s1 + $0x440] ss:$8 sps:$4 sm:$0xff]  }
  0x5d   : > { %1385 = vmatpush1.bf16.msra.mxu0 %v2070_v27  ;;  %1280 = vmatprep.subr.bf16.mxu1 %v2075_v28  ;;  %v2168_v27 = vld [vmem:[%s2732_s1 + $0x454] ss:$8 sps:$4 sm:$0xff]   ;;  %v2166_v28 = vld [vmem:[%s2732_s1 + $0x450] ss:$8 sps:$4 sm:$0xff]  }
  0x5e   : > { %1386 = vmatprep.subr.bf16.mxu0 %v2078_v31  ;;  %v2174_v31 = vld [vmem:[%s2732_s1 + $0x474] ss:$8 sps:$4 sm:$0xff]  }
  0x60   : > { %1281 = vmatpush1.bf16.msra.mxu1 %v2073_v34  ;;  %v2176_v34 = vld [vmem:[%s2385_s17 + $0x68] ss:$36 sps:$4 sm:$0x1f]  }
  0x61   : > { %1387 = vmatpush1.bf16.msra.mxu0 %v2076_v35  ;;  %1282 = vmatprep.subr.bf16.mxu1 %v2081_v36 }
  0x62   : > { %1388 = vmatprep.subr.bf16.mxu0 %v2084_v37 }
  0x64   : > { %1283 = vmatpush1.bf16.msra.mxu1 %v2079_v38 }
  0x65   : > { %1389 = vmatpush1.bf16.msra.mxu0 %v2082_v39  ;;  %1284 = vmatprep.subr.bf16.mxu1 %v2087_v40 }
  0x66   : > { %1390 = vmatprep.subr.bf16.mxu0 %v2090_v42 }
  0x68   : > { %1285 = vmatpush1.bf16.msra.mxu1 %v2085_v44 }
  0x69   : > { %1391 = vmatpush1.bf16.msra.mxu0 %v2088_v45  ;;  %1286 = vmatprep.subr.bf16.mxu1 %v2093_v46 }
  0x6a   : > { %1392 = vmatprep.subr.bf16.mxu0 %v2096_v47 }
  0x6c   : > { %1287 = vmatpush1.bf16.msra.mxu1 %v2091_v48 }
  0x6d   : > { %1393 = vmatpush1.bf16.msra.mxu0 %v2094_v49  ;;  %1288 = vmatprep.subr.bf16.mxu1 %v2099_v50 }
  0x6e   : > { %1394 = vmatprep.subr.bf16.mxu0 %v2102_v51  ;;  %v1482_v51 = vlaneseq }
  0x70   : > { %1289 = vmatpush1.bf16.msra.mxu1 %v2097_v52  ;;  %v1483_v52 = vshrl.u32 %v1482_v51, 7 }
  0x71   : > { %1395 = vmatpush1.bf16.msra.mxu0 %v2100_v53  ;;  %1290 = vmatprep.subr.bf16.mxu1 %v2105_v54  ;;  %v1480_v54 = vld [vmem:[%s2733_s2] ss:$2 sm:$0x3] }
  0x72   : > { %1396 = vmatprep.subr.bf16.mxu0 %v2108_v55  ;;  %v1484_v53 = vsub.s32 0, %v1483_v52  ;;  %v1488_v55 = vsub.s32 1, %v1483_v52 }
  0x74   : > { %1291 = vmatpush1.bf16.msra.mxu1 %v2103_v56  ;;  %v1849_v56 = vld [vmem:[%s2733_s2 + $0x1] ss:$2 sm:$0x3] }
  0x75   : > { %1397 = vmatpush1.bf16.msra.mxu0 %v2106_v57  ;;  %1292 = vmatprep.subr.bf16.mxu1 %v2111_v58  ;;  %v1485_v57 = vrot.slane %v1480_v54, %v1484_v53 }
  0x76   : > { %1398 = vmatprep.subr.bf16.mxu0 %v2114_v59  ;;  %v1506_v59 = vrot.slane %v1849_v56, %v1484_v53 }
  0x78   : > { %1293 = vmatpush1.bf16.msra.mxu1 %v2109_v60 }
  0x79   : > { %1399 = vmatpush1.bf16.msra.mxu0 %v2112_v61  ;;  %1294 = vmatprep.subr.bf16.mxu1 %v2117_v62  ;;  %v1489_v61 = vrot.slane %v1480_v54, %v1488_v55  ;;  %v1510_v62 = vrot.slane %v1849_v56, %v1488_v55 }
  0x7a   : > { %1400 = vmatprep.subr.bf16.mxu0 %v2120_v63 }
  0x7c   : > { %1295 = vmatpush1.bf16.msra.mxu1 %v2115_v0 }
  0x7d   : > { %1401 = vmatpush1.bf16.msra.mxu0 %v2118_v1  ;;  %1296 = vmatprep.subr.bf16.mxu1 %v2128_v2 }
  0x7e   : > { %1402 = vmatprep.subr.bf16.mxu0 %v2132_v3 }
  0x80   : > { %1297 = vmatpush1.bf16.msra.mxu1 %v2126_v4 }
  0x81   : > { %1403 = vmatpush1.bf16.msra.mxu0 %v2130_v5  ;;  %1298 = vmatprep.subr.bf16.mxu1 %v2135_v6 }
  0x82   : > { %1404 = vmatprep.subr.bf16.mxu0 %v2138_v7 }
  0x84   : > { %1299 = vmatpush1.bf16.msra.mxu1 %v2133_v8 }
  0x85   : > { %1405 = vmatpush1.bf16.msra.mxu0 %v2136_v9  ;;  %1861 = vmatprep.subr.bf16.mxu1 %v2147_v10 }
  0x86   : > { %1427 = vmatprep.subr.bf16.mxu0 %v2147_v10 }
  0x87   : > { %1301 = vmatmul.mubr.bf16.vlgmr.msra.gmra.mrb[0].mxu1 %v2139_v11 }
  0x88   : > { %1407 = vmatmul.mubr.bf16.vlgmr.msra.gmra.mrb[0].mxu0 %v2142_v12  ;;  %1869 = vmatpush1.bf16.msra.mxu1 %v2145_v13 }
  0x89   : > { %1428 = vmatpush1.bf16.msra.mxu0 %v2145_v13  ;;  %1862 = vmatprep.subr.bf16.mxu1 %v2150_v14 }
  0x8a   : > { %1429 = vmatprep.subr.bf16.mxu0 %v2150_v14  ;;  %1310 = vmatprep.mubr.bf16.mxu1 %v2151_v15 }
  0x8b   : > { %1416 = vmatprep.mubr.bf16.mxu0 %v2153_v16 }
  0x8c   : > { %1870 = vmatpush1.bf16.msra.mxu1 %v2148_v17 }
  0x8d   : > { %1430 = vmatpush1.bf16.msra.mxu0 %v2148_v17  ;;  %1863 = vmatprep.subr.bf16.mxu1 %v2159_v18 }
  0x8e   : > { %1431 = vmatprep.subr.bf16.mxu0 %v2159_v18 }
  0x8f   : > { %1311 = vmatmul.mubr.bf16.gmra.mrb[4].mxu1 %v2155_v19 }
  0x90   : > { %1417 = vmatmul.mubr.bf16.gmra.mrb[4].mxu0 %v2156_v20  ;;  %1871 = vmatpush1.bf16.msra.mxu1 %v2157_v21 }
  0x91   : > { %1432 = vmatpush1.bf16.msra.mxu0 %v2157_v21  ;;  %1864 = vmatprep.subr.bf16.mxu1 %v2162_v22 }
  0x92   : > { %1433 = vmatprep.subr.bf16.mxu0 %v2162_v22  ;;  %1459 = vmatprep.mubr.bf16.mxu0 %v2201_v25 }
  0x93   : > { %1469 = vmatprep.mubr.bf16.mxu1 %v2201_v25 }
  0x94   : > { %1872 = vmatpush1.bf16.msra.mxu1 %v2160_v23 }
  0x95   : > { %1434 = vmatpush1.bf16.msra.mxu0 %v2160_v23  ;;  %1865 = vmatprep.subr.bf16.mxu1 %v2165_v24 }
  0x96   : > { %1435 = vmatprep.subr.bf16.mxu0 %v2165_v24 }
  0x98   : > { %1873 = vmatpush1.bf16.msra.mxu1 %v2163_v26 }
  0x99   : > { %1436 = vmatpush1.bf16.msra.mxu0 %v2163_v26  ;;  %1866 = vmatprep.subr.bf16.mxu1 %v2168_v27 }
  0x9a   : > { %1437 = vmatprep.subr.bf16.mxu0 %v2168_v27 }
  0x9c   : > { %1874 = vmatpush1.bf16.msra.mxu1 %v2166_v28 }
  0x9d   : > { %1438 = vmatpush1.bf16.msra.mxu0 %v2166_v28  ;;  %1867 = vmatprep.subr.bf16.mxu1 %v2171_v29 }
  0x9e   : > { %1439 = vmatprep.subr.bf16.mxu0 %v2171_v29 }
  0xa0   : > { %1875 = vmatpush1.bf16.msra.mxu1 %v2169_v30 }
  0xa1   : > { %1440 = vmatpush1.bf16.msra.mxu0 %v2169_v30  ;;  %1868 = vmatprep.subr.bf16.mxu1 %v2174_v31 }
  0xa2   : > { %1441 = vmatprep.subr.bf16.mxu0 %v2174_v31 }
  0xa4   : > { %1876 = vmatpush1.bf16.msra.mxu1 %v2172_v32 }
  0xa5   : > { %1442 = vmatpush1.bf16.msra.mxu0 %v2172_v32 }
  0xa7   : > { %1470 = vmatmul.mubr.bf16.vlgmr.msra.gmra.mrb[8].mxu1 %v2176_v34 }
  0xa8   : > { %1460 = vmatmul.mubr.bf16.vlgmr.msra.gmra.mrb[0].mxu0 %v2175_v33 }
 0x15a   : > { %v1302_v35 = vpop.f32.mrb[0].mxu1 }
 0x15b   : > { %v1304_v36 = vpop.f32.mrb[1].mxu1 }
 0x15c   : > { %v1306_v37 = vpop.f32.mrb[2].mxu1 }
 0x15d   : > { %v1308_v38 = vpop.f32.mrb[3].mxu1 }
 0x162   : > { %v1312_v39 = vpop.f32.mrb[4].mxu1 }
 0x163   : > { %v1418_v40 = vpop.f32.mrb[4].mxu0  ;;  %v1314_v42 = vpop.f32.mrb[5].mxu1 }
 0x164   : > { %v1881_v41 = vadd.f32 %v1418_v40, %v1312_v39  ;;  %v1420_v43 = vpop.f32.mrb[5].mxu0  ;;  %v1316_v45 = vpop.f32.mrb[6].mxu1  ;;  %v1563_v40 = vld [vmem:[%s236_s12 + $0x18] sm:$0x11] }
 0x165   : > { %v1883_v44 = vadd.f32 %v1420_v43, %v1314_v42  ;;  %v1422_v46 = vpop.f32.mrb[6].mxu0  ;;  %v1318_v48 = vpop.f32.mrb[7].mxu1 }
 0x166   : > { %v1885_v47 = vadd.f32 %v1422_v46, %v1316_v45  ;;  %v1424_v49 = vpop.f32.mrb[7].mxu0 }
 0x167   : > { %v1887_v50 = vadd.f32 %v1424_v49, %v1318_v48 }
 0x17a   : > { %v1471_v60 = vpop.f32.mrb[8].mxu1 }
 0x17b   : > { %v1461_v58 = vpop.f32.mrb[0].mxu0  ;;  %v1882_v0 = vadd.f32 %v1881_v41, %v1471_v60  ;;  %v1473_v2 = vpop.f32.mrb[9].mxu1 }
 0x17c   : > { %v1877_v63 = vadd.f32 %v1461_v58, %v1302_v35  ;;  %v1463_v1 = vpop.f32.mrb[1].mxu0  ;;  %v1884_v4 = vadd.f32 %v1883_v44, %v1473_v2  ;;  %v1475_v6 = vpop.f32.mrb[10].mxu1 }
 0x17d   : > { %v1878_v3 = vadd.f32 %v1463_v1, %v1304_v36  ;;  %v1465_v5 = vpop.f32.mrb[2].mxu0  ;;  %v1496_v8 = vmul.f32 %v1882_v0, %v1485_v57  ;;  %v1886_v10 = vadd.f32 %v1885_v47, %v1475_v6  ;;  %v1477_v12 = vpop.f32.mrb[11].mxu1 }
 0x17e   : > { %v1492_v7 = vmul.f32 %v1877_v63, %v1485_v57  ;;  %v1879_v9 = vadd.f32 %v1465_v5, %v1306_v37  ;;  %v1467_v11 = vpop.f32.mrb[3].mxu0  ;;  %v1497_v14 = vmul.f32 %v1884_v4, %v1489_v61  ;;  %v1888_v16 = vadd.f32 %v1887_v50, %v1477_v12 }
 0x17f   : > { %v1493_v13 = vmul.f32 %v1878_v3, %v1489_v61  ;;  %v1880_v15 = vadd.f32 %v1467_v11, %v1308_v38  ;;  %v1517_v18 = vadd.f32 %v1506_v59, %v1496_v8  ;;  %v1498_v20 = vmul.f32 %v1886_v10, %v1485_v57 }
 0x180   : > { %v1513_v17 = vadd.f32 %v1506_v59, %v1492_v7  ;;  %v1494_v19 = vmul.f32 %v1879_v9, %v1485_v57  ;;  %v1518_v22 = vadd.f32 %v1510_v62, %v1497_v14  ;;  %v1499_v24 = vmul.f32 %v1888_v16, %v1489_v61 }
 0x181   : > { %v1514_v21 = vadd.f32 %v1510_v62, %v1493_v13  ;;  %v1495_v23 = vmul.f32 %v1880_v15, %v1489_v61  ;;  %v1525_v26 = vmax.f32 %v1517_v18, 0.0  ;;  %v1519_v28 = vadd.f32 %v1506_v59, %v1498_v20 }
 0x182   : > { %v1521_v25 = vmax.f32 %v1513_v17, 0.0  ;;  %v1515_v27 = vadd.f32 %v1506_v59, %v1494_v19  ;;  %v1526_v31 = vmax.f32 %v1518_v22, 0.0  ;;  %v1520_v33 = vadd.f32 %v1510_v62, %v1499_v24 }
 0x183   : > { %v1522_v30 = vmax.f32 %v1514_v21, 0.0  ;;  %v1516_v32 = vadd.f32 %v1510_v62, %v1495_v23  ;;  %v1527_v35 = vmax.f32 %v1519_v28, 0.0 }
 0x184   : > { %v1523_v34 = vmax.f32 %v1515_v27, 0.0  ;;  %v1859_v37 = vpack.c.bf16 %v1526_v31, %v1525_v26  ;;  %v1528_v39 = vmax.f32 %v1520_v33, 0.0 }
 0x185   : > { %v1857_v36 = vpack.c.bf16 %v1522_v30, %v1521_v25  ;;  %v1524_v38 = vmax.f32 %v1516_v32, 0.0 }
 0x186   : > { %1555 = vst [vmem:[%s236_s12 + $0x10] sm:$0xff] %v1859_v37  ;;  %v1860_v42 = vpack.c.bf16 %v1528_v39, %v1527_v35 }
 0x187   : > { %1553 = vst [vmem:[%s236_s12] sm:$0xff] %v1857_v36  ;;  %v1858_v41 = vpack.c.bf16 %v1524_v38, %v1523_v34 }
 0x188   : > { %v1564_v43 = vsel %vm1562_vm6, %v1860_v42, %v1563_v40 }
 0x189   : > { %1554 = vst [vmem:[%s236_s12 + $0x8] sm:$0xff] %v1858_v41  ;;  %1565 = vst [vmem:[%s236_s12 + $0x18] sm:$0x11] %v1564_v43 }
 0x18a PF: > { %s13_s14 = sadd.s32 1, %s2199_s14   ;;  %s2737_s12 = smov %s2195_s13 }
 0x18b   : > { %p10_p5 = scmp.ge.s32.totalorder %s13_s14, 4   ;;  %s2738_s13 = smov %s2740_s15 }
 0x18d   :  { %12 = sbr.rel (!%p10_p5) target bundleno = 2 (0x2), region = 69 }

// kernel: _lambda_.13
= control target key start
LH: loop header
LB: loop body
LE: loop exit
PB: predicated region body
PF: predicated region fallthrough
CT: control target
= control target key end

     0   :  { %s3437_s12 = smov 0   ;;  %s3439_s13 = smov 0   ;;  %s4415_s0 = inlined_call_operand.vmem [shape: bf16[2,4,2304], index: 0, kind: input, shape index: {}]   ;;  %s4416_s1 = inlined_call_operand.vmem [shape: bf16[2304,256], index: 1, kind: input, shape index: {}]   ;;  %s4417_s2 = inlined_call_operand.vmem [shape: f32[2,256], index: 2, kind: input, shape index: {}]   ;;  %s4418_s3 = inlined_call_operand.vmem [shape: bf16[2,4,256], index: 3, kind: output, shape index: {}]  }
   0x1   :  { %s3441_s14 = smov 0  }
   0x2 LB: > { %s25_s15 = sadd.s32 1, %s3410_s13  ;;  %p2601_p0 = scmp.ge.s32.totalorder %s3414_s14, 1  ;;  %s3414_s14 = sphi %s3441_s14, %s13_s14   ;;  %s3410_s13 = sphi %s3439_s13, %s4420_s13   ;;  %s3406_s12 = sphi %s3437_s12, %s4419_s12  }
   0x3   : > { %p27_p1 = scmp.ge.s32.totalorder %s25_s15, 2  ;;  %p173_p2 = scmp.lt.s32.totalorder %s3414_s14, 3 }
   0x5   : > { %s4422_s15 = smov (%p27_p1, %s25_s15), 0  ;;  %p174_p3 = pnand %p2601_p0, %p173_p2 }
   0x6   : > { %v2956_v0 = vld [vmem:[%s4416_s1 + $0x4] ss:$8 sps:$4 sm:$0xff] (!%p174_p3)   ;;  %v2960_v2 = vld [vmem:[%s4416_s1] ss:$8 sps:$4 sm:$0xff] (!%p174_p3)   ;;  %v2962_v4 = vld [vmem:[%s4416_s1 + $0x14] ss:$8 sps:$4 sm:$0xff] (!%p174_p3)   ;;  %v540_v38 = vlaneseq (!%p174_p3) }
   0x7   : > { %177 = sbr.rel (%p174_p3) target bundleno = 552 (0x228), region = 32  ;;  %v2958_v1 = vld [vmem:[%s4416_s1 + $0x404] ss:$8 sps:$4 sm:$0xff] (!%p174_p3)   ;;  %2070 = vmatprep.subr.bf16.mxu1 (!%p174_p3), %v2956_v0  ;;  %v2961_v3 = vld [vmem:[%s4416_s1 + $0x400] ss:$8 sps:$4 sm:$0xff] (!%p174_p3)   ;;  %p211_p4 = scmp.lt.s32.totalorder (!%p174_p3), %s3406_s12, 1 }
   0x8   : > { %2234 = vmatprep.subr.bf16.mxu0 (!%p174_p3), %v2958_v1  ;;  %2071 = vmatpush1.bf16.msra.mxu1 (!%p174_p3), %v2960_v2  ;;  %v2964_v5 = vld [vmem:[%s4416_s1 + $0x414] ss:$8 sps:$4 sm:$0xff] (!%p174_p3)   ;;  %v2966_v6 = vld [vmem:[%s4416_s1 + $0x10] ss:$8 sps:$4 sm:$0xff] (!%p174_p3)   ;;  %v2968_v8 = vld [vmem:[%s4416_s1 + $0x24] ss:$8 sps:$4 sm:$0xff] (!%p174_p3)  }
   0x9   : > { %2235 = vmatpush1.bf16.msra.mxu0 (!%p174_p3), %v2961_v3  ;;  %2072 = vmatprep.subr.bf16.mxu1 (!%p174_p3), %v2962_v4  ;;  %v2967_v7 = vld [vmem:[%s4416_s1 + $0x410] ss:$8 sps:$4 sm:$0xff] (!%p174_p3)   ;;  %v2970_v9 = vld [vmem:[%s4416_s1 + $0x424] ss:$8 sps:$4 sm:$0xff] (!%p174_p3)   ;;  %v2972_v10 = vld [vmem:[%s4416_s1 + $0x20] ss:$8 sps:$4 sm:$0xff] (!%p174_p3)  }
   0xa   : > { %2236 = vmatprep.subr.bf16.mxu0 (!%p174_p3), %v2964_v5  ;;  %v2973_v11 = vld [vmem:[%s4416_s1 + $0x420] ss:$8 sps:$4 sm:$0xff] (!%p174_p3)   ;;  %v2974_v12 = vld [vmem:[%s4416_s1 + $0x34] ss:$8 sps:$4 sm:$0xff] (!%p174_p3)   ;;  %v2978_v14 = vld [vmem:[%s4416_s1 + $0x30] ss:$8 sps:$4 sm:$0xff] (!%p174_p3)  }
   0xb   : > { %v2976_v13 = vld [vmem:[%s4416_s1 + $0x434] ss:$8 sps:$4 sm:$0xff] (!%p174_p3)   ;;  %v2979_v15 = vld [vmem:[%s4416_s1 + $0x430] ss:$8 sps:$4 sm:$0xff] (!%p174_p3)   ;;  %v2980_v16 = vld [vmem:[%s4416_s1 + $0x44] ss:$8 sps:$4 sm:$0xff] (!%p174_p3)  }
   0xc   : > { %2073 = vmatpush1.bf16.msra.mxu1 (!%p174_p3), %v2966_v6  ;;  %v2982_v17 = vld [vmem:[%s4416_s1 + $0x444] ss:$8 sps:$4 sm:$0xff] (!%p174_p3)   ;;  %v2984_v18 = vld [vmem:[%s4416_s1 + $0x40] ss:$8 sps:$4 sm:$0xff] (!%p174_p3)   ;;  %v2986_v20 = vld [vmem:[%s4416_s1 + $0x54] ss:$8 sps:$4 sm:$0xff] (!%p174_p3)  }
   0xd   : > { %2237 = vmatpush1.bf16.msra.mxu0 (!%p174_p3), %v2967_v7  ;;  %2074 = vmatprep.subr.bf16.mxu1 (!%p174_p3), %v2968_v8  ;;  %v2985_v19 = vld [vmem:[%s4416_s1 + $0x440] ss:$8 sps:$4 sm:$0xff] (!%p174_p3)   ;;  %v2988_v21 = vld [vmem:[%s4416_s1 + $0x454] ss:$8 sps:$4 sm:$0xff] (!%p174_p3)   ;;  %v2990_v22 = vld [vmem:[%s4416_s1 + $0x50] ss:$8 sps:$4 sm:$0xff] (!%p174_p3)  }
   0xe   : > { %2238 = vmatprep.subr.bf16.mxu0 %v2970_v9  ;;  %v2991_v23 = vld [vmem:[%s4416_s1 + $0x450] ss:$8 sps:$4 sm:$0xff]   ;;  %v2992_v24 = vld [vmem:[%s4416_s1 + $0x64] ss:$8 sps:$4 sm:$0xff]   ;;  %v2996_v26 = vld [vmem:[%s4416_s1 + $0x60] ss:$8 sps:$4 sm:$0xff]  }
   0xf   : > { %v2994_v25 = vld [vmem:[%s4416_s1 + $0x464] ss:$8 sps:$4 sm:$0xff]   ;;  %v2997_v27 = vld [vmem:[%s4416_s1 + $0x460] ss:$8 sps:$4 sm:$0xff]   ;;  %v2998_v28 = vld [vmem:[%s4416_s1 + $0x74] ss:$8 sps:$4 sm:$0xff]  }
  0x10   : > { %2075 = vmatpush1.bf16.msra.mxu1 %v2972_v10  ;;  %v3000_v29 = vld [vmem:[%s4416_s1 + $0x474] ss:$8 sps:$4 sm:$0xff]   ;;  %v3002_v30 = vld [vmem:[%s4416_s1 + $0x70] ss:$8 sps:$4 sm:$0xff]   ;;  %v3004_v32 = vld [vmem:[%s4416_s1 + $0x84] ss:$8 sps:$4 sm:$0xff]  }
  0x11   : > { %2239 = vmatpush1.bf16.msra.mxu0 %v2973_v11  ;;  %2076 = vmatprep.subr.bf16.mxu1 %v2974_v12  ;;  %v3003_v31 = vld [vmem:[%s4416_s1 + $0x470] ss:$8 sps:$4 sm:$0xff]   ;;  %v3006_v33 = vld [vmem:[%s4416_s1 + $0x484] ss:$8 sps:$4 sm:$0xff]   ;;  %v3008_v34 = vld [vmem:[%s4416_s1 + $0x80] ss:$8 sps:$4 sm:$0xff]  }
  0x12   : > { %2240 = vmatprep.subr.bf16.mxu0 %v2976_v13  ;;  %v3009_v35 = vld [vmem:[%s4416_s1 + $0x480] ss:$8 sps:$4 sm:$0xff]   ;;  %s4424_s12 = smov (!%p211_p4, %s3406_s12), 1  ;;  %v3416_v36 = vmov 1983009808   ;;  %v3579_v43 = vshrl.u32 %v540_v38, 7 }
  0x13   : > { %v538_v37 = vunpack.c.l.s4 %v3416_v36  ;;  %v3010_v39 = vld [vmem:[%s4416_s1 + $0x94] ss:$8 sps:$4 sm:$0xff]   ;;  %v3014_v41 = vld [vmem:[%s4416_s1 + $0x90] ss:$8 sps:$4 sm:$0xff]   ;;  %s2930_s25 = smul.u32 36, %s4424_s12  ;;  %s2899_s21 = sshll.u32 %s4424_s12, 2 }
  0x14   : > { %2077 = vmatpush1.bf16.msra.mxu1 %v2978_v14  ;;  %v3012_v40 = vld [vmem:[%s4416_s1 + $0x494] ss:$8 sps:$4 sm:$0xff]   ;;  %v3015_v44 = vld [vmem:[%s4416_s1 + $0x490] ss:$8 sps:$4 sm:$0xff]   ;;  %v3016_v45 = vld [vmem:[%s4416_s1 + $0xa4] ss:$8 sps:$4 sm:$0xff]   ;;  %s236_s24 = scalar_lea.vmem %s4418_s3, %s2899_s21 }
  0x15   : > { %2241 = vmatpush1.bf16.msra.mxu0 %v2979_v15  ;;  %2078 = vmatprep.subr.bf16.mxu1 %v2980_v16  ;;  %v539_v42 = vunpack.c.0.s8 %v538_v37  ;;  %v3018_v46 = vld [vmem:[%s4416_s1 + $0x4a4] ss:$8 sps:$4 sm:$0xff]   ;;  %v3020_v47 = vld [vmem:[%s4416_s1 + $0xa0] ss:$8 sps:$4 sm:$0xff]   ;;  %s3599_s11 = scalar_lea.vmem %s4415_s0, %s2930_s25  ;;  %v3022_v50 = vld [vmem:[%s4416_s1 + $0xb4] ss:$8 sps:$4 sm:$0xff]  }
  0x16   : > { %2242 = vmatprep.subr.bf16.mxu0 %v2982_v17  ;;  %v3021_v48 = vld [vmem:[%s4416_s1 + $0x4a0] ss:$8 sps:$4 sm:$0xff]   ;;  %v3024_v51 = vld [vmem:[%s4416_s1 + $0x4b4] ss:$8 sps:$4 sm:$0xff]   ;;  %v3026_v53 = vld [vmem:[%s4416_s1 + $0xb0] ss:$8 sps:$4 sm:$0xff]  }
  0x17   : > { %v3602_v49 = vsub.s32 %v539_v42, %v3579_v43  ;;  %v238_v52 = vld [vmem:[%s3599_s11] sm:$0xff]  ;;  %v3027_v55 = vld [vmem:[%s4416_s1 + $0x4b0] ss:$8 sps:$4 sm:$0xff]   ;;  %v3034_v0 = vld [vmem:[%s4416_s1 + $0xd4] ss:$8 sps:$4 sm:$0xff]  }
  0x18   : > { %2079 = vmatpush1.bf16.msra.mxu1 %v2984_v18  ;;  %v240_v56 = vld [vmem:[%s3599_s11 + $0x10] sm:$0xff]  ;;  %v3028_v57 = vld [vmem:[%s4416_s1 + $0xc4] ss:$8 sps:$4 sm:$0xff]   ;;  %v3032_v62 = vld [vmem:[%s4416_s1 + $0xc0] ss:$8 sps:$4 sm:$0xff]   ;;  %v536_v10 = vcombine.high %v238_v52, %v238_v52 }
  0x19   : > { %2243 = vmatpush1.bf16.msra.mxu0 %v2985_v19  ;;  %2080 = vmatprep.subr.bf16.mxu1 %v2986_v20  ;;  %v543_v54 = vrot.slane %v238_v52, %v3602_v49  ;;  %v3030_v58 = vld [vmem:[%s4416_s1 + $0x4c4] ss:$8 sps:$4 sm:$0xff]   ;;  %v577_v60 = vrot.slane %v240_v56, %v3602_v49  ;;  %v3033_v63 = vld [vmem:[%s4416_s1 + $0x4c0] ss:$8 sps:$4 sm:$0xff]   ;;  %v3036_v1 = vld [vmem:[%s4416_s1 + $0x4d4] ss:$8 sps:$4 sm:$0xff]   ;;  %v570_v11 = vcombine.high %v240_v56, %v240_v56 }
  0x1a   : > { %2244 = vmatprep.subr.bf16.mxu0 %v2988_v21  ;;  %v3038_v2 = vld [vmem:[%s4416_s1 + $0xd0] ss:$8 sps:$4 sm:$0xff]   ;;  %v3040_v4 = vld [vmem:[%s4416_s1 + $0xe4] ss:$8 sps:$4 sm:$0xff]   ;;  %v3044_v6 = vld [vmem:[%s4416_s1 + $0xe0] ss:$8 sps:$4 sm:$0xff]   ;;  %v3675_v16 = vrot.slane %v536_v10, %v3602_v49 }
  0x1b   : > { %v551_v59 = vcombine.high %v543_v54, %v543_v54  ;;  %v585_v61 = vcombine.high %v577_v60, %v577_v60  ;;  %v3039_v3 = vld [vmem:[%s4416_s1 + $0x4d0] ss:$8 sps:$4 sm:$0xff]   ;;  %v3042_v5 = vld [vmem:[%s4416_s1 + $0x4e4] ss:$8 sps:$4 sm:$0xff]   ;;  %v3045_v7 = vld [vmem:[%s4416_s1 + $0x4e0] ss:$8 sps:$4 sm:$0xff]   ;;  %v3678_v17 = vrot.slane %v570_v11, %v3602_v49 }
  0x1c   : > { %2081 = vmatpush1.bf16.msra.mxu1 %v2990_v22  ;;  %v3046_v8 = vld [vmem:[%s4416_s1 + $0xf4] ss:$8 sps:$4 sm:$0xff]   ;;  %v3050_v12 = vld [vmem:[%s4416_s1 + $0xf0] ss:$8 sps:$4 sm:$0xff]   ;;  %v3055_v14 = vld [vmem:[%s4416_s1 + $0x104] ss:$8 sps:$4 sm:$0xff]   ;;  %v552_v22 = vcombine.high %v3675_v16, %v3675_v16 }
  0x1d   : > { %2245 = vmatpush1.bf16.msra.mxu0 %v2991_v23  ;;  %2082 = vmatprep.subr.bf16.mxu1 %v2992_v24  ;;  %v3048_v9 = vld [vmem:[%s4416_s1 + $0x4f4] ss:$8 sps:$4 sm:$0xff]   ;;  %v3051_v13 = vld [vmem:[%s4416_s1 + $0x4f0] ss:$8 sps:$4 sm:$0xff]   ;;  %v3059_v15 = vld [vmem:[%s4416_s1 + $0x504] ss:$8 sps:$4 sm:$0xff]   ;;  %v586_v23 = vcombine.high %v3678_v17, %v3678_v17 }
  0x1e   : > { %2246 = vmatprep.subr.bf16.mxu0 %v2994_v25  ;;  %2102 = vmatprep.mubr.bf16.mxu1 %v551_v59  ;;  %v3053_v18 = vld [vmem:[%s4416_s1 + $0x100] ss:$8 sps:$4 sm:$0xff]   ;;  %v3062_v20 = vld [vmem:[%s4416_s1 + $0x114] ss:$8 sps:$4 sm:$0xff]   ;;  %v3060_v24 = vld [vmem:[%s4416_s1 + $0x110] ss:$8 sps:$4 sm:$0xff]  }
  0x1f   : > { %2266 = vmatprep.mubr.bf16.mxu0 %v585_v61  ;;  %v3057_v19 = vld [vmem:[%s4416_s1 + $0x500] ss:$8 sps:$4 sm:$0xff]   ;;  %v3065_v21 = vld [vmem:[%s4416_s1 + $0x514] ss:$8 sps:$4 sm:$0xff]   ;;  %v3063_v25 = vld [vmem:[%s4416_s1 + $0x510] ss:$8 sps:$4 sm:$0xff]  }
  0x20   : > { %2083 = vmatpush1.bf16.msra.mxu1 %v2996_v26  ;;  %v3068_v26 = vld [vmem:[%s4416_s1 + $0x124] ss:$8 sps:$4 sm:$0xff]   ;;  %v3078_v36 = vld [vmem:[%s4416_s1 + $0x140] ss:$8 sps:$4 sm:$0xff]   ;;  %v3086_v38 = vld [vmem:[%s4416_s1 + $0x154] ss:$8 sps:$4 sm:$0xff]  }
  0x21   : > { %2247 = vmatpush1.bf16.msra.mxu0 %v2997_v27  ;;  %2084 = vmatprep.subr.bf16.mxu1 %v2998_v28  ;;  %v3071_v27 = vld [vmem:[%s4416_s1 + $0x524] ss:$8 sps:$4 sm:$0xff]   ;;  %v3066_v28 = vld [vmem:[%s4416_s1 + $0x120] ss:$8 sps:$4 sm:$0xff]   ;;  %v3110_v56 = vld [vmem:[%s4416_s1 + $0x194] ss:$8 sps:$4 sm:$0xff]  }
  0x22   : > { %2248 = vmatprep.subr.bf16.mxu0 %v3000_v29  ;;  %v3069_v29 = vld [vmem:[%s4416_s1 + $0x520] ss:$8 sps:$4 sm:$0xff]   ;;  %v3092_v42 = vld [vmem:[%s4416_s1 + $0x164] ss:$8 sps:$4 sm:$0xff]   ;;  %v3111_v59 = vld [vmem:[%s4416_s1 + $0x590] ss:$8 sps:$4 sm:$0xff]  }
  0x23   : > { %v3081_v37 = vld [vmem:[%s4416_s1 + $0x540] ss:$8 sps:$4 sm:$0xff]   ;;  %v3104_v52 = vld [vmem:[%s4416_s1 + $0x184] ss:$8 sps:$4 sm:$0xff]   ;;  %v3132_v10 = vld [vmem:[%s4416_s1 + $0x1d0] ss:$8 sps:$4 sm:$0xff]  }
  0x24   : > { %2085 = vmatpush1.bf16.msra.mxu1 %v3002_v30  ;;  %v3074_v30 = vld [vmem:[%s4416_s1 + $0x134] ss:$8 sps:$4 sm:$0xff]   ;;  %v3119_v61 = vld [vmem:[%s4416_s1 + $0x5a4] ss:$8 sps:$4 sm:$0xff]   ;;  %v3135_v11 = vld [vmem:[%s4416_s1 + $0x5d0] ss:$8 sps:$4 sm:$0xff]  }
  0x25   : > { %2249 = vmatpush1.bf16.msra.mxu0 %v3003_v31  ;;  %2086 = vmatprep.subr.bf16.mxu1 %v3004_v32  ;;  %v3077_v31 = vld [vmem:[%s4416_s1 + $0x534] ss:$8 sps:$4 sm:$0xff]   ;;  %v3072_v32 = vld [vmem:[%s4416_s1 + $0x130] ss:$8 sps:$4 sm:$0xff]  }
  0x26   : > { %2250 = vmatprep.subr.bf16.mxu0 %v3006_v33  ;;  %v3075_v33 = vld [vmem:[%s4416_s1 + $0x530] ss:$8 sps:$4 sm:$0xff]  }
  0x28   : > { %2087 = vmatpush1.bf16.msra.mxu1 %v3008_v34  ;;  %v3080_v34 = vld [vmem:[%s4416_s1 + $0x144] ss:$8 sps:$4 sm:$0xff]  }
  0x29   : > { %2251 = vmatpush1.bf16.msra.mxu0 %v3009_v35  ;;  %2088 = vmatprep.subr.bf16.mxu1 %v3010_v39  ;;  %v3083_v35 = vld [vmem:[%s4416_s1 + $0x544] ss:$8 sps:$4 sm:$0xff]   ;;  %v3089_v39 = vld [vmem:[%s4416_s1 + $0x554] ss:$8 sps:$4 sm:$0xff]  }
  0x2a   : > { %2252 = vmatprep.subr.bf16.mxu0 %v3012_v40  ;;  %v3084_v40 = vld [vmem:[%s4416_s1 + $0x150] ss:$8 sps:$4 sm:$0xff]  }
  0x2c   : > { %2089 = vmatpush1.bf16.msra.mxu1 %v3014_v41  ;;  %v3087_v41 = vld [vmem:[%s4416_s1 + $0x550] ss:$8 sps:$4 sm:$0xff]  }
  0x2d   : > { %2253 = vmatpush1.bf16.msra.mxu0 %v3015_v44  ;;  %2090 = vmatprep.subr.bf16.mxu1 %v3016_v45  ;;  %v3095_v44 = vld [vmem:[%s4416_s1 + $0x564] ss:$8 sps:$4 sm:$0xff]   ;;  %v3090_v45 = vld [vmem:[%s4416_s1 + $0x160] ss:$8 sps:$4 sm:$0xff]  }
  0x2e   : > { %2254 = vmatprep.subr.bf16.mxu0 %v3018_v46  ;;  %v3093_v46 = vld [vmem:[%s4416_s1 + $0x560] ss:$8 sps:$4 sm:$0xff]  }
  0x30   : > { %2091 = vmatpush1.bf16.msra.mxu1 %v3020_v47  ;;  %v3098_v47 = vld [vmem:[%s4416_s1 + $0x174] ss:$8 sps:$4 sm:$0xff]  }
  0x31   : > { %2255 = vmatpush1.bf16.msra.mxu0 %v3021_v48  ;;  %2092 = vmatprep.subr.bf16.mxu1 %v3022_v50  ;;  %v3101_v48 = vld [vmem:[%s4416_s1 + $0x574] ss:$8 sps:$4 sm:$0xff]   ;;  %v3096_v50 = vld [vmem:[%s4416_s1 + $0x170] ss:$8 sps:$4 sm:$0xff]  }
  0x32   : > { %2256 = vmatprep.subr.bf16.mxu0 %v3024_v51  ;;  %v3099_v51 = vld [vmem:[%s4416_s1 + $0x570] ss:$8 sps:$4 sm:$0xff]  }
  0x34   : > { %2093 = vmatpush1.bf16.msra.mxu1 %v3026_v53  ;;  %v3107_v53 = vld [vmem:[%s4416_s1 + $0x584] ss:$8 sps:$4 sm:$0xff]  }
  0x35   : > { %2257 = vmatpush1.bf16.msra.mxu0 %v3027_v55  ;;  %2094 = vmatprep.subr.bf16.mxu1 %v3028_v57  ;;  %v3105_v55 = vld [vmem:[%s4416_s1 + $0x580] ss:$8 sps:$4 sm:$0xff]   ;;  %v3113_v57 = vld [vmem:[%s4416_s1 + $0x594] ss:$8 sps:$4 sm:$0xff]  }
  0x36   : > { %2258 = vmatprep.subr.bf16.mxu0 %v3030_v58  ;;  %v3108_v58 = vld [vmem:[%s4416_s1 + $0x190] ss:$8 sps:$4 sm:$0xff]  }
  0x38   : > { %2095 = vmatpush1.bf16.msra.mxu1 %v3032_v62  ;;  %v3114_v62 = vld [vmem:[%s4416_s1 + $0x1a0] ss:$8 sps:$4 sm:$0xff]  }
  0x39   : > { %2259 = vmatpush1.bf16.msra.mxu0 %v3033_v63  ;;  %2096 = vmatprep.subr.bf16.mxu1 %v3034_v0  ;;  %v3117_v63 = vld [vmem:[%s4416_s1 + $0x5a0] ss:$8 sps:$4 sm:$0xff]   ;;  %v3122_v0 = vld [vmem:[%s4416_s1 + $0x1b4] ss:$8 sps:$4 sm:$0xff]  }
  0x3a   : > { %2260 = vmatprep.subr.bf16.mxu0 %v3036_v1  ;;  %v3125_v1 = vld [vmem:[%s4416_s1 + $0x5b4] ss:$8 sps:$4 sm:$0xff]  }
  0x3c   : > { %2097 = vmatpush1.bf16.msra.mxu1 %v3038_v2  ;;  %v3120_v2 = vld [vmem:[%s4416_s1 + $0x1b0] ss:$8 sps:$4 sm:$0xff]  }
  0x3d   : > { %2261 = vmatpush1.bf16.msra.mxu0 %v3039_v3  ;;  %2098 = vmatprep.subr.bf16.mxu1 %v3040_v4  ;;  %v3123_v3 = vld [vmem:[%s4416_s1 + $0x5b0] ss:$8 sps:$4 sm:$0xff]   ;;  %v3128_v4 = vld [vmem:[%s4416_s1 + $0x1c4] ss:$8 sps:$4 sm:$0xff]  }
  0x3e   : > { %2262 = vmatprep.subr.bf16.mxu0 %v3042_v5  ;;  %v3131_v5 = vld [vmem:[%s4416_s1 + $0x5c4] ss:$8 sps:$4 sm:$0xff]  }
  0x40   : > { %2099 = vmatpush1.bf16.msra.mxu1 %v3044_v6  ;;  %v3126_v6 = vld [vmem:[%s4416_s1 + $0x1c0] ss:$8 sps:$4 sm:$0xff]  }
  0x41   : > { %2263 = vmatpush1.bf16.msra.mxu0 %v3045_v7  ;;  %2100 = vmatprep.subr.bf16.mxu1 %v3046_v8  ;;  %v3129_v7 = vld [vmem:[%s4416_s1 + $0x5c0] ss:$8 sps:$4 sm:$0xff]   ;;  %v3134_v8 = vld [vmem:[%s4416_s1 + $0x1d4] ss:$8 sps:$4 sm:$0xff]  }
  0x42   : > { %2264 = vmatprep.subr.bf16.mxu0 %v3048_v9  ;;  %v3137_v9 = vld [vmem:[%s4416_s1 + $0x5d4] ss:$8 sps:$4 sm:$0xff]  }
  0x44   : > { %2101 = vmatpush1.bf16.msra.mxu1 %v3050_v12  ;;  %v3140_v12 = vld [vmem:[%s4416_s1 + $0x1e4] ss:$8 sps:$4 sm:$0xff]  }
  0x45   : > { %2265 = vmatpush1.bf16.msra.mxu0 %v3051_v13  ;;  %2111 = vmatprep.subr.bf16.mxu1 %v3055_v14  ;;  %v3143_v13 = vld [vmem:[%s4416_s1 + $0x5e4] ss:$8 sps:$4 sm:$0xff]   ;;  %v3138_v14 = vld [vmem:[%s4416_s1 + $0x1e0] ss:$8 sps:$4 sm:$0xff]  }
  0x46   : > { %2275 = vmatprep.subr.bf16.mxu0 %v3059_v15  ;;  %v3141_v15 = vld [vmem:[%s4416_s1 + $0x5e0] ss:$8 sps:$4 sm:$0xff]  }
  0x47   : > { %2103 = vmatmul.mubr.bf16.vlgmr.msra.gmra.mrb[0].mxu1 %v543_v54  ;;  %v3102_v54 = vld [vmem:[%s4416_s1 + $0x180] ss:$8 sps:$4 sm:$0xff]  }
  0x48   : > { %2267 = vmatmul.mubr.bf16.vlgmr.msra.gmra.mrb[0].mxu0 %v577_v60  ;;  %2112 = vmatpush1.bf16.msra.mxu1 %v3053_v18  ;;  %v3116_v60 = vld [vmem:[%s4416_s1 + $0x1a4] ss:$8 sps:$4 sm:$0xff]   ;;  %v3146_v18 = vld [vmem:[%s4416_s1 + $0x1f4] ss:$8 sps:$4 sm:$0xff]  }
  0x49   : > { %2276 = vmatpush1.bf16.msra.mxu0 %v3057_v19  ;;  %2113 = vmatprep.subr.bf16.mxu1 %v3062_v20  ;;  %v3149_v19 = vld [vmem:[%s4416_s1 + $0x5f4] ss:$8 sps:$4 sm:$0xff]   ;;  %v3144_v20 = vld [vmem:[%s4416_s1 + $0x1f0] ss:$8 sps:$4 sm:$0xff]  }
  0x4a   : > { %2277 = vmatprep.subr.bf16.mxu0 %v3065_v21  ;;  %2143 = vmatprep.mubr.bf16.mxu1 %v552_v22  ;;  %v3147_v21 = vld [vmem:[%s4416_s1 + $0x5f0] ss:$8 sps:$4 sm:$0xff]   ;;  %v3152_v22 = vld [vmem:[%s4416_s1 + $0x204] ss:$8 sps:$4 sm:$0xff]  }
  0x4b   : > { %2307 = vmatprep.mubr.bf16.mxu0 %v586_v23  ;;  %v3155_v23 = vld [vmem:[%s4416_s1 + $0x604] ss:$8 sps:$4 sm:$0xff]  }
  0x4c   : > { %2114 = vmatpush1.bf16.msra.mxu1 %v3060_v24  ;;  %v3150_v24 = vld [vmem:[%s4416_s1 + $0x200] ss:$8 sps:$4 sm:$0xff]  }
  0x4d   : > { %2278 = vmatpush1.bf16.msra.mxu0 %v3063_v25  ;;  %2115 = vmatprep.subr.bf16.mxu1 %v3068_v26  ;;  %v3153_v25 = vld [vmem:[%s4416_s1 + $0x600] ss:$8 sps:$4 sm:$0xff]   ;;  %v3158_v26 = vld [vmem:[%s4416_s1 + $0x214] ss:$8 sps:$4 sm:$0xff]  }
  0x4e   : > { %2279 = vmatprep.subr.bf16.mxu0 %v3071_v27  ;;  %v3886_v27 = vld [vmem:[%s3599_s11 + $0x8] sm:$0xff] }
  0x50   : > { %2116 = vmatpush1.bf16.msra.mxu1 %v3066_v28  ;;  %v3161_v28 = vld [vmem:[%s4416_s1 + $0x614] ss:$8 sps:$4 sm:$0xff]  }
  0x51   : > { %2280 = vmatpush1.bf16.msra.mxu0 %v3069_v29  ;;  %2117 = vmatprep.subr.bf16.mxu1 %v3074_v30  ;;  %v3893_v29 = vrot.slane %v3886_v27, %v3602_v49  ;;  %v3896_v30 = vld [vmem:[%s3599_s11 + $0x18] sm:$0xff] }
  0x52   : > { %2281 = vmatprep.subr.bf16.mxu0 %v3077_v31  ;;  %v3156_v31 = vld [vmem:[%s4416_s1 + $0x210] ss:$8 sps:$4 sm:$0xff]  }
  0x54   : > { %2118 = vmatpush1.bf16.msra.mxu1 %v3072_v32  ;;  %v3159_v32 = vld [vmem:[%s4416_s1 + $0x610] ss:$8 sps:$4 sm:$0xff]  }
  0x55   : > { %2282 = vmatpush1.bf16.msra.mxu0 %v3075_v33  ;;  %2119 = vmatprep.subr.bf16.mxu1 %v3080_v34  ;;  %v568_v33 = vcombine.high %v3893_v29, %v3893_v29  ;;  %v3910_v34 = vrot.slane %v3896_v30, %v3602_v49 }
  0x56   : > { %2283 = vmatprep.subr.bf16.mxu0 %v3083_v35 }
  0x57   : > { %v602_v35 = vcombine.high %v3910_v34, %v3910_v34 }
  0x58   : > { %2120 = vmatpush1.bf16.msra.mxu1 %v3078_v36  ;;  %v3162_v36 = vld [vmem:[%s4416_s1 + $0x220] ss:$8 sps:$4 sm:$0xff]  }
  0x59   : > { %2284 = vmatpush1.bf16.msra.mxu0 %v3081_v37  ;;  %2121 = vmatprep.subr.bf16.mxu1 %v3086_v38  ;;  %v3165_v37 = vld [vmem:[%s4416_s1 + $0x620] ss:$8 sps:$4 sm:$0xff]   ;;  %v3170_v38 = vld [vmem:[%s4416_s1 + $0x234] ss:$8 sps:$4 sm:$0xff]  }
  0x5a   : > { %2285 = vmatprep.subr.bf16.mxu0 %v3089_v39  ;;  %v3173_v39 = vld [vmem:[%s4416_s1 + $0x634] ss:$8 sps:$4 sm:$0xff]  }
  0x5c   : > { %2122 = vmatpush1.bf16.msra.mxu1 %v3084_v40  ;;  %v3168_v40 = vld [vmem:[%s4416_s1 + $0x230] ss:$8 sps:$4 sm:$0xff]  }
  0x5d   : > { %2286 = vmatpush1.bf16.msra.mxu0 %v3087_v41  ;;  %2123 = vmatprep.subr.bf16.mxu1 %v3092_v42  ;;  %v3171_v41 = vld [vmem:[%s4416_s1 + $0x630] ss:$8 sps:$4 sm:$0xff]   ;;  %v3176_v42 = vld [vmem:[%s4416_s1 + $0x244] ss:$8 sps:$4 sm:$0xff]  }
  0x5e   : > { %2287 = vmatprep.subr.bf16.mxu0 %v3095_v44  ;;  %v3179_v44 = vld [vmem:[%s4416_s1 + $0x644] ss:$8 sps:$4 sm:$0xff]  }
  0x60   : > { %2124 = vmatpush1.bf16.msra.mxu1 %v3090_v45  ;;  %v3174_v45 = vld [vmem:[%s4416_s1 + $0x240] ss:$8 sps:$4 sm:$0xff]  }
  0x61   : > { %2288 = vmatpush1.bf16.msra.mxu0 %v3093_v46  ;;  %2125 = vmatprep.subr.bf16.mxu1 %v3098_v47  ;;  %v3177_v46 = vld [vmem:[%s4416_s1 + $0x640] ss:$8 sps:$4 sm:$0xff]   ;;  %v3182_v47 = vld [vmem:[%s4416_s1 + $0x254] ss:$8 sps:$4 sm:$0xff]  }
  0x62   : > { %2289 = vmatprep.subr.bf16.mxu0 %v3101_v48  ;;  %v3185_v48 = vld [vmem:[%s4416_s1 + $0x654] ss:$8 sps:$4 sm:$0xff]  }
  0x64   : > { %2126 = vmatpush1.bf16.msra.mxu1 %v3096_v50  ;;  %v3180_v50 = vld [vmem:[%s4416_s1 + $0x250] ss:$8 sps:$4 sm:$0xff]  }
  0x65   : > { %2290 = vmatpush1.bf16.msra.mxu0 %v3099_v51  ;;  %2127 = vmatprep.subr.bf16.mxu1 %v3104_v52  ;;  %v3183_v51 = vld [vmem:[%s4416_s1 + $0x650] ss:$8 sps:$4 sm:$0xff]   ;;  %v3188_v52 = vld [vmem:[%s4416_s1 + $0x264] ss:$8 sps:$4 sm:$0xff]  }
  0x66   : > { %2291 = vmatprep.subr.bf16.mxu0 %v3107_v53  ;;  %v3191_v53 = vld [vmem:[%s4416_s1 + $0x664] ss:$8 sps:$4 sm:$0xff]  }
  0x68   : > { %2128 = vmatpush1.bf16.msra.mxu1 %v3102_v54  ;;  %v3186_v54 = vld [vmem:[%s4416_s1 + $0x260] ss:$8 sps:$4 sm:$0xff]  }
  0x69   : > { %2292 = vmatpush1.bf16.msra.mxu0 %v3105_v55  ;;  %2129 = vmatprep.subr.bf16.mxu1 %v3110_v56  ;;  %v3189_v55 = vld [vmem:[%s4416_s1 + $0x660] ss:$8 sps:$4 sm:$0xff]   ;;  %v3194_v56 = vld [vmem:[%s4416_s1 + $0x274] ss:$8 sps:$4 sm:$0xff]  }
  0x6a   : > { %2293 = vmatprep.subr.bf16.mxu0 %v3113_v57  ;;  %v3197_v57 = vld [vmem:[%s4416_s1 + $0x674] ss:$8 sps:$4 sm:$0xff]  }
  0x6c   : > { %2130 = vmatpush1.bf16.msra.mxu1 %v3108_v58  ;;  %v3192_v58 = vld [vmem:[%s4416_s1 + $0x270] ss:$8 sps:$4 sm:$0xff]  }
  0x6d   : > { %2294 = vmatpush1.bf16.msra.mxu0 %v3111_v59  ;;  %2131 = vmatprep.subr.bf16.mxu1 %v3116_v60  ;;  %v3195_v59 = vld [vmem:[%s4416_s1 + $0x670] ss:$8 sps:$4 sm:$0xff]   ;;  %v3200_v60 = vld [vmem:[%s4416_s1 + $0x284] ss:$8 sps:$4 sm:$0xff]  }
  0x6e   : > { %2295 = vmatprep.subr.bf16.mxu0 %v3119_v61  ;;  %v3203_v61 = vld [vmem:[%s4416_s1 + $0x684] ss:$8 sps:$4 sm:$0xff]  }
  0x70   : > { %2132 = vmatpush1.bf16.msra.mxu1 %v3114_v62  ;;  %v3198_v62 = vld [vmem:[%s4416_s1 + $0x280] ss:$8 sps:$4 sm:$0xff]  }
  0x71   : > { %2296 = vmatpush1.bf16.msra.mxu0 %v3117_v63  ;;  %2133 = vmatprep.subr.bf16.mxu1 %v3122_v0  ;;  %v3201_v63 = vld [vmem:[%s4416_s1 + $0x680] ss:$8 sps:$4 sm:$0xff]   ;;  %v3206_v0 = vld [vmem:[%s4416_s1 + $0x294] ss:$8 sps:$4 sm:$0xff]  }
  0x72   : > { %2297 = vmatprep.subr.bf16.mxu0 %v3125_v1  ;;  %v3209_v1 = vld [vmem:[%s4416_s1 + $0x694] ss:$8 sps:$4 sm:$0xff]  }
  0x74   : > { %2134 = vmatpush1.bf16.msra.mxu1 %v3120_v2  ;;  %v3204_v2 = vld [vmem:[%s4416_s1 + $0x290] ss:$8 sps:$4 sm:$0xff]  }
  0x75   : > { %2298 = vmatpush1.bf16.msra.mxu0 %v3123_v3  ;;  %2135 = vmatprep.subr.bf16.mxu1 %v3128_v4  ;;  %v3207_v3 = vld [vmem:[%s4416_s1 + $0x690] ss:$8 sps:$4 sm:$0xff]   ;;  %v3212_v4 = vld [vmem:[%s4416_s1 + $0x2a4] ss:$8 sps:$4 sm:$0xff]  }
  0x76   : > { %2299 = vmatprep.subr.bf16.mxu0 %v3131_v5  ;;  %v3215_v5 = vld [vmem:[%s4416_s1 + $0x6a4] ss:$8 sps:$4 sm:$0xff]  }
  0x78   : > { %2136 = vmatpush1.bf16.msra.mxu1 %v3126_v6  ;;  %v3210_v6 = vld [vmem:[%s4416_s1 + $0x2a0] ss:$8 sps:$4 sm:$0xff]  }
  0x79   : > { %2300 = vmatpush1.bf16.msra.mxu0 %v3129_v7  ;;  %2137 = vmatprep.subr.bf16.mxu1 %v3134_v8  ;;  %v3213_v7 = vld [vmem:[%s4416_s1 + $0x6a0] ss:$8 sps:$4 sm:$0xff]   ;;  %v3218_v8 = vld [vmem:[%s4416_s1 + $0x2b4] ss:$8 sps:$4 sm:$0xff]  }
  0x7a   : > { %2301 = vmatprep.subr.bf16.mxu0 %v3137_v9  ;;  %v3221_v9 = vld [vmem:[%s4416_s1 + $0x6b4] ss:$8 sps:$4 sm:$0xff]  }
  0x7c   : > { %2138 = vmatpush1.bf16.msra.mxu1 %v3132_v10  ;;  %v3216_v10 = vld [vmem:[%s4416_s1 + $0x2b0] ss:$8 sps:$4 sm:$0xff]  }
  0x7d   : > { %2302 = vmatpush1.bf16.msra.mxu0 %v3135_v11  ;;  %2139 = vmatprep.subr.bf16.mxu1 %v3140_v12  ;;  %v3219_v11 = vld [vmem:[%s4416_s1 + $0x6b0] ss:$8 sps:$4 sm:$0xff]   ;;  %v3224_v12 = vld [vmem:[%s4416_s1 + $0x2c4] ss:$8 sps:$4 sm:$0xff]  }
  0x7e   : > { %2303 = vmatprep.subr.bf16.mxu0 %v3143_v13  ;;  %v3227_v13 = vld [vmem:[%s4416_s1 + $0x6c4] ss:$8 sps:$4 sm:$0xff]  }
  0x80   : > { %2140 = vmatpush1.bf16.msra.mxu1 %v3138_v14  ;;  %v3222_v14 = vld [vmem:[%s4416_s1 + $0x2c0] ss:$8 sps:$4 sm:$0xff]  }
  0x81   : > { %2304 = vmatpush1.bf16.msra.mxu0 %v3141_v15  ;;  %2141 = vmatprep.subr.bf16.mxu1 %v3146_v18  ;;  %v3225_v15 = vld [vmem:[%s4416_s1 + $0x6c0] ss:$8 sps:$4 sm:$0xff]   ;;  %v3230_v18 = vld [vmem:[%s4416_s1 + $0x2d4] ss:$8 sps:$4 sm:$0xff]  }
  0x82   : > { %2305 = vmatprep.subr.bf16.mxu0 %v3149_v19  ;;  %v3233_v19 = vld [vmem:[%s4416_s1 + $0x6d4] ss:$8 sps:$4 sm:$0xff]  }
  0x84   : > { %2142 = vmatpush1.bf16.msra.mxu1 %v3144_v20  ;;  %v3228_v20 = vld [vmem:[%s4416_s1 + $0x2d0] ss:$8 sps:$4 sm:$0xff]  }
  0x85   : > { %2306 = vmatpush1.bf16.msra.mxu0 %v3147_v21  ;;  %2152 = vmatprep.subr.bf16.mxu1 %v3152_v22  ;;  %v3231_v21 = vld [vmem:[%s4416_s1 + $0x6d0] ss:$8 sps:$4 sm:$0xff]   ;;  %v3236_v22 = vld [vmem:[%s4416_s1 + $0x2e4] ss:$8 sps:$4 sm:$0xff]  }
  0x86   : > { %2316 = vmatprep.subr.bf16.mxu0 %v3155_v23  ;;  %v3239_v23 = vld [vmem:[%s4416_s1 + $0x6e4] ss:$8 sps:$4 sm:$0xff]  }
  0x87   : > { %2144 = vmatmul.mubr.bf16.vlgmr.msra.gmra.mrb[0].mxu1 %v3675_v16  ;;  %v3164_v16 = vld [vmem:[%s4416_s1 + $0x224] ss:$8 sps:$4 sm:$0xff]  }
  0x88   : > { %2308 = vmatmul.mubr.bf16.vlgmr.msra.gmra.mrb[0].mxu0 %v3678_v17  ;;  %2153 = vmatpush1.bf16.msra.mxu1 %v3150_v24  ;;  %v3167_v17 = vld [vmem:[%s4416_s1 + $0x624] ss:$8 sps:$4 sm:$0xff]   ;;  %v3234_v24 = vld [vmem:[%s4416_s1 + $0x2e0] ss:$8 sps:$4 sm:$0xff]  }
  0x89   : > { %2317 = vmatpush1.bf16.msra.mxu0 %v3153_v25  ;;  %2154 = vmatprep.subr.bf16.mxu1 %v3158_v26  ;;  %v3237_v25 = vld [vmem:[%s4416_s1 + $0x6e0] ss:$8 sps:$4 sm:$0xff]   ;;  %v3242_v26 = vld [vmem:[%s4416_s1 + $0x2f4] ss:$8 sps:$4 sm:$0xff]  }
  0x8a   : > { %2318 = vmatprep.subr.bf16.mxu0 %v3161_v28  ;;  %2184 = vmatprep.mubr.bf16.mxu1 %v568_v33  ;;  %v3245_v28 = vld [vmem:[%s4416_s1 + $0x6f4] ss:$8 sps:$4 sm:$0xff]   ;;  %v3240_v33 = vld [vmem:[%s4416_s1 + $0x2f0] ss:$8 sps:$4 sm:$0xff]  }
  0x8b   : > { %2348 = vmatprep.mubr.bf16.mxu0 %v602_v35 }
  0x8c   : > { %2155 = vmatpush1.bf16.msra.mxu1 %v3156_v31  ;;  %v553_v31 = vcombine.high %v3886_v27, %v3886_v27  ;;  %v3251_v27 = vld [vmem:[%s4416_s1 + $0x704] ss:$8 sps:$4 sm:$0xff]  }
  0x8d   : > { %2319 = vmatpush1.bf16.msra.mxu0 %v3159_v32  ;;  %2156 = vmatprep.subr.bf16.mxu1 %v3164_v16  ;;  %v587_v32 = vcombine.high %v3896_v30, %v3896_v30  ;;  %v3243_v16 = vld [vmem:[%s4416_s1 + $0x6f0] ss:$8 sps:$4 sm:$0xff]  }
  0x8e   : > { %2320 = vmatprep.subr.bf16.mxu0 %v3167_v17  ;;  %v3248_v17 = vld [vmem:[%s4416_s1 + $0x304] ss:$8 sps:$4 sm:$0xff]   ;;  %v4093_v30 = vrot.slane %v553_v31, %v3602_v49  ;;  %v3327_v31 = vld [vmem:[%s4416_s1 + $0x7d0] ss:$8 sps:$4 sm:$0xff]  }
  0x8f   : > { %v4096_v35 = vrot.slane %v587_v32, %v3602_v49  ;;  %v3257_v49 = vld [vmem:[%s4416_s1 + $0x714] ss:$8 sps:$4 sm:$0xff]   ;;  %v3332_v32 = vld [vmem:[%s4416_s1 + $0x3e4] ss:$8 sps:$4 sm:$0xff]  }
  0x90   : > { %2157 = vmatpush1.bf16.msra.mxu1 %v3162_v36  ;;  %v3246_v36 = vld [vmem:[%s4416_s1 + $0x300] ss:$8 sps:$4 sm:$0xff]  }
  0x91   : > { %2321 = vmatpush1.bf16.msra.mxu0 %v3165_v37  ;;  %2158 = vmatprep.subr.bf16.mxu1 %v3170_v38  ;;  %v3249_v37 = vld [vmem:[%s4416_s1 + $0x700] ss:$8 sps:$4 sm:$0xff]   ;;  %v3254_v38 = vld [vmem:[%s4416_s1 + $0x314] ss:$8 sps:$4 sm:$0xff]  }
  0x92   : > { %2322 = vmatprep.subr.bf16.mxu0 %v3173_v39  ;;  %v569_v39 = vcombine.high %v4093_v30, %v4093_v30 }
  0x94   : > { %2159 = vmatpush1.bf16.msra.mxu1 %v3168_v40  ;;  %v603_v40 = vcombine.high %v4096_v35, %v4096_v35 }
  0x95   : > { %2323 = vmatpush1.bf16.msra.mxu0 %v3171_v41  ;;  %2160 = vmatprep.subr.bf16.mxu1 %v3176_v42  ;;  %v3252_v41 = vld [vmem:[%s4416_s1 + $0x310] ss:$8 sps:$4 sm:$0xff]  }
  0x96   : > { %2324 = vmatprep.subr.bf16.mxu0 %v3179_v44  ;;  %v3255_v42 = vld [vmem:[%s4416_s1 + $0x710] ss:$8 sps:$4 sm:$0xff]   ;;  %v3260_v44 = vld [vmem:[%s4416_s1 + $0x324] ss:$8 sps:$4 sm:$0xff]  }
  0x98   : > { %2161 = vmatpush1.bf16.msra.mxu1 %v3174_v45  ;;  %v3261_v45 = vld [vmem:[%s4416_s1 + $0x720] ss:$8 sps:$4 sm:$0xff]  }
  0x99   : > { %2325 = vmatpush1.bf16.msra.mxu0 %v3177_v46  ;;  %2162 = vmatprep.subr.bf16.mxu1 %v3182_v47  ;;  %v3266_v46 = vld [vmem:[%s4416_s1 + $0x334] ss:$8 sps:$4 sm:$0xff]  }
  0x9a   : > { %2326 = vmatprep.subr.bf16.mxu0 %v3185_v48  ;;  %v3269_v47 = vld [vmem:[%s4416_s1 + $0x734] ss:$8 sps:$4 sm:$0xff]   ;;  %v3264_v48 = vld [vmem:[%s4416_s1 + $0x330] ss:$8 sps:$4 sm:$0xff]  }
  0x9c   : > { %2163 = vmatpush1.bf16.msra.mxu1 %v3180_v50  ;;  %v3267_v50 = vld [vmem:[%s4416_s1 + $0x730] ss:$8 sps:$4 sm:$0xff]  }
  0x9d   : > { %2327 = vmatpush1.bf16.msra.mxu0 %v3183_v51  ;;  %2164 = vmatprep.subr.bf16.mxu1 %v3188_v52  ;;  %v3272_v51 = vld [vmem:[%s4416_s1 + $0x344] ss:$8 sps:$4 sm:$0xff]  }
  0x9e   : > { %2328 = vmatprep.subr.bf16.mxu0 %v3191_v53  ;;  %v3275_v52 = vld [vmem:[%s4416_s1 + $0x744] ss:$8 sps:$4 sm:$0xff]   ;;  %v3270_v53 = vld [vmem:[%s4416_s1 + $0x340] ss:$8 sps:$4 sm:$0xff]  }
  0xa0   : > { %2165 = vmatpush1.bf16.msra.mxu1 %v3186_v54  ;;  %v3273_v54 = vld [vmem:[%s4416_s1 + $0x740] ss:$8 sps:$4 sm:$0xff]  }
  0xa1   : > { %2329 = vmatpush1.bf16.msra.mxu0 %v3189_v55  ;;  %2166 = vmatprep.subr.bf16.mxu1 %v3194_v56  ;;  %v3278_v55 = vld [vmem:[%s4416_s1 + $0x354] ss:$8 sps:$4 sm:$0xff]  }
  0xa2   : > { %2330 = vmatprep.subr.bf16.mxu0 %v3197_v57  ;;  %v3281_v56 = vld [vmem:[%s4416_s1 + $0x754] ss:$8 sps:$4 sm:$0xff]   ;;  %v3276_v57 = vld [vmem:[%s4416_s1 + $0x350] ss:$8 sps:$4 sm:$0xff]  }
  0xa4   : > { %2167 = vmatpush1.bf16.msra.mxu1 %v3192_v58  ;;  %v3279_v58 = vld [vmem:[%s4416_s1 + $0x750] ss:$8 sps:$4 sm:$0xff]  }
  0xa5   : > { %2331 = vmatpush1.bf16.msra.mxu0 %v3195_v59  ;;  %2168 = vmatprep.subr.bf16.mxu1 %v3200_v60  ;;  %v3284_v59 = vld [vmem:[%s4416_s1 + $0x364] ss:$8 sps:$4 sm:$0xff]  }
  0xa6   : > { %2332 = vmatprep.subr.bf16.mxu0 %v3203_v61  ;;  %v3287_v60 = vld [vmem:[%s4416_s1 + $0x764] ss:$8 sps:$4 sm:$0xff]   ;;  %v3282_v61 = vld [vmem:[%s4416_s1 + $0x360] ss:$8 sps:$4 sm:$0xff]  }
  0xa8   : > { %2169 = vmatpush1.bf16.msra.mxu1 %v3198_v62  ;;  %v3285_v62 = vld [vmem:[%s4416_s1 + $0x760] ss:$8 sps:$4 sm:$0xff]  }
  0xa9   : > { %2333 = vmatpush1.bf16.msra.mxu0 %v3201_v63  ;;  %2170 = vmatprep.subr.bf16.mxu1 %v3206_v0  ;;  %v3290_v63 = vld [vmem:[%s4416_s1 + $0x374] ss:$8 sps:$4 sm:$0xff]  }
  0xaa   : > { %2334 = vmatprep.subr.bf16.mxu0 %v3209_v1  ;;  %v3293_v0 = vld [vmem:[%s4416_s1 + $0x774] ss:$8 sps:$4 sm:$0xff]   ;;  %v3288_v1 = vld [vmem:[%s4416_s1 + $0x370] ss:$8 sps:$4 sm:$0xff]  }
  0xac   : > { %2171 = vmatpush1.bf16.msra.mxu1 %v3204_v2  ;;  %v3291_v2 = vld [vmem:[%s4416_s1 + $0x770] ss:$8 sps:$4 sm:$0xff]  }
  0xad   : > { %2335 = vmatpush1.bf16.msra.mxu0 %v3207_v3  ;;  %2172 = vmatprep.subr.bf16.mxu1 %v3212_v4  ;;  %v3296_v3 = vld [vmem:[%s4416_s1 + $0x384] ss:$8 sps:$4 sm:$0xff]  }
  0xae   : > { %2336 = vmatprep.subr.bf16.mxu0 %v3215_v5  ;;  %v3299_v4 = vld [vmem:[%s4416_s1 + $0x784] ss:$8 sps:$4 sm:$0xff]   ;;  %v3294_v5 = vld [vmem:[%s4416_s1 + $0x380] ss:$8 sps:$4 sm:$0xff]  }
  0xb0   : > { %2173 = vmatpush1.bf16.msra.mxu1 %v3210_v6  ;;  %v3297_v6 = vld [vmem:[%s4416_s1 + $0x780] ss:$8 sps:$4 sm:$0xff]  }
  0xb1   : > { %2337 = vmatpush1.bf16.msra.mxu0 %v3213_v7  ;;  %2174 = vmatprep.subr.bf16.mxu1 %v3218_v8  ;;  %v3302_v7 = vld [vmem:[%s4416_s1 + $0x394] ss:$8 sps:$4 sm:$0xff]  }
  0xb2   : > { %2338 = vmatprep.subr.bf16.mxu0 %v3221_v9  ;;  %v3305_v8 = vld [vmem:[%s4416_s1 + $0x794] ss:$8 sps:$4 sm:$0xff]   ;;  %v3300_v9 = vld [vmem:[%s4416_s1 + $0x390] ss:$8 sps:$4 sm:$0xff]  }
  0xb4   : > { %2175 = vmatpush1.bf16.msra.mxu1 %v3216_v10  ;;  %v3303_v10 = vld [vmem:[%s4416_s1 + $0x790] ss:$8 sps:$4 sm:$0xff]  }
  0xb5   : > { %2339 = vmatpush1.bf16.msra.mxu0 %v3219_v11  ;;  %2176 = vmatprep.subr.bf16.mxu1 %v3224_v12  ;;  %v3308_v11 = vld [vmem:[%s4416_s1 + $0x3a4] ss:$8 sps:$4 sm:$0xff]  }
  0xb6   : > { %2340 = vmatprep.subr.bf16.mxu0 %v3227_v13  ;;  %v3311_v12 = vld [vmem:[%s4416_s1 + $0x7a4] ss:$8 sps:$4 sm:$0xff]   ;;  %v3306_v13 = vld [vmem:[%s4416_s1 + $0x3a0] ss:$8 sps:$4 sm:$0xff]  }
  0xb8   : > { %2177 = vmatpush1.bf16.msra.mxu1 %v3222_v14  ;;  %v3309_v14 = vld [vmem:[%s4416_s1 + $0x7a0] ss:$8 sps:$4 sm:$0xff]  }
  0xb9   : > { %2341 = vmatpush1.bf16.msra.mxu0 %v3225_v15  ;;  %2178 = vmatprep.subr.bf16.mxu1 %v3230_v18  ;;  %v3314_v15 = vld [vmem:[%s4416_s1 + $0x3b4] ss:$8 sps:$4 sm:$0xff]  }
  0xba   : > { %2342 = vmatprep.subr.bf16.mxu0 %v3233_v19  ;;  %v3317_v18 = vld [vmem:[%s4416_s1 + $0x7b4] ss:$8 sps:$4 sm:$0xff]   ;;  %v3312_v19 = vld [vmem:[%s4416_s1 + $0x3b0] ss:$8 sps:$4 sm:$0xff]  }
  0xbc   : > { %2179 = vmatpush1.bf16.msra.mxu1 %v3228_v20  ;;  %v3315_v20 = vld [vmem:[%s4416_s1 + $0x7b0] ss:$8 sps:$4 sm:$0xff]  }
  0xbd   : > { %2343 = vmatpush1.bf16.msra.mxu0 %v3231_v21  ;;  %2180 = vmatprep.subr.bf16.mxu1 %v3236_v22  ;;  %v3320_v21 = vld [vmem:[%s4416_s1 + $0x3c4] ss:$8 sps:$4 sm:$0xff]  }
  0xbe   : > { %2344 = vmatprep.subr.bf16.mxu0 %v3239_v23  ;;  %v3323_v22 = vld [vmem:[%s4416_s1 + $0x7c4] ss:$8 sps:$4 sm:$0xff]   ;;  %v3318_v23 = vld [vmem:[%s4416_s1 + $0x3c0] ss:$8 sps:$4 sm:$0xff]  }
  0xc0   : > { %2181 = vmatpush1.bf16.msra.mxu1 %v3234_v24  ;;  %v3321_v24 = vld [vmem:[%s4416_s1 + $0x7c0] ss:$8 sps:$4 sm:$0xff]  }
  0xc1   : > { %2345 = vmatpush1.bf16.msra.mxu0 %v3237_v25  ;;  %2182 = vmatprep.subr.bf16.mxu1 %v3242_v26  ;;  %v3326_v25 = vld [vmem:[%s4416_s1 + $0x3d4] ss:$8 sps:$4 sm:$0xff]  }
  0xc2   : > { %2346 = vmatprep.subr.bf16.mxu0 %v3245_v28  ;;  %v3329_v26 = vld [vmem:[%s4416_s1 + $0x7d4] ss:$8 sps:$4 sm:$0xff]   ;;  %v3324_v28 = vld [vmem:[%s4416_s1 + $0x3d0] ss:$8 sps:$4 sm:$0xff]  }
  0xc4   : > { %2183 = vmatpush1.bf16.msra.mxu1 %v3240_v33  ;;  %v3335_v33 = vld [vmem:[%s4416_s1 + $0x7e4] ss:$8 sps:$4 sm:$0xff]  }
  0xc5   : > { %2347 = vmatpush1.bf16.msra.mxu0 %v3243_v16  ;;  %2193 = vmatprep.subr.bf16.mxu1 %v3248_v17  ;;  %v3330_v16 = vld [vmem:[%s4416_s1 + $0x3e0] ss:$8 sps:$4 sm:$0xff]  }
  0xc6   : > { %2357 = vmatprep.subr.bf16.mxu0 %v3251_v27  ;;  %v3333_v17 = vld [vmem:[%s4416_s1 + $0x7e0] ss:$8 sps:$4 sm:$0xff]   ;;  %v3338_v27 = vld [vmem:[%s4416_s1 + $0x3f4] ss:$8 sps:$4 sm:$0xff]  }
  0xc7   : > { %2185 = vmatmul.mubr.bf16.vlgmr.msra.gmra.mrb[0].mxu1 %v3893_v29  ;;  %v3263_v29 = vld [vmem:[%s4416_s1 + $0x724] ss:$8 sps:$4 sm:$0xff]  }
  0xc8   : > { %2349 = vmatmul.mubr.bf16.vlgmr.msra.gmra.mrb[0].mxu0 %v3910_v34  ;;  %2194 = vmatpush1.bf16.msra.mxu1 %v3246_v36  ;;  %v3258_v34 = vld [vmem:[%s4416_s1 + $0x320] ss:$8 sps:$4 sm:$0xff]   ;;  %v3341_v36 = vld [vmem:[%s4416_s1 + $0x7f4] ss:$8 sps:$4 sm:$0xff]  }
  0xc9   : > { %2358 = vmatpush1.bf16.msra.mxu0 %v3249_v37  ;;  %2195 = vmatprep.subr.bf16.mxu1 %v3254_v38  ;;  %v3336_v37 = vld [vmem:[%s4416_s1 + $0x3f0] ss:$8 sps:$4 sm:$0xff]  }
  0xca   : > { %2359 = vmatprep.subr.bf16.mxu0 %v3257_v49  ;;  %2225 = vmatprep.mubr.bf16.mxu1 %v569_v39  ;;  %v3339_v38 = vld [vmem:[%s4416_s1 + $0x7f0] ss:$8 sps:$4 sm:$0xff]   ;;  %v3346_v49 = vld [vmem:[%s4416_s1 + $0x804] ss:$8 sps:$4 sm:$0xff]  }
  0xcb   : > { %2389 = vmatprep.mubr.bf16.mxu0 %v603_v40  ;;  %v4294_v39 = vld.sshfl [vmem:[%s3599_s11 + $0x20] sm:$0x33 pattern:$0x76325410] }
  0xcc   : > { %2196 = vmatpush1.bf16.msra.mxu1 %v3252_v41  ;;  %v3344_v40 = vld [vmem:[%s4416_s1 + $0x800] ss:$8 sps:$4 sm:$0xff]   ;;  %v611_v41 = vcombine.high %v4294_v39, %v4294_v39 }
  0xcd   : > { %2360 = vmatpush1.bf16.msra.mxu0 %v3255_v42  ;;  %2197 = vmatprep.subr.bf16.mxu1 %v3260_v44  ;;  %v3349_v42 = vld [vmem:[%s4416_s1 + $0x814] ss:$8 sps:$4 sm:$0xff]   ;;  %v3347_v44 = vld [vmem:[%s4416_s1 + $0x810] ss:$8 sps:$4 sm:$0xff]  }
  0xce   : > { %2361 = vmatprep.subr.bf16.mxu0 %v3263_v29  ;;  %v3352_v29 = vld [vmem:[%s4416_s1 + $0x824] ss:$8 sps:$4 sm:$0xff]  }
  0xd0   : > { %2198 = vmatpush1.bf16.msra.mxu1 %v3258_v34  ;;  %v3350_v34 = vld [vmem:[%s4416_s1 + $0x820] ss:$8 sps:$4 sm:$0xff]  }
  0xd1   : > { %2362 = vmatpush1.bf16.msra.mxu0 %v3261_v45  ;;  %2199 = vmatprep.subr.bf16.mxu1 %v3266_v46  ;;  %v3358_v45 = vld [vmem:[%s4416_s1 + $0x844] ss:$8 sps:$4 sm:$0xff]   ;;  %v3356_v46 = vld [vmem:[%s4416_s1 + $0x840] ss:$8 sps:$4 sm:$0xff]  }
  0xd2   : > { %2363 = vmatprep.subr.bf16.mxu0 %v3269_v47  ;;  %v3361_v47 = vld [vmem:[%s4416_s1 + $0x854] ss:$8 sps:$4 sm:$0xff]  }
  0xd4   : > { %2200 = vmatpush1.bf16.msra.mxu1 %v3264_v48  ;;  %v3359_v48 = vld [vmem:[%s4416_s1 + $0x850] ss:$8 sps:$4 sm:$0xff]  }
  0xd5   : > { %2364 = vmatpush1.bf16.msra.mxu0 %v3267_v50  ;;  %2201 = vmatprep.subr.bf16.mxu1 %v3272_v51  ;;  %v3364_v50 = vld [vmem:[%s4416_s1 + $0x864] ss:$8 sps:$4 sm:$0xff]   ;;  %v3362_v51 = vld [vmem:[%s4416_s1 + $0x860] ss:$8 sps:$4 sm:$0xff]  }
  0xd6   : > { %2365 = vmatprep.subr.bf16.mxu0 %v3275_v52  ;;  %v3367_v52 = vld [vmem:[%s4416_s1 + $0x874] ss:$8 sps:$4 sm:$0xff]  }
  0xd8   : > { %2202 = vmatpush1.bf16.msra.mxu1 %v3270_v53  ;;  %v3365_v53 = vld [vmem:[%s4416_s1 + $0x870] ss:$8 sps:$4 sm:$0xff]  }
  0xd9   : > { %2366 = vmatpush1.bf16.msra.mxu0 %v3273_v54  ;;  %2203 = vmatprep.subr.bf16.mxu1 %v3278_v55  ;;  %v3370_v54 = vld [vmem:[%s4416_s1 + $0x884] ss:$8 sps:$4 sm:$0xff]   ;;  %v3368_v55 = vld [vmem:[%s4416_s1 + $0x880] ss:$8 sps:$4 sm:$0xff]  }
  0xda   : > { %2367 = vmatprep.subr.bf16.mxu0 %v3281_v56  ;;  %v3373_v56 = vld [vmem:[%s4416_s1 + $0x894] ss:$8 sps:$4 sm:$0xff]  }
  0xdc   : > { %2204 = vmatpush1.bf16.msra.mxu1 %v3276_v57  ;;  %v3371_v57 = vld [vmem:[%s4416_s1 + $0x890] ss:$8 sps:$4 sm:$0xff]  }
  0xdd   : > { %2368 = vmatpush1.bf16.msra.mxu0 %v3279_v58  ;;  %2205 = vmatprep.subr.bf16.mxu1 %v3284_v59  ;;  %v3376_v58 = vld [vmem:[%s4416_s1 + $0x8a4] ss:$8 sps:$4 sm:$0xff]   ;;  %v3374_v59 = vld [vmem:[%s4416_s1 + $0x8a0] ss:$8 sps:$4 sm:$0xff]  }
  0xde   : > { %2369 = vmatprep.subr.bf16.mxu0 %v3287_v60  ;;  %v3379_v60 = vld [vmem:[%s4416_s1 + $0x8b4] ss:$8 sps:$4 sm:$0xff]  }
  0xe0   : > { %2206 = vmatpush1.bf16.msra.mxu1 %v3282_v61  ;;  %v3377_v61 = vld [vmem:[%s4416_s1 + $0x8b0] ss:$8 sps:$4 sm:$0xff]  }
  0xe1   : > { %2370 = vmatpush1.bf16.msra.mxu0 %v3285_v62  ;;  %2207 = vmatprep.subr.bf16.mxu1 %v3290_v63  ;;  %v3382_v62 = vld [vmem:[%s4416_s1 + $0x8c4] ss:$8 sps:$4 sm:$0xff]   ;;  %v3380_v63 = vld [vmem:[%s4416_s1 + $0x8c0] ss:$8 sps:$4 sm:$0xff]  }
  0xe2   : > { %2371 = vmatprep.subr.bf16.mxu0 %v3293_v0  ;;  %v3385_v0 = vld [vmem:[%s4416_s1 + $0x8d4] ss:$8 sps:$4 sm:$0xff]  }
  0xe4   : > { %2208 = vmatpush1.bf16.msra.mxu1 %v3288_v1  ;;  %v3383_v1 = vld [vmem:[%s4416_s1 + $0x8d0] ss:$8 sps:$4 sm:$0xff]  }
  0xe5   : > { %2372 = vmatpush1.bf16.msra.mxu0 %v3291_v2  ;;  %2209 = vmatprep.subr.bf16.mxu1 %v3296_v3  ;;  %v3388_v2 = vld [vmem:[%s4416_s1 + $0x8e4] ss:$8 sps:$4 sm:$0xff]   ;;  %v3386_v3 = vld [vmem:[%s4416_s1 + $0x8e0] ss:$8 sps:$4 sm:$0xff]  }
  0xe6   : > { %2373 = vmatprep.subr.bf16.mxu0 %v3299_v4  ;;  %v3391_v4 = vld [vmem:[%s4416_s1 + $0x8f4] ss:$8 sps:$4 sm:$0xff]  }
  0xe8   : > { %2210 = vmatpush1.bf16.msra.mxu1 %v3294_v5  ;;  %v3389_v5 = vld [vmem:[%s4416_s1 + $0x8f0] ss:$8 sps:$4 sm:$0xff]  }
  0xe9   : > { %2374 = vmatpush1.bf16.msra.mxu0 %v3297_v6  ;;  %2211 = vmatprep.subr.bf16.mxu1 %v3302_v7 }
  0xea   : > { %2375 = vmatprep.subr.bf16.mxu0 %v3305_v8 }
  0xec   : > { %2212 = vmatpush1.bf16.msra.mxu1 %v3300_v9 }
  0xed   : > { %2376 = vmatpush1.bf16.msra.mxu0 %v3303_v10  ;;  %2213 = vmatprep.subr.bf16.mxu1 %v3308_v11  ;;  %v2443_v10 = vsub.s32 0, %v3579_v43  ;;  %v2439_v11 = vld [vmem:[%s4417_s2] ss:$2 sm:$0x3] }
  0xee   : > { %2377 = vmatprep.subr.bf16.mxu0 %v3311_v12  ;;  %v2447_v12 = vsub.s32 1, %v3579_v43 }
  0xf0   : > { %2214 = vmatpush1.bf16.msra.mxu1 %v3306_v13  ;;  %v2894_v13 = vld [vmem:[%s4417_s2 + $0x1] ss:$2 sm:$0x3] }
  0xf1   : > { %2378 = vmatpush1.bf16.msra.mxu0 %v3309_v14  ;;  %2215 = vmatprep.subr.bf16.mxu1 %v3314_v15  ;;  %v2444_v14 = vrot.slane %v2439_v11, %v2443_v10 }
  0xf2   : > { %2379 = vmatprep.subr.bf16.mxu0 %v3317_v18  ;;  %v2448_v18 = vrot.slane %v2439_v11, %v2447_v12 }
  0xf4   : > { %2216 = vmatpush1.bf16.msra.mxu1 %v3312_v19 }
  0xf5   : > { %2380 = vmatpush1.bf16.msra.mxu0 %v3315_v20  ;;  %2217 = vmatprep.subr.bf16.mxu1 %v3320_v21  ;;  %v2459_v20 = vrot.slane %v2894_v13, %v2443_v10 }
  0xf6   : > { %2381 = vmatprep.subr.bf16.mxu0 %v3323_v22 }
  0xf8   : > { %2218 = vmatpush1.bf16.msra.mxu1 %v3318_v23  ;;  %v2463_v23 = vrot.slane %v2894_v13, %v2447_v12 }
  0xf9   : > { %2382 = vmatpush1.bf16.msra.mxu0 %v3321_v24  ;;  %2219 = vmatprep.subr.bf16.mxu1 %v3326_v25 }
  0xfa   : > { %2383 = vmatprep.subr.bf16.mxu0 %v3329_v26 }
  0xfc   : > { %2220 = vmatpush1.bf16.msra.mxu1 %v3324_v28 }
  0xfd   : > { %2384 = vmatpush1.bf16.msra.mxu0 %v3327_v31  ;;  %2221 = vmatprep.subr.bf16.mxu1 %v3332_v32 }
  0xfe   : > { %2385 = vmatprep.subr.bf16.mxu0 %v3335_v33 }
 0x100   : > { %2222 = vmatpush1.bf16.msra.mxu1 %v3330_v16 }
 0x101   : > { %2386 = vmatpush1.bf16.msra.mxu0 %v3333_v17  ;;  %2223 = vmatprep.subr.bf16.mxu1 %v3338_v27 }
 0x102   : > { %2387 = vmatprep.subr.bf16.mxu0 %v3341_v36 }
 0x104   : > { %2224 = vmatpush1.bf16.msra.mxu1 %v3336_v37 }
 0x105   : > { %2388 = vmatpush1.bf16.msra.mxu0 %v3339_v38 }
 0x106   : > { %2398 = vmatprep.subr.bf16.mxu0 %v3346_v49 }
 0x107   : > { %2226 = vmatmul.mubr.bf16.vlgmr.msra.gmra.mrb[0].mxu1 %v4093_v30  ;;  %v3355_v30 = vld [vmem:[%s4416_s1 + $0x834] ss:$8 sps:$4 sm:$0xff]  }
 0x108   : > { %2390 = vmatmul.mubr.bf16.vlgmr.msra.gmra.mrb[0].mxu0 %v4096_v35  ;;  %v3353_v35 = vld [vmem:[%s4416_s1 + $0x830] ss:$8 sps:$4 sm:$0xff]  }
 0x109   : > { %2399 = vmatpush1.bf16.msra.mxu0 %v3344_v40  ;;  %2430 = vmatprep.mubr.bf16.mxu0 %v611_v41 }
 0x10a   : > { %2400 = vmatprep.subr.bf16.mxu0 %v3349_v42 }
 0x10d   : > { %2401 = vmatpush1.bf16.msra.mxu0 %v3347_v44 }
 0x10e   : > { %2402 = vmatprep.subr.bf16.mxu0 %v3352_v29 }
 0x111   : > { %2403 = vmatpush1.bf16.msra.mxu0 %v3350_v34 }
 0x112   : > { %2404 = vmatprep.subr.bf16.mxu0 %v3355_v30 }
 0x115   : > { %2405 = vmatpush1.bf16.msra.mxu0 %v3353_v35 }
 0x116   : > { %2406 = vmatprep.subr.bf16.mxu0 %v3358_v45 }
 0x119   : > { %2407 = vmatpush1.bf16.msra.mxu0 %v3356_v46 }
 0x11a   : > { %2408 = vmatprep.subr.bf16.mxu0 %v3361_v47 }
 0x11d   : > { %2409 = vmatpush1.bf16.msra.mxu0 %v3359_v48 }
 0x11e   : > { %2410 = vmatprep.subr.bf16.mxu0 %v3364_v50 }
 0x121   : > { %2411 = vmatpush1.bf16.msra.mxu0 %v3362_v51 }
 0x122   : > { %2412 = vmatprep.subr.bf16.mxu0 %v3367_v52 }
 0x125   : > { %2413 = vmatpush1.bf16.msra.mxu0 %v3365_v53 }
 0x126   : > { %2414 = vmatprep.subr.bf16.mxu0 %v3370_v54 }
 0x129   : > { %2415 = vmatpush1.bf16.msra.mxu0 %v3368_v55 }
 0x12a   : > { %2416 = vmatprep.subr.bf16.mxu0 %v3373_v56 }
 0x12d   : > { %2417 = vmatpush1.bf16.msra.mxu0 %v3371_v57 }
 0x12e   : > { %2418 = vmatprep.subr.bf16.mxu0 %v3376_v58 }
 0x131   : > { %2419 = vmatpush1.bf16.msra.mxu0 %v3374_v59 }
 0x132   : > { %2420 = vmatprep.subr.bf16.mxu0 %v3379_v60 }
 0x135   : > { %2421 = vmatpush1.bf16.msra.mxu0 %v3377_v61 }
 0x136   : > { %2422 = vmatprep.subr.bf16.mxu0 %v3382_v62 }
 0x139   : > { %2423 = vmatpush1.bf16.msra.mxu0 %v3380_v63 }
 0x13a   : > { %2424 = vmatprep.subr.bf16.mxu0 %v3385_v0 }
 0x13d   : > { %2425 = vmatpush1.bf16.msra.mxu0 %v3383_v1 }
 0x13e   : > { %2426 = vmatprep.subr.bf16.mxu0 %v3388_v2 }
 0x141   : > { %2427 = vmatpush1.bf16.msra.mxu0 %v3386_v3 }
 0x142   : > { %2428 = vmatprep.subr.bf16.mxu0 %v3391_v4 }
 0x145   : > { %2429 = vmatpush1.bf16.msra.mxu0 %v3389_v5 }
 0x148   : > { %2431 = vmatmul.mubr.bf16.vlgmr.msra.gmra.mrb[0].mxu0 %v4294_v39 }
 0x1da   : > { %v2227_v6 = vpop.f32.mrb[0].mxu1 }
 0x1db   : > { %v2229_v7 = vpop.f32.mrb[1].mxu1 }
 0x1dc   : > { %v2231_v8 = vpop.f32.mrb[2].mxu1 }
 0x1dd   : > { %v2232_v9 = vpop.f32.mrb[3].mxu1 }
 0x21b   : > { %v2432_v15 = vpop.f32.mrb[0].mxu0 }
 0x21c   : > { %v2900_v19 = vadd.f32 %v2432_v15, %v2227_v6  ;;  %v2434_v21 = vpop.f32.mrb[1].mxu0 }
 0x21d   : > { %v2901_v22 = vadd.f32 %v2434_v21, %v2229_v7  ;;  %v2436_v24 = vpop.f32.mrb[2].mxu0 }
 0x21e   : > { %v2451_v25 = vmul.f32 %v2900_v19, %v2444_v14  ;;  %v2437_v26 = vpop.f32.mrb[3].mxu0 }
 0x21f   : > { %v2452_v28 = vmul.f32 %v2901_v22, %v2448_v18 }
 0x220   : > { %v2466_v31 = vadd.f32 %v2459_v20, %v2451_v25 }
 0x221   : > { %v2467_v32 = vadd.f32 %v2463_v23, %v2452_v28 }
 0x222   : > { %v2468_v43 = vmax.f32 %v2466_v31, 0.0 }
 0x223   : > { %v2469_v33 = vmax.f32 %v2467_v32, 0.0 }
 0x225   : > { %v2895_v16 = vpack.c.bf16 %v2469_v33, %v2468_v43 }
 0x227   : > { %2896 = vst.sshfl [vmem:[%s236_s24] sm:$0x33 pattern:$0x76325410] %v2895_v16 }
 0x228 PF: > { %s13_s14 = sadd.s32 1, %s3414_s14   ;;  %s4419_s12 = smov %s3410_s13 }
 0x229   : > { %p10_p5 = scmp.ge.s32.totalorder %s13_s14, 4   ;;  %s4420_s13 = smov %s4422_s15 }
 0x22b   :  { %12 = sbr.rel (!%p10_p5) target bundleno = 2 (0x2), region = 69 }

</bundles_post_ra>
